<compile_context>
chip_gen: v6e
topology: v6e:2x2x1
jax: 0.10.0
libtpu: 0.0.40
codegen_flags: <defaults>
</compile_context>

<pallas_src>
import numpy as np
import jax
import jax.numpy as jnp
from jax.experimental import pallas as pl
from jax.experimental.pallas import tpu as pltpu

_EPS = 1e-5


def _round_up(a, m):
    return ((a + m - 1) // m) * m


# ----------------------------- in-kernel helpers -----------------------------

def _conv1_bn_relu(h, w, scale, shift):
    # h: (L, B, 1) f32; w: (K, Cout) f32; scale/shift: (1, Cout) f32.
    # Cin == 1 -> broadcast-multiply taps on the VPU (kept f32 for v5e).
    k_taps, _ = w.shape
    length, b, _ = h.shape
    pad = (k_taps - 1) // 2
    zp = jnp.zeros((pad, b, 1), jnp.float32)
    hp = jnp.concatenate([zp, h, zp], axis=0)                    # (L+2p, B, 1)
    acc = jnp.zeros((length, b, w.shape[1]), jnp.float32)
    for k in range(k_taps):
        acc = acc + hp[k:k + length] * w[k]                      # (L,B,1)*(Cout,)
    return jnp.maximum(acc * scale + shift, 0.0)


def _conv_fused_bn_relu(h, w, scale, shift):
    # h: (L, B, Cin) f32; w: (K*Cin, Cout) bf16 (row = k*Cin + cin).
    # All K taps fused into ONE MXU contraction of depth K*Cin.
    length, b, c_in = h.shape
    kc, c_out = w.shape
    k_taps = kc // c_in
    pad = (k_taps - 1) // 2
    zp = jnp.zeros((pad, b, c_in), jnp.float32)
    hp = jnp.concatenate([zp, h, zp], axis=0)                    # (L+2p, B, Cin)
    taps = jnp.concatenate([hp[k:k + length] for k in range(k_taps)],
                           axis=-1)                              # (L, B, K*Cin)
    mixed = jnp.dot(taps.reshape(length * b, kc).astype(jnp.bfloat16), w,
                    preferred_element_type=jnp.float32)
    out = mixed.reshape(length, b, c_out)
    return jnp.maximum(out * scale + shift, 0.0)


def _maxpool2(h):
    # h: (L, B, C) -> (L/2, B, C); pooling only regroups leading dims.
    length, b, c = h.shape
    h4 = h.reshape(length // 2, 2, b, c)
    return jnp.maximum(h4[:, 0], h4[:, 1])


# --------------------------------- kernel ------------------------------------

def _fingerprint_kernel(x_ref,
                        w1_ref, s1_ref, t1_ref,
                        w2_ref, s2_ref, t2_ref,
                        w3_ref, s3_ref, t3_ref,
                        wf1_ref, sf1_ref, tf1_ref,
                        wf2_ref, sf2_ref, tf2_ref,
                        wf3_ref, bf3_ref,
                        o_ref):
    xb = x_ref[...]                                              # (B, L) f32
    h = jnp.transpose(xb)[:, :, None]                            # (L, B, 1)

    h = _conv1_bn_relu(h, w1_ref[...], s1_ref[...], t1_ref[...])  # (L, B, 32)
    h = _maxpool2(h)                                              # (L/2, B, 32)
    h = _conv_fused_bn_relu(h, w2_ref[...], s2_ref[...], t2_ref[...])
    h = _maxpool2(h)                                              # (L/4, B, 64)
    h = _conv_fused_bn_relu(h, w3_ref[...], s3_ref[...], t3_ref[...])
    h = _maxpool2(h)                                              # (L3, B, 128)

    # fc1: accumulate over sequence positions instead of a concat-flatten.
    l3, b, _ = h.shape
    h2p = wf1_ref.shape[-1]
    acc = jnp.zeros((b, h2p), jnp.float32)
    for l in range(l3):
        acc = acc + jnp.dot(h[l].astype(jnp.bfloat16), wf1_ref[l],
                            preferred_element_type=jnp.float32)
    z = jnp.maximum(acc * sf1_ref[...] + tf1_ref[...], 0.0)
    # dropout1 (p=0.5): identity in inference mode.
    z = jnp.dot(z.astype(jnp.bfloat16), wf2_ref[...],
                preferred_element_type=jnp.float32)
    z = jnp.maximum(z * sf2_ref[...] + tf2_ref[...], 0.0)
    # dropout2 (p=0.3): identity in inference mode.
    o_ref[...] = (jnp.dot(z.astype(jnp.bfloat16), wf3_ref[...],
                          preferred_element_type=jnp.float32)
                  + bf3_ref[...])                                 # (B, nc_pad)


# --------------------------------- wrapper -----------------------------------

def _full_spec(a):
    nd = a.ndim
    return pl.BlockSpec(a.shape, lambda i, nd=nd: (0,) * nd)


def fingerprint_classifier_forward(x, params, *, hidden_size, num_classes,
                                   b_tile=None):
    batch, input_size = x.shape
    assert input_size % 8 == 0
    l3 = input_size // 8
    h2 = hidden_size * 2
    h2p = _round_up(h2, 128)            # fc1 width, lane-padded
    hdp = _round_up(hidden_size, 128)   # fc2 width, lane-padded
    nc_pad = _round_up(num_classes, 128)
    p = params

    def fold(g, b, m, v, bias):
        scale = g / jnp.sqrt(v + _EPS)
        shift = b - m * scale + bias * scale
        return scale[None, :].astype(jnp.float32), shift[None, :].astype(jnp.float32)

    def pad_cols(a, n):
        return jnp.pad(a, ((0, 0), (0, n - a.shape[1]))).astype(jnp.float32)

    # conv1 (Cin=1): torch (32,1,5) -> (K=5, Cout=32), f32 broadcast path.
    w1 = jnp.transpose(p['conv1_w'], (2, 1, 0)).reshape(5, 32).astype(jnp.float32)
    s1, t1 = fold(p['bn1_g'], p['bn1_b'], p['bn1_m'], p['bn1_v'], p['conv1_b'])

    # conv2/conv3: torch (Cout,Cin,K) -> fused (K*Cin, Cout), row = k*Cin+cin, bf16.
    w2 = jnp.transpose(p['conv2_w'], (2, 1, 0)).reshape(3 * 32, 64).astype(jnp.bfloat16)
    s2, t2 = fold(p['bn2_g'], p['bn2_b'], p['bn2_m'], p['bn2_v'], p['conv2_b'])
    w3 = jnp.transpose(p['conv3_w'], (2, 1, 0)).reshape(3 * 64, 128).astype(jnp.bfloat16)
    s3, t3 = fold(p['bn3_g'], p['bn3_b'], p['bn3_m'], p['bn3_v'], p['conv3_b'])

    # fc1: torch flatten index f = c*l3 + l (channel-major); kernel accumulates
    # per position l, so store the weight as (l3, 128, h2p).
    wf1 = jnp.transpose(p['fc1_w'].reshape(h2, 128, l3), (2, 1, 0))   # (l3,128,h2)
    wf1 = jnp.pad(wf1, ((0, 0), (0, 0), (0, h2p - h2))).astype(jnp.bfloat16)
    sf1, tf1 = fold(p['bn4_g'], p['bn4_b'], p['bn4_m'], p['bn4_v'], p['fc1_b'])
    sf1, tf1 = pad_cols(sf1, h2p), pad_cols(tf1, h2p)

    wf2 = jnp.pad(p['fc2_w'].T, ((0, h2p - h2), (0, hdp - hidden_size))
                  ).astype(jnp.bfloat16)
    sf2, tf2 = fold(p['bn5_g'], p['bn5_b'], p['bn5_m'], p['bn5_v'], p['fc2_b'])
    sf2, tf2 = pad_cols(sf2, hdp), pad_cols(tf2, hdp)

    wf3 = jnp.pad(p['fc3_w'].T, ((0, hdp - hidden_size), (0, nc_pad - num_classes))
                  ).astype(jnp.bfloat16)
    bf3 = jnp.pad(p['fc3_b'][None, :],
                  ((0, 0), (0, nc_pad - num_classes))).astype(jnp.float32)

    # Batch tile: as large as possible (<=128, multiple of 8) while keeping
    # >= 2 grid steps when the batch allows, so v7x can use both TensorCores.
    if b_tile is None:
        b_tile = max(8, min(128, _round_up(pl.cdiv(batch, 2), 8)))
    assert b_tile % 8 == 0
    b_pad = _round_up(batch, b_tile)
    xp = jnp.pad(x.astype(jnp.float32), ((0, b_pad - batch), (0, 0)))  # (B_pad, L)

    weights = [w1, s1, t1, w2, s2, t2, w3, s3, t3,
               wf1, sf1, tf1, wf2, sf2, tf2, wf3, bf3]

    in_specs = ([pl.BlockSpec((b_tile, input_size), lambda i: (i, 0))]
                + [_full_spec(w) for w in weights])
    out_specs = pl.BlockSpec((b_tile, nc_pad), lambda i: (i, 0))

    out = pl.pallas_call(
        _fingerprint_kernel,
        grid=(b_pad // b_tile,),
        in_specs=in_specs,
        out_specs=out_specs,
        out_shape=jax.ShapeDtypeStruct((b_pad, nc_pad), jnp.float32),
        compiler_params=pltpu.CompilerParams(
            dimension_semantics=("parallel",)),
    )(xp, *weights)
    return out[:batch, :num_classes]


# -------------------------- deterministic parameters --------------------------

def init_params(key, input_size, hidden_size, num_classes):
    l3 = input_size // 8
    feat = 128 * l3
    h2 = hidden_size * 2
    keys = iter(jax.random.split(key, 40))

    def nrm(shape, scale=0.1):
        return scale * jax.random.normal(next(keys), shape, dtype=jnp.float32)

    def unif(shape):
        return jax.random.uniform(next(keys), shape, jnp.float32, 0.5, 1.5)

    p = {}

    def add_bn(name, c):
        p[name + '_g'] = 1.0 + nrm((c,))
        p[name + '_b'] = nrm((c,))
        p[name + '_m'] = nrm((c,))
        p[name + '_v'] = unif((c,))

    p['conv1_w'] = nrm((32, 1, 5));   p['conv1_b'] = nrm((32,));  add_bn('bn1', 32)
    p['conv2_w'] = nrm((64, 32, 3));  p['conv2_b'] = nrm((64,));  add_bn('bn2', 64)
    p['conv3_w'] = nrm((128, 64, 3)); p['conv3_b'] = nrm((128,)); add_bn('bn3', 128)
    p['fc1_w'] = nrm((h2, feat));     p['fc1_b'] = nrm((h2,));    add_bn('bn4', h2)
    p['fc2_w'] = nrm((hidden_size, h2)); p['fc2_b'] = nrm((hidden_size,)); add_bn('bn5', hidden_size)
    p['fc3_w'] = nrm((num_classes, hidden_size)); p['fc3_b'] = nrm((num_classes,))
    return p


# ------------------------------- numpy reference ------------------------------

def reference_forward(x, params):
    x = np.asarray(x, np.float64)
    p = {k: np.asarray(v, np.float64) for k, v in params.items()}

    def conv1d(h, w, b, pad):
        B, Cin, L = h.shape
        Cout, _, K = w.shape
        hp = np.pad(h, ((0, 0), (0, 0), (pad, pad)))
        out = np.zeros((B, Cout, L))
        for k in range(K):
            out += np.einsum('oi,bil->bol', w[:, :, k], hp[:, :, k:k + L])
        return out + b[None, :, None]

    def bn3(h, n):
        g, b, m, v = p[n + '_g'], p[n + '_b'], p[n + '_m'], p[n + '_v']
        return ((h - m[None, :, None]) / np.sqrt(v[None, :, None] + _EPS)
                * g[None, :, None] + b[None, :, None])

    def bn1(h, n):
        g, b, m, v = p[n + '_g'], p[n + '_b'], p[n + '_m'], p[n + '_v']
        return (h - m) / np.sqrt(v + _EPS) * g + b

    def pool(h):
        B, C, L = h.shape
        return h.reshape(B, C, L // 2, 2).max(-1)

    h = x[:, None, :]
    h = pool(np.maximum(bn3(conv1d(h, p['conv1_w'], p['conv1_b'], 2), 'bn1'), 0))
    h = pool(np.maximum(bn3(conv1d(h, p['conv2_w'], p['conv2_b'], 1), 'bn2'), 0))
    h = pool(np.maximum(bn3(conv1d(h, p['conv3_w'], p['conv3_b'], 1), 'bn3'), 0))
    h = h.reshape(h.shape[0], -1)
    h = np.maximum(bn1(h @ p['fc1_w'].T + p['fc1_b'], 'bn4'), 0)
    h = np.maximum(bn1(h @ p['fc2_w'].T + p['fc2_b'], 'bn5'), 0)
    return h @ p['fc3_w'].T + p['fc3_b']


# ----------------------------------- main -------------------------------------

if __name__ == "__main__":
    input_size, hidden_size, num_classes = 64, 32, 10
    batch = 16

    key = jax.random.PRNGKey(0)
    kx, kp = jax.random.split(key)
    x = jax.random.normal(kx, (batch, input_size), dtype=jnp.float32)
    params = init_params(kp, input_size, hidden_size, num_classes)

    out = fingerprint_classifier_forward(
        x, params, hidden_size=hidden_size, num_classes=num_classes)
    out = jax.block_until_ready(out)

    ref = reference_forward(x, params)
    assert out.shape == (batch, num_classes)
    np.testing.assert_allclose(np.asarray(out), ref, rtol=2e-2, atol=2e-2)
    print("KERNEL_OK")
</pallas_src>

<mosaic_0001>
module attributes {stable_mosaic.version = 11 : i64} {
  func.func @_fingerprint_kernel(%arg0: i32, %arg1: memref<8x64xf32, #tpu.memory_space<vmem>>, %arg2: memref<5x32xf32, #tpu.memory_space<vmem>>, %arg3: memref<1x32xf32, #tpu.memory_space<vmem>>, %arg4: memref<1x32xf32, #tpu.memory_space<vmem>>, %arg5: memref<96x64xbf16, #tpu.memory_space<vmem>>, %arg6: memref<1x64xf32, #tpu.memory_space<vmem>>, %arg7: memref<1x64xf32, #tpu.memory_space<vmem>>, %arg8: memref<192x128xbf16, #tpu.memory_space<vmem>>, %arg9: memref<1x128xf32, #tpu.memory_space<vmem>>, %arg10: memref<1x128xf32, #tpu.memory_space<vmem>>, %arg11: memref<8x128x128xbf16, #tpu.memory_space<vmem>>, %arg12: memref<1x128xf32, #tpu.memory_space<vmem>>, %arg13: memref<1x128xf32, #tpu.memory_space<vmem>>, %arg14: memref<128x128xbf16, #tpu.memory_space<vmem>>, %arg15: memref<1x128xf32, #tpu.memory_space<vmem>>, %arg16: memref<1x128xf32, #tpu.memory_space<vmem>>, %arg17: memref<128x128xbf16, #tpu.memory_space<vmem>>, %arg18: memref<1x128xf32, #tpu.memory_space<vmem>>, %arg19: memref<8x128xf32, #tpu.memory_space<vmem>>) attributes {dimension_semantics = [#tpu.dimension_semantics<parallel>], iteration_bounds = array<i64: 2>, scalar_prefetch = 0 : i64, scratch_operands = 0 : i64, tpu.core_type = #tpu.core_type<tc>, window_params = [{transform_indices = @transform_0, window_bounds = array<i64: 8, 64>}, {pipeline_mode = #tpu.pipeline_mode<synchronous>, transform_indices = @transform_1, window_bounds = array<i64: 5, 32>}, {pipeline_mode = #tpu.pipeline_mode<synchronous>, transform_indices = @transform_2, window_bounds = array<i64: 1, 32>}, {pipeline_mode = #tpu.pipeline_mode<synchronous>, transform_indices = @transform_3, window_bounds = array<i64: 1, 32>}, {pipeline_mode = #tpu.pipeline_mode<synchronous>, transform_indices = @transform_4, window_bounds = array<i64: 96, 64>}, {pipeline_mode = #tpu.pipeline_mode<synchronous>, transform_indices = @transform_5, window_bounds = array<i64: 1, 64>}, {pipeline_mode = #tpu.pipeline_mode<synchronous>, transform_indices = @transform_6, window_bounds = array<i64: 1, 64>}, {pipeline_mode = #tpu.pipeline_mode<synchronous>, transform_indices = @transform_7, window_bounds = array<i64: 192, 128>}, {pipeline_mode = #tpu.pipeline_mode<synchronous>, transform_indices = @transform_8, window_bounds = array<i64: 1, 128>}, {pipeline_mode = #tpu.pipeline_mode<synchronous>, transform_indices = @transform_9, window_bounds = array<i64: 1, 128>}, {pipeline_mode = #tpu.pipeline_mode<synchronous>, transform_indices = @transform_10, window_bounds = array<i64: 8, 128, 128>}, {pipeline_mode = #tpu.pipeline_mode<synchronous>, transform_indices = @transform_11, window_bounds = array<i64: 1, 128>}, {pipeline_mode = #tpu.pipeline_mode<synchronous>, transform_indices = @transform_12, window_bounds = array<i64: 1, 128>}, {pipeline_mode = #tpu.pipeline_mode<synchronous>, transform_indices = @transform_13, window_bounds = array<i64: 128, 128>}, {pipeline_mode = #tpu.pipeline_mode<synchronous>, transform_indices = @transform_14, window_bounds = array<i64: 1, 128>}, {pipeline_mode = #tpu.pipeline_mode<synchronous>, transform_indices = @transform_15, window_bounds = array<i64: 1, 128>}, {pipeline_mode = #tpu.pipeline_mode<synchronous>, transform_indices = @transform_16, window_bounds = array<i64: 128, 128>}, {pipeline_mode = #tpu.pipeline_mode<synchronous>, transform_indices = @transform_17, window_bounds = array<i64: 1, 128>}, {transform_indices = @transform_18, window_bounds = array<i64: 8, 128>}]} {
    %c0 = arith.constant 0 : index
    %c0_0 = arith.constant 0 : index
    %0 = vector.load %arg1[%c0, %c0_0] : memref<8x64xf32, #tpu.memory_space<vmem>>, vector<8x64xf32>
    %1 = tpu.transpose %0, [1, 0] : vector<8x64xf32> -> vector<64x8xf32>
    %2 = vector.shape_cast %1 : vector<64x8xf32> to vector<64x8x1xf32>
    %c0_1 = arith.constant 0 : index
    %c0_2 = arith.constant 0 : index
    %3 = vector.load %arg2[%c0_1, %c0_2] : memref<5x32xf32, #tpu.memory_space<vmem>>, vector<5x32xf32>
    %c0_3 = arith.constant 0 : index
    %c0_4 = arith.constant 0 : index
    %4 = vector.load %arg3[%c0_3, %c0_4] : memref<1x32xf32, #tpu.memory_space<vmem>>, vector<1x32xf32>
    %c0_5 = arith.constant 0 : index
    %c0_6 = arith.constant 0 : index
    %5 = vector.load %arg4[%c0_5, %c0_6] : memref<1x32xf32, #tpu.memory_space<vmem>>, vector<1x32xf32>
    %cst = arith.constant 0.000000e+00 : f32
    %6 = vector.broadcast %cst : f32 to vector<2x8x1xf32>
    %7 = tpu.concatenate %6, %2, %6 in 0 : vector<2x8x1xf32>, vector<64x8x1xf32>, vector<2x8x1xf32> -> vector<68x8x1xf32>
    %cst_7 = arith.constant 0.000000e+00 : f32
    %8 = vector.broadcast %cst_7 : f32 to vector<64x8x32xf32>
    %9 = vector.extract_strided_slice %7 {offsets = [0, 0, 0], sizes = [64, 8, 1], strides = [1, 1, 1]} : vector<68x8x1xf32> to vector<64x8x1xf32>
    %10 = vector.extract_strided_slice %3 {offsets = [0, 0], sizes = [1, 32], strides = [1, 1]} : vector<5x32xf32> to vector<1x32xf32>
    %11 = vector.shape_cast %10 : vector<1x32xf32> to vector<32xf32>
    %12 = vector.shape_cast %11 : vector<32xf32> to vector<1x1x32xf32>
    %13 = vector.broadcast %9 : vector<64x8x1xf32> to vector<64x8x32xf32>
    %14 = vector.broadcast %12 : vector<1x1x32xf32> to vector<64x8x32xf32>
    %15 = arith.mulf %13, %14 : vector<64x8x32xf32>
    %16 = arith.addf %8, %15 : vector<64x8x32xf32>
    %17 = vector.extract_strided_slice %7 {offsets = [1, 0, 0], sizes = [64, 8, 1], strides = [1, 1, 1]} : vector<68x8x1xf32> to vector<64x8x1xf32>
    %18 = vector.extract_strided_slice %3 {offsets = [1, 0], sizes = [1, 32], strides = [1, 1]} : vector<5x32xf32> to vector<1x32xf32>
    %19 = vector.shape_cast %18 : vector<1x32xf32> to vector<32xf32>
    %20 = vector.shape_cast %19 : vector<32xf32> to vector<1x1x32xf32>
    %21 = vector.broadcast %17 : vector<64x8x1xf32> to vector<64x8x32xf32>
    %22 = vector.broadcast %20 : vector<1x1x32xf32> to vector<64x8x32xf32>
    %23 = arith.mulf %21, %22 : vector<64x8x32xf32>
    %24 = arith.addf %16, %23 : vector<64x8x32xf32>
    %25 = vector.extract_strided_slice %7 {offsets = [2, 0, 0], sizes = [64, 8, 1], strides = [1, 1, 1]} : vector<68x8x1xf32> to vector<64x8x1xf32>
    %26 = vector.extract_strided_slice %3 {offsets = [2, 0], sizes = [1, 32], strides = [1, 1]} : vector<5x32xf32> to vector<1x32xf32>
    %27 = vector.shape_cast %26 : vector<1x32xf32> to vector<32xf32>
    %28 = vector.shape_cast %27 : vector<32xf32> to vector<1x1x32xf32>
    %29 = vector.broadcast %25 : vector<64x8x1xf32> to vector<64x8x32xf32>
    %30 = vector.broadcast %28 : vector<1x1x32xf32> to vector<64x8x32xf32>
    %31 = arith.mulf %29, %30 : vector<64x8x32xf32>
    %32 = arith.addf %24, %31 : vector<64x8x32xf32>
    %33 = vector.extract_strided_slice %7 {offsets = [3, 0, 0], sizes = [64, 8, 1], strides = [1, 1, 1]} : vector<68x8x1xf32> to vector<64x8x1xf32>
    %34 = vector.extract_strided_slice %3 {offsets = [3, 0], sizes = [1, 32], strides = [1, 1]} : vector<5x32xf32> to vector<1x32xf32>
    %35 = vector.shape_cast %34 : vector<1x32xf32> to vector<32xf32>
    %36 = vector.shape_cast %35 : vector<32xf32> to vector<1x1x32xf32>
    %37 = vector.broadcast %33 : vector<64x8x1xf32> to vector<64x8x32xf32>
    %38 = vector.broadcast %36 : vector<1x1x32xf32> to vector<64x8x32xf32>
    %39 = arith.mulf %37, %38 : vector<64x8x32xf32>
    %40 = arith.addf %32, %39 : vector<64x8x32xf32>
    %41 = vector.extract_strided_slice %7 {offsets = [4, 0, 0], sizes = [64, 8, 1], strides = [1, 1, 1]} : vector<68x8x1xf32> to vector<64x8x1xf32>
    %42 = vector.extract_strided_slice %3 {offsets = [4, 0], sizes = [1, 32], strides = [1, 1]} : vector<5x32xf32> to vector<1x32xf32>
    %43 = vector.shape_cast %42 : vector<1x32xf32> to vector<32xf32>
    %44 = vector.shape_cast %43 : vector<32xf32> to vector<1x1x32xf32>
    %45 = vector.broadcast %41 : vector<64x8x1xf32> to vector<64x8x32xf32>
    %46 = vector.broadcast %44 : vector<1x1x32xf32> to vector<64x8x32xf32>
    %47 = arith.mulf %45, %46 : vector<64x8x32xf32>
    %48 = arith.addf %40, %47 : vector<64x8x32xf32>
    %49 = vector.shape_cast %4 : vector<1x32xf32> to vector<1x1x32xf32>
    %50 = vector.broadcast %49 : vector<1x1x32xf32> to vector<64x8x32xf32>
    %51 = arith.mulf %48, %50 : vector<64x8x32xf32>
    %52 = vector.shape_cast %5 : vector<1x32xf32> to vector<1x1x32xf32>
    %53 = vector.broadcast %52 : vector<1x1x32xf32> to vector<64x8x32xf32>
    %54 = arith.addf %51, %53 : vector<64x8x32xf32>
    %cst_8 = arith.constant 0.000000e+00 : f32
    %55 = vector.broadcast %cst_8 : f32 to vector<64x8x32xf32>
    %56 = arith.maximumf %54, %55 : vector<64x8x32xf32>
    %57 = vector.shape_cast %56 : vector<64x8x32xf32> to vector<32x2x8x32xf32>
    %58 = vector.extract_strided_slice %57 {offsets = [0, 0, 0, 0], sizes = [32, 1, 8, 32], strides = [1, 1, 1, 1]} : vector<32x2x8x32xf32> to vector<32x1x8x32xf32>
    %59 = vector.shape_cast %58 : vector<32x1x8x32xf32> to vector<32x8x32xf32>
    %60 = vector.extract_strided_slice %57 {offsets = [0, 1, 0, 0], sizes = [32, 1, 8, 32], strides = [1, 1, 1, 1]} : vector<32x2x8x32xf32> to vector<32x1x8x32xf32>
    %61 = vector.shape_cast %60 : vector<32x1x8x32xf32> to vector<32x8x32xf32>
    %62 = arith.maximumf %59, %61 : vector<32x8x32xf32>
    %c0_9 = arith.constant 0 : index
    %c0_10 = arith.constant 0 : index
    %63 = vector.load %arg5[%c0_9, %c0_10] : memref<96x64xbf16, #tpu.memory_space<vmem>>, vector<96x64xbf16>
    %c0_11 = arith.constant 0 : index
    %c0_12 = arith.constant 0 : index
    %64 = vector.load %arg6[%c0_11, %c0_12] : memref<1x64xf32, #tpu.memory_space<vmem>>, vector<1x64xf32>
    %c0_13 = arith.constant 0 : index
    %c0_14 = arith.constant 0 : index
    %65 = vector.load %arg7[%c0_13, %c0_14] : memref<1x64xf32, #tpu.memory_space<vmem>>, vector<1x64xf32>
    %cst_15 = arith.constant 0.000000e+00 : f32
    %66 = vector.broadcast %cst_15 : f32 to vector<1x8x32xf32>
    %67 = tpu.concatenate %66, %62, %66 in 0 : vector<1x8x32xf32>, vector<32x8x32xf32>, vector<1x8x32xf32> -> vector<34x8x32xf32>
    %68 = vector.extract_strided_slice %67 {offsets = [0, 0, 0], sizes = [32, 8, 32], strides = [1, 1, 1]} : vector<34x8x32xf32> to vector<32x8x32xf32>
    %69 = vector.extract_strided_slice %67 {offsets = [1, 0, 0], sizes = [32, 8, 32], strides = [1, 1, 1]} : vector<34x8x32xf32> to vector<32x8x32xf32>
    %70 = vector.extract_strided_slice %67 {offsets = [2, 0, 0], sizes = [32, 8, 32], strides = [1, 1, 1]} : vector<34x8x32xf32> to vector<32x8x32xf32>
    %71 = tpu.concatenate %68, %69, %70 in 2 : vector<32x8x32xf32>, vector<32x8x32xf32>, vector<32x8x32xf32> -> vector<32x8x96xf32>
    %72 = vector.shape_cast %71 : vector<32x8x96xf32> to vector<256x96xf32>
    %73 = arith.truncf %72 : vector<256x96xf32> to vector<256x96xbf16>
    %cst_16 = arith.constant dense<0.000000e+00> : vector<256x64xf32>
    %74 = tpu.matmul %73, %63, %cst_16 {dimension_numbers = #tpu.dot_dimension_numbers<[1], [0], [0], [1], [0, 0, 1, 1], [], []>} : vector<256x96xbf16>, vector<96x64xbf16>, vector<256x64xf32> -> vector<256x64xf32>
    %75 = vector.shape_cast %74 : vector<256x64xf32> to vector<32x8x64xf32>
    %76 = vector.shape_cast %64 : vector<1x64xf32> to vector<1x1x64xf32>
    %77 = vector.broadcast %76 : vector<1x1x64xf32> to vector<32x8x64xf32>
    %78 = arith.mulf %75, %77 : vector<32x8x64xf32>
    %79 = vector.shape_cast %65 : vector<1x64xf32> to vector<1x1x64xf32>
    %80 = vector.broadcast %79 : vector<1x1x64xf32> to vector<32x8x64xf32>
    %81 = arith.addf %78, %80 : vector<32x8x64xf32>
    %cst_17 = arith.constant 0.000000e+00 : f32
    %82 = vector.broadcast %cst_17 : f32 to vector<32x8x64xf32>
    %83 = arith.maximumf %81, %82 : vector<32x8x64xf32>
    %84 = vector.shape_cast %83 : vector<32x8x64xf32> to vector<16x2x8x64xf32>
    %85 = vector.extract_strided_slice %84 {offsets = [0, 0, 0, 0], sizes = [16, 1, 8, 64], strides = [1, 1, 1, 1]} : vector<16x2x8x64xf32> to vector<16x1x8x64xf32>
    %86 = vector.shape_cast %85 : vector<16x1x8x64xf32> to vector<16x8x64xf32>
    %87 = vector.extract_strided_slice %84 {offsets = [0, 1, 0, 0], sizes = [16, 1, 8, 64], strides = [1, 1, 1, 1]} : vector<16x2x8x64xf32> to vector<16x1x8x64xf32>
    %88 = vector.shape_cast %87 : vector<16x1x8x64xf32> to vector<16x8x64xf32>
    %89 = arith.maximumf %86, %88 : vector<16x8x64xf32>
    %c0_18 = arith.constant 0 : index
    %c0_19 = arith.constant 0 : index
    %90 = vector.load %arg8[%c0_18, %c0_19] : memref<192x128xbf16, #tpu.memory_space<vmem>>, vector<192x128xbf16>
    %c0_20 = arith.constant 0 : index
    %c0_21 = arith.constant 0 : index
    %91 = vector.load %arg9[%c0_20, %c0_21] : memref<1x128xf32, #tpu.memory_space<vmem>>, vector<1x128xf32>
    %c0_22 = arith.constant 0 : index
    %c0_23 = arith.constant 0 : index
    %92 = vector.load %arg10[%c0_22, %c0_23] : memref<1x128xf32, #tpu.memory_space<vmem>>, vector<1x128xf32>
    %cst_24 = arith.constant 0.000000e+00 : f32
    %93 = vector.broadcast %cst_24 : f32 to vector<1x8x64xf32>
    %94 = tpu.concatenate %93, %89, %93 in 0 : vector<1x8x64xf32>, vector<16x8x64xf32>, vector<1x8x64xf32> -> vector<18x8x64xf32>
    %95 = vector.extract_strided_slice %94 {offsets = [0, 0, 0], sizes = [16, 8, 64], strides = [1, 1, 1]} : vector<18x8x64xf32> to vector<16x8x64xf32>
    %96 = vector.extract_strided_slice %94 {offsets = [1, 0, 0], sizes = [16, 8, 64], strides = [1, 1, 1]} : vector<18x8x64xf32> to vector<16x8x64xf32>
    %97 = vector.extract_strided_slice %94 {offsets = [2, 0, 0], sizes = [16, 8, 64], strides = [1, 1, 1]} : vector<18x8x64xf32> to vector<16x8x64xf32>
    %98 = tpu.concatenate %95, %96, %97 in 2 : vector<16x8x64xf32>, vector<16x8x64xf32>, vector<16x8x64xf32> -> vector<16x8x192xf32>
    %99 = vector.shape_cast %98 : vector<16x8x192xf32> to vector<128x192xf32>
    %100 = arith.truncf %99 : vector<128x192xf32> to vector<128x192xbf16>
    %cst_25 = arith.constant dense<0.000000e+00> : vector<128x128xf32>
    %101 = tpu.matmul %100, %90, %cst_25 {dimension_numbers = #tpu.dot_dimension_numbers<[1], [0], [0], [1], [0, 0, 1, 1], [], []>} : vector<128x192xbf16>, vector<192x128xbf16>, vector<128x128xf32> -> vector<128x128xf32>
    %102 = vector.shape_cast %101 : vector<128x128xf32> to vector<16x8x128xf32>
    %103 = vector.shape_cast %91 : vector<1x128xf32> to vector<1x1x128xf32>
    %104 = vector.broadcast %103 : vector<1x1x128xf32> to vector<16x8x128xf32>
    %105 = arith.mulf %102, %104 : vector<16x8x128xf32>
    %106 = vector.shape_cast %92 : vector<1x128xf32> to vector<1x1x128xf32>
    %107 = vector.broadcast %106 : vector<1x1x128xf32> to vector<16x8x128xf32>
    %108 = arith.addf %105, %107 : vector<16x8x128xf32>
    %cst_26 = arith.constant 0.000000e+00 : f32
    %109 = vector.broadcast %cst_26 : f32 to vector<16x8x128xf32>
    %110 = arith.maximumf %108, %109 : vector<16x8x128xf32>
    %111 = vector.shape_cast %110 : vector<16x8x128xf32> to vector<8x2x8x128xf32>
    %112 = vector.extract_strided_slice %111 {offsets = [0, 0, 0, 0], sizes = [8, 1, 8, 128], strides = [1, 1, 1, 1]} : vector<8x2x8x128xf32> to vector<8x1x8x128xf32>
    %113 = vector.shape_cast %112 : vector<8x1x8x128xf32> to vector<8x8x128xf32>
    %114 = vector.extract_strided_slice %111 {offsets = [0, 1, 0, 0], sizes = [8, 1, 8, 128], strides = [1, 1, 1, 1]} : vector<8x2x8x128xf32> to vector<8x1x8x128xf32>
    %115 = vector.shape_cast %114 : vector<8x1x8x128xf32> to vector<8x8x128xf32>
    %116 = arith.maximumf %113, %115 : vector<8x8x128xf32>
    %cst_27 = arith.constant 0.000000e+00 : f32
    %117 = vector.broadcast %cst_27 : f32 to vector<8x128xf32>
    %118 = vector.extract_strided_slice %116 {offsets = [0, 0, 0], sizes = [1, 8, 128], strides = [1, 1, 1]} : vector<8x8x128xf32> to vector<1x8x128xf32>
    %119 = vector.shape_cast %118 : vector<1x8x128xf32> to vector<8x128xf32>
    %120 = arith.truncf %119 : vector<8x128xf32> to vector<8x128xbf16>
    %c0_28 = arith.constant 0 : index
    %c0_29 = arith.constant 0 : index
    %c0_30 = arith.constant 0 : index
    %121 = vector.load %arg11[%c0_28, %c0_29, %c0_30] : memref<8x128x128xbf16, #tpu.memory_space<vmem>>, vector<1x128x128xbf16>
    %122 = vector.shape_cast %121 : vector<1x128x128xbf16> to vector<128x128xbf16>
    %cst_31 = arith.constant dense<0.000000e+00> : vector<8x128xf32>
    %123 = tpu.matmul %120, %122, %cst_31 {dimension_numbers = #tpu.dot_dimension_numbers<[1], [0], [0], [1], [0, 0, 1, 1], [], []>} : vector<8x128xbf16>, vector<128x128xbf16>, vector<8x128xf32> -> vector<8x128xf32>
    %124 = arith.addf %117, %123 : vector<8x128xf32>
    %125 = vector.extract_strided_slice %116 {offsets = [1, 0, 0], sizes = [1, 8, 128], strides = [1, 1, 1]} : vector<8x8x128xf32> to vector<1x8x128xf32>
    %126 = vector.shape_cast %125 : vector<1x8x128xf32> to vector<8x128xf32>
    %127 = arith.truncf %126 : vector<8x128xf32> to vector<8x128xbf16>
    %c1 = arith.constant 1 : index
    %c0_32 = arith.constant 0 : index
    %c0_33 = arith.constant 0 : index
    %128 = vector.load %arg11[%c1, %c0_32, %c0_33] : memref<8x128x128xbf16, #tpu.memory_space<vmem>>, vector<1x128x128xbf16>
    %129 = vector.shape_cast %128 : vector<1x128x128xbf16> to vector<128x128xbf16>
    %cst_34 = arith.constant dense<0.000000e+00> : vector<8x128xf32>
    %130 = tpu.matmul %127, %129, %cst_34 {dimension_numbers = #tpu.dot_dimension_numbers<[1], [0], [0], [1], [0, 0, 1, 1], [], []>} : vector<8x128xbf16>, vector<128x128xbf16>, vector<8x128xf32> -> vector<8x128xf32>
    %131 = arith.addf %124, %130 : vector<8x128xf32>
    %132 = vector.extract_strided_slice %116 {offsets = [2, 0, 0], sizes = [1, 8, 128], strides = [1, 1, 1]} : vector<8x8x128xf32> to vector<1x8x128xf32>
    %133 = vector.shape_cast %132 : vector<1x8x128xf32> to vector<8x128xf32>
    %134 = arith.truncf %133 : vector<8x128xf32> to vector<8x128xbf16>
    %c2 = arith.constant 2 : index
    %c0_35 = arith.constant 0 : index
    %c0_36 = arith.constant 0 : index
    %135 = vector.load %arg11[%c2, %c0_35, %c0_36] : memref<8x128x128xbf16, #tpu.memory_space<vmem>>, vector<1x128x128xbf16>
    %136 = vector.shape_cast %135 : vector<1x128x128xbf16> to vector<128x128xbf16>
    %cst_37 = arith.constant dense<0.000000e+00> : vector<8x128xf32>
    %137 = tpu.matmul %134, %136, %cst_37 {dimension_numbers = #tpu.dot_dimension_numbers<[1], [0], [0], [1], [0, 0, 1, 1], [], []>} : vector<8x128xbf16>, vector<128x128xbf16>, vector<8x128xf32> -> vector<8x128xf32>
    %138 = arith.addf %131, %137 : vector<8x128xf32>
    %139 = vector.extract_strided_slice %116 {offsets = [3, 0, 0], sizes = [1, 8, 128], strides = [1, 1, 1]} : vector<8x8x128xf32> to vector<1x8x128xf32>
    %140 = vector.shape_cast %139 : vector<1x8x128xf32> to vector<8x128xf32>
    %141 = arith.truncf %140 : vector<8x128xf32> to vector<8x128xbf16>
    %c3 = arith.constant 3 : index
    %c0_38 = arith.constant 0 : index
    %c0_39 = arith.constant 0 : index
    %142 = vector.load %arg11[%c3, %c0_38, %c0_39] : memref<8x128x128xbf16, #tpu.memory_space<vmem>>, vector<1x128x128xbf16>
    %143 = vector.shape_cast %142 : vector<1x128x128xbf16> to vector<128x128xbf16>
    %cst_40 = arith.constant dense<0.000000e+00> : vector<8x128xf32>
    %144 = tpu.matmul %141, %143, %cst_40 {dimension_numbers = #tpu.dot_dimension_numbers<[1], [0], [0], [1], [0, 0, 1, 1], [], []>} : vector<8x128xbf16>, vector<128x128xbf16>, vector<8x128xf32> -> vector<8x128xf32>
    %145 = arith.addf %138, %144 : vector<8x128xf32>
    %146 = vector.extract_strided_slice %116 {offsets = [4, 0, 0], sizes = [1, 8, 128], strides = [1, 1, 1]} : vector<8x8x128xf32> to vector<1x8x128xf32>
    %147 = vector.shape_cast %146 : vector<1x8x128xf32> to vector<8x128xf32>
    %148 = arith.truncf %147 : vector<8x128xf32> to vector<8x128xbf16>
    %c4 = arith.constant 4 : index
    %c0_41 = arith.constant 0 : index
    %c0_42 = arith.constant 0 : index
    %149 = vector.load %arg11[%c4, %c0_41, %c0_42] : memref<8x128x128xbf16, #tpu.memory_space<vmem>>, vector<1x128x128xbf16>
    %150 = vector.shape_cast %149 : vector<1x128x128xbf16> to vector<128x128xbf16>
    %cst_43 = arith.constant dense<0.000000e+00> : vector<8x128xf32>
    %151 = tpu.matmul %148, %150, %cst_43 {dimension_numbers = #tpu.dot_dimension_numbers<[1], [0], [0], [1], [0, 0, 1, 1], [], []>} : vector<8x128xbf16>, vector<128x128xbf16>, vector<8x128xf32> -> vector<8x128xf32>
    %152 = arith.addf %145, %151 : vector<8x128xf32>
    %153 = vector.extract_strided_slice %116 {offsets = [5, 0, 0], sizes = [1, 8, 128], strides = [1, 1, 1]} : vector<8x8x128xf32> to vector<1x8x128xf32>
    %154 = vector.shape_cast %153 : vector<1x8x128xf32> to vector<8x128xf32>
    %155 = arith.truncf %154 : vector<8x128xf32> to vector<8x128xbf16>
    %c5 = arith.constant 5 : index
    %c0_44 = arith.constant 0 : index
    %c0_45 = arith.constant 0 : index
    %156 = vector.load %arg11[%c5, %c0_44, %c0_45] : memref<8x128x128xbf16, #tpu.memory_space<vmem>>, vector<1x128x128xbf16>
    %157 = vector.shape_cast %156 : vector<1x128x128xbf16> to vector<128x128xbf16>
    %cst_46 = arith.constant dense<0.000000e+00> : vector<8x128xf32>
    %158 = tpu.matmul %155, %157, %cst_46 {dimension_numbers = #tpu.dot_dimension_numbers<[1], [0], [0], [1], [0, 0, 1, 1], [], []>} : vector<8x128xbf16>, vector<128x128xbf16>, vector<8x128xf32> -> vector<8x128xf32>
    %159 = arith.addf %152, %158 : vector<8x128xf32>
    %160 = vector.extract_strided_slice %116 {offsets = [6, 0, 0], sizes = [1, 8, 128], strides = [1, 1, 1]} : vector<8x8x128xf32> to vector<1x8x128xf32>
    %161 = vector.shape_cast %160 : vector<1x8x128xf32> to vector<8x128xf32>
    %162 = arith.truncf %161 : vector<8x128xf32> to vector<8x128xbf16>
    %c6 = arith.constant 6 : index
    %c0_47 = arith.constant 0 : index
    %c0_48 = arith.constant 0 : index
    %163 = vector.load %arg11[%c6, %c0_47, %c0_48] : memref<8x128x128xbf16, #tpu.memory_space<vmem>>, vector<1x128x128xbf16>
    %164 = vector.shape_cast %163 : vector<1x128x128xbf16> to vector<128x128xbf16>
    %cst_49 = arith.constant dense<0.000000e+00> : vector<8x128xf32>
    %165 = tpu.matmul %162, %164, %cst_49 {dimension_numbers = #tpu.dot_dimension_numbers<[1], [0], [0], [1], [0, 0, 1, 1], [], []>} : vector<8x128xbf16>, vector<128x128xbf16>, vector<8x128xf32> -> vector<8x128xf32>
    %166 = arith.addf %159, %165 : vector<8x128xf32>
    %167 = vector.extract_strided_slice %116 {offsets = [7, 0, 0], sizes = [1, 8, 128], strides = [1, 1, 1]} : vector<8x8x128xf32> to vector<1x8x128xf32>
    %168 = vector.shape_cast %167 : vector<1x8x128xf32> to vector<8x128xf32>
    %169 = arith.truncf %168 : vector<8x128xf32> to vector<8x128xbf16>
    %c7 = arith.constant 7 : index
    %c0_50 = arith.constant 0 : index
    %c0_51 = arith.constant 0 : index
    %170 = vector.load %arg11[%c7, %c0_50, %c0_51] : memref<8x128x128xbf16, #tpu.memory_space<vmem>>, vector<1x128x128xbf16>
    %171 = vector.shape_cast %170 : vector<1x128x128xbf16> to vector<128x128xbf16>
    %cst_52 = arith.constant dense<0.000000e+00> : vector<8x128xf32>
    %172 = tpu.matmul %169, %171, %cst_52 {dimension_numbers = #tpu.dot_dimension_numbers<[1], [0], [0], [1], [0, 0, 1, 1], [], []>} : vector<8x128xbf16>, vector<128x128xbf16>, vector<8x128xf32> -> vector<8x128xf32>
    %173 = arith.addf %166, %172 : vector<8x128xf32>
    %c0_53 = arith.constant 0 : index
    %c0_54 = arith.constant 0 : index
    %174 = vector.load %arg12[%c0_53, %c0_54] : memref<1x128xf32, #tpu.memory_space<vmem>>, vector<1x128xf32>
    %175 = vector.broadcast %174 : vector<1x128xf32> to vector<8x128xf32>
    %176 = arith.mulf %173, %175 : vector<8x128xf32>
    %c0_55 = arith.constant 0 : index
    %c0_56 = arith.constant 0 : index
    %177 = vector.load %arg13[%c0_55, %c0_56] : memref<1x128xf32, #tpu.memory_space<vmem>>, vector<1x128xf32>
    %178 = vector.broadcast %177 : vector<1x128xf32> to vector<8x128xf32>
    %179 = arith.addf %176, %178 : vector<8x128xf32>
    %cst_57 = arith.constant 0.000000e+00 : f32
    %180 = vector.broadcast %cst_57 : f32 to vector<8x128xf32>
    %181 = arith.maximumf %179, %180 : vector<8x128xf32>
    %182 = arith.truncf %181 : vector<8x128xf32> to vector<8x128xbf16>
    %c0_58 = arith.constant 0 : index
    %c0_59 = arith.constant 0 : index
    %183 = vector.load %arg14[%c0_58, %c0_59] : memref<128x128xbf16, #tpu.memory_space<vmem>>, vector<128x128xbf16>
    %cst_60 = arith.constant dense<0.000000e+00> : vector<8x128xf32>
    %184 = tpu.matmul %182, %183, %cst_60 {dimension_numbers = #tpu.dot_dimension_numbers<[1], [0], [0], [1], [0, 0, 1, 1], [], []>} : vector<8x128xbf16>, vector<128x128xbf16>, vector<8x128xf32> -> vector<8x128xf32>
    %c0_61 = arith.constant 0 : index
    %c0_62 = arith.constant 0 : index
    %185 = vector.load %arg15[%c0_61, %c0_62] : memref<1x128xf32, #tpu.memory_space<vmem>>, vector<1x128xf32>
    %186 = vector.broadcast %185 : vector<1x128xf32> to vector<8x128xf32>
    %187 = arith.mulf %184, %186 : vector<8x128xf32>
    %c0_63 = arith.constant 0 : index
    %c0_64 = arith.constant 0 : index
    %188 = vector.load %arg16[%c0_63, %c0_64] : memref<1x128xf32, #tpu.memory_space<vmem>>, vector<1x128xf32>
    %189 = vector.broadcast %188 : vector<1x128xf32> to vector<8x128xf32>
    %190 = arith.addf %187, %189 : vector<8x128xf32>
    %cst_65 = arith.constant 0.000000e+00 : f32
    %191 = vector.broadcast %cst_65 : f32 to vector<8x128xf32>
    %192 = arith.maximumf %190, %191 : vector<8x128xf32>
    %193 = arith.truncf %192 : vector<8x128xf32> to vector<8x128xbf16>
    %c0_66 = arith.constant 0 : index
    %c0_67 = arith.constant 0 : index
    %194 = vector.load %arg17[%c0_66, %c0_67] : memref<128x128xbf16, #tpu.memory_space<vmem>>, vector<128x128xbf16>
    %cst_68 = arith.constant dense<0.000000e+00> : vector<8x128xf32>
    %195 = tpu.matmul %193, %194, %cst_68 {dimension_numbers = #tpu.dot_dimension_numbers<[1], [0], [0], [1], [0, 0, 1, 1], [], []>} : vector<8x128xbf16>, vector<128x128xbf16>, vector<8x128xf32> -> vector<8x128xf32>
    %c0_69 = arith.constant 0 : index
    %c0_70 = arith.constant 0 : index
    %196 = vector.load %arg18[%c0_69, %c0_70] : memref<1x128xf32, #tpu.memory_space<vmem>>, vector<1x128xf32>
    %197 = vector.broadcast %196 : vector<1x128xf32> to vector<8x128xf32>
    %198 = arith.addf %195, %197 : vector<8x128xf32>
    %c0_71 = arith.constant 0 : index
    %c0_72 = arith.constant 0 : index
    %199 = vector.load %arg19[%c0_71, %c0_72] : memref<8x128xf32, #tpu.memory_space<vmem>>, vector<8x128xf32>
    tpu.vector_store %arg19[%c0_71, %c0_72], %198 {strides = array<i32>} : memref<8x128xf32, #tpu.memory_space<vmem>>, vector<8x128xf32>,
    return
  }
  func.func @transform_0(%arg0: i32) -> (i32, i32) {
    %c0_i32 = arith.constant 0 : i32
    %c0_i32_0 = arith.constant 0 : i32
    return %arg0, %c0_i32 : i32, i32
  }
  func.func @transform_1(%arg0: i32) -> (i32, i32) {
    %c0_i32 = arith.constant 0 : i32
    %c0_i32_0 = arith.constant 0 : i32
    %c0_i32_1 = arith.constant 0 : i32
    return %c0_i32, %c0_i32_0 : i32, i32
  }
  func.func @transform_2(%arg0: i32) -> (i32, i32) {
    %c0_i32 = arith.constant 0 : i32
    %c0_i32_0 = arith.constant 0 : i32
    %c0_i32_1 = arith.constant 0 : i32
    return %c0_i32, %c0_i32_0 : i32, i32
  }
  func.func @transform_3(%arg0: i32) -> (i32, i32) {
    %c0_i32 = arith.constant 0 : i32
    %c0_i32_0 = arith.constant 0 : i32
    %c0_i32_1 = arith.constant 0 : i32
    return %c0_i32, %c0_i32_0 : i32, i32
  }
  func.func @transform_4(%arg0: i32) -> (i32, i32) {
    %c0_i32 = arith.constant 0 : i32
    %c0_i32_0 = arith.constant 0 : i32
    %c0_i32_1 = arith.constant 0 : i32
    return %c0_i32, %c0_i32_0 : i32, i32
  }
  func.func @transform_5(%arg0: i32) -> (i32, i32) {
    %c0_i32 = arith.constant 0 : i32
    %c0_i32_0 = arith.constant 0 : i32
    %c0_i32_1 = arith.constant 0 : i32
    return %c0_i32, %c0_i32_0 : i32, i32
  }
  func.func @transform_6(%arg0: i32) -> (i32, i32) {
    %c0_i32 = arith.constant 0 : i32
    %c0_i32_0 = arith.constant 0 : i32
    %c0_i32_1 = arith.constant 0 : i32
    return %c0_i32, %c0_i32_0 : i32, i32
  }
  func.func @transform_7(%arg0: i32) -> (i32, i32) {
    %c0_i32 = arith.constant 0 : i32
    %c0_i32_0 = arith.constant 0 : i32
    %c0_i32_1 = arith.constant 0 : i32
    return %c0_i32, %c0_i32_0 : i32, i32
  }
  func.func @transform_8(%arg0: i32) -> (i32, i32) {
    %c0_i32 = arith.constant 0 : i32
    %c0_i32_0 = arith.constant 0 : i32
    %c0_i32_1 = arith.constant 0 : i32
    return %c0_i32, %c0_i32_0 : i32, i32
  }
  func.func @transform_9(%arg0: i32) -> (i32, i32) {
    %c0_i32 = arith.constant 0 : i32
    %c0_i32_0 = arith.constant 0 : i32
    %c0_i32_1 = arith.constant 0 : i32
    return %c0_i32, %c0_i32_0 : i32, i32
  }
  func.func @transform_10(%arg0: i32) -> (i32, i32, i32) {
    %c0_i32 = arith.constant 0 : i32
    %c0_i32_0 = arith.constant 0 : i32
    %c0_i32_1 = arith.constant 0 : i32
    %c0_i32_2 = arith.constant 0 : i32
    return %c0_i32, %c0_i32_0, %c0_i32_1 : i32, i32, i32
  }
  func.func @transform_11(%arg0: i32) -> (i32, i32) {
    %c0_i32 = arith.constant 0 : i32
    %c0_i32_0 = arith.constant 0 : i32
    %c0_i32_1 = arith.constant 0 : i32
    return %c0_i32, %c0_i32_0 : i32, i32
  }
  func.func @transform_12(%arg0: i32) -> (i32, i32) {
    %c0_i32 = arith.constant 0 : i32
    %c0_i32_0 = arith.constant 0 : i32
    %c0_i32_1 = arith.constant 0 : i32
    return %c0_i32, %c0_i32_0 : i32, i32
  }
  func.func @transform_13(%arg0: i32) -> (i32, i32) {
    %c0_i32 = arith.constant 0 : i32
    %c0_i32_0 = arith.constant 0 : i32
    %c0_i32_1 = arith.constant 0 : i32
    return %c0_i32, %c0_i32_0 : i32, i32
  }
  func.func @transform_14(%arg0: i32) -> (i32, i32) {
    %c0_i32 = arith.constant 0 : i32
    %c0_i32_0 = arith.constant 0 : i32
    %c0_i32_1 = arith.constant 0 : i32
    return %c0_i32, %c0_i32_0 : i32, i32
  }
  func.func @transform_15(%arg0: i32) -> (i32, i32) {
    %c0_i32 = arith.constant 0 : i32
    %c0_i32_0 = arith.constant 0 : i32
    %c0_i32_1 = arith.constant 0 : i32
    return %c0_i32, %c0_i32_0 : i32, i32
  }
  func.func @transform_16(%arg0: i32) -> (i32, i32) {
    %c0_i32 = arith.constant 0 : i32
    %c0_i32_0 = arith.constant 0 : i32
    %c0_i32_1 = arith.constant 0 : i32
    return %c0_i32, %c0_i32_0 : i32, i32
  }
  func.func @transform_17(%arg0: i32) -> (i32, i32) {
    %c0_i32 = arith.constant 0 : i32
    %c0_i32_0 = arith.constant 0 : i32
    %c0_i32_1 = arith.constant 0 : i32
    return %c0_i32, %c0_i32_0 : i32, i32
  }
  func.func @transform_18(%arg0: i32) -> (i32, i32) {
    %c0_i32 = arith.constant 0 : i32
    %c0_i32_0 = arith.constant 0 : i32
    return %arg0, %c0_i32 : i32, i32
  }
}

</mosaic_0001>

<bundles_post_ra>
// kernel: tpu_custom_call.1
= control target key start
LH: loop header
LB: loop body
LE: loop exit
PB: predicated region body
PF: predicated region fallthrough
CT: control target
= control target key end

     0   :  { %s7592_s0 = inlined_call_operand.vmem [shape: f32[16,64], index: 0, kind: input, shape index: {}]   ;;  %s7593_s1 = inlined_call_operand.vmem [shape: f32[5,32], index: 1, kind: input, shape index: {}]   ;;  %s7594_s2 = inlined_call_operand.vmem [shape: f32[1,32], index: 2, kind: input, shape index: {}]   ;;  %s7595_s3 = inlined_call_operand.vmem [shape: f32[1,32], index: 3, kind: input, shape index: {}]   ;;  %s7596_s4 = inlined_call_operand.vmem [shape: bf16[96,64], index: 4, kind: input, shape index: {}]   ;;  %s7597_s5 = inlined_call_operand.vmem [shape: f32[1,64], index: 5, kind: input, shape index: {}]   ;;  %s7598_s6 = inlined_call_operand.vmem [shape: f32[1,64], index: 6, kind: input, shape index: {}]   ;;  %s7599_s7 = inlined_call_operand.hbm [shape: bf16[192,128], index: 7, kind: input, shape index: {}]   ;;  %s7600_s8 = inlined_call_operand.vmem [shape: f32[1,128], index: 8, kind: input, shape index: {}]   ;;  %s7601_s9 = inlined_call_operand.vmem [shape: f32[1,128], index: 9, kind: input, shape index: {}]   ;;  %s7602_s10 = inlined_call_operand.hbm [shape: bf16[8,128,128], index: 10, kind: input, shape index: {}]   ;;  %s7603_s11 = inlined_call_operand.vmem [shape: f32[1,128], index: 11, kind: input, shape index: {}]   ;;  %s7604_s12 = inlined_call_operand.vmem [shape: f32[1,128], index: 12, kind: input, shape index: {}]   ;;  %s7605_s13 = inlined_call_operand.vmem [shape: bf16[128,128], index: 13, kind: input, shape index: {}]   ;;  %s7606_s14 = inlined_call_operand.vmem [shape: f32[1,128], index: 14, kind: input, shape index: {}]   ;;  %s7607_s15 = inlined_call_operand.vmem [shape: f32[1,128], index: 15, kind: input, shape index: {}]   ;;  %s7608_s16 = inlined_call_operand.hbm [shape: bf16[128,128], index: 16, kind: input, shape index: {}]   ;;  %s7609_s17 = inlined_call_operand.vmem [shape: f32[1,128], index: 17, kind: input, shape index: {}]   ;;  %s7610_s18 = inlined_call_operand.hbm [shape: f32[16,128], index: 18, kind: output, shape index: {}]  }
   0x1   :  { %7625 = sst [smem:[#allocation19_spill]] %s7592_s0 }
   0x2   :  { %7626 = sst [smem:[#allocation20_spill]] %s7593_s1 }
   0x3   :  { %7627 = sst [smem:[#allocation21_spill]] %s7594_s2 }
   0x4   :  { %23 = vsyncpa [#allocation3], 0 }
   0x5   :  { %24 = vsyncpa [#allocation6], 0 }
   0x6   :  { %25 = vsyncpa [#allocation4], 0 }
   0x7   :  { %27 = vsyncpa [#allocation4 + $0x1], 0  ;;  %s5744_s27 = smov 0   ;;  %s5746_s28 = smov 0  }
   0x8   :  { %s5748_s29 = smov 0   ;;  %s5750_s30 = smov 0  }
   0x9 LB: > { %7628 = sst [smem:[#allocation12_spill]] %s5623_s27  ;;  %s5765_s0 = sadd.s32 4294967295, %s5635_s30   ;;  %s5635_s30 = sphi %s5750_s30, %s7656_s30   ;;  %s5631_s29 = sphi %s5748_s29, %s7658_s29   ;;  %s5627_s28 = sphi %s5746_s28, %s7660_s28   ;;  %s5623_s27 = sphi %s5744_s27, %s7659_s27  }
   0xa   : > { %7629 = sst [smem:[#allocation13_spill]] %s5631_s29  ;;  %s4600_s19 = sadd.s32 4294967294, %s5635_s30  }
   0xb   : > { %7630 = sst [smem:[#allocation14_spill]] %s5635_s30  ;;  %s5769_s1 = sadd.s32 1, %s5635_s30  }
   0xc   : > { %7631 = sst [smem:[#allocation15_spill]] %s5769_s1  ;;  %s423_s20 = sadd.s32 1, %s5631_s29 }
   0xd   : > { %s420_s21 = ssub.s32 %s5635_s30, %s5769_s1  ;;  %p433_p0 = scmp.ne.s32.totalorder %s5631_s29, %s5627_s28 }
   0xe   : > { %p421_p1 = scmp.eq.s32.totalorder %s420_s21, 0  ;;  %p434_p2 = scmp.eq.s32.totalorder %s5765_s0, 1 }
   0xf   : > { %p439_p3 = scmp.ne.s32.totalorder %s5627_s28, %s5623_s27  ;;  %p440_p4 = scmp.eq.s32.totalorder %s4600_s19, 1 }
  0x10   : > { %s5780_s22 = scalar_select %p421_p1, %s5631_s29, %s423_s20  }
  0x11   : > { %p5782_p5 = por %p434_p2, %p433_p0  ;;  %p5786_p6 = por %p440_p4, %p439_p3 }
  0x12   : > { %7632 = sst [smem:[#allocation16_spill]] %s5780_s22  ;;  %p4601_p7 = scmp.ge.s32.totalorder %s5635_s30, 1 }
  0x13   : > { %s7633_s2 = scalar_select %p5782_p5, 1, 0 }
  0x14   : > { %s7634_s23 = scalar_select %p5786_p6, 1, 0 }
  0x15   : > { %p447_p8 = scmp.lt.s32.totalorder %s5635_s30, 3  ;;  %p7617_p9 = scmp.eq.s32.totalorder %s5765_s0, 0 }
  0x16   : > { %7635 = sst [smem:[#allocation17_spill]] %s7634_s23  ;;  %s5637_s25 = smov [#allocation5]  }
  0x17   : > { %p5793_p10 = pnand %p4601_p7, %p447_p8  ;;  %s496_s26 = sshll.u32 %s5637_s25, 4  ;;  %s497_s26 = int_to_ptr.vmem [resolvable:$true] %s496_s26 }
  0x18   : > { %s5638_s20 = smov [#allocation2]   ;;  %s5639_s22 = smov [#allocation7]  }
  0x19   : > { %p5123_p11 = pneg %p5793_p10  ;;  %s477_s21 = sshll.u32 %s5638_s20, 4  ;;  %s478_s21 = int_to_ptr.vmem [resolvable:$true] %s477_s21 }
  0x1a   : > { %s524_s29 = sshll.u32 %s5639_s22, 4  ;;  %s5500_s1 = scalar_lea.vmem %s497_s26, 8192  ;;  %s525_s29 = int_to_ptr.vmem [resolvable:$true] %s524_s29 }
  0x1b   : > { %p5801_p12 = pnand %p7617_p9, %p5123_p11  ;;  %p5501_p0 = scmp.ne.s32.totalorder %s497_s26, %s5500_s1 }
  0x1c   : > { %p5508_p3 = scmp.lt.s32.totalorder %s497_s26, %s497_s26  ;;  %p5509_p4 = scmp.lt.s32.totalorder %s5500_s1, %s5500_s1 }
  0x1d   : > { %p5491_p13 = pneg %p5801_p12 }
  0x1e   : > { %p5510_p7 = por %p5509_p4, %p5508_p3 }
  0x1f   : > { %p5503_p1 = pnand %p5501_p0, %p5491_p13 }
  0x21   : > { %p5504_p2 = pneg %p5503_p1 }
  0x23   : > { %p5511_p8 = pnand %p5510_p7, %p5504_p2 }
  0x25   : > { %5514 = shalt.err (!%p5511_p8)
}
  0x26   : > { %s5640_s25 = smov 64   ;;  %s5641_s20 = smov 4  }
  0x27   : > { %5129 = dma.hbm_to_vmem [thread:$0]  (!%p5801_p12), %s7602_s10, 8192, %s497_s26, [#allocation6], %s5640_s25, %s5640_s25, %s5641_s20  }
  0x28   : > { %s5526_s27 = scalar_lea.vmem %s478_s21, 1536  ;;  %p5534_p9 = scmp.lt.s32.totalorder %s478_s21, %s478_s21 }
  0x29   : > { %p5527_p11 = scmp.ne.s32.totalorder %s478_s21, %s5526_s27  ;;  %p5535_p6 = scmp.lt.s32.totalorder %s5526_s27, %s5526_s27 }
  0x2b   : > { %p5529_p0 = pnand %p5527_p11, %p5491_p13  ;;  %p5536_p3 = por %p5535_p6, %p5534_p9 }
  0x2d   : > { %p5530_p1 = pneg %p5529_p0 }
  0x2f   : > { %p5537_p2 = pnand %p5536_p3, %p5530_p1 }
  0x31   : > { %5540 = shalt.err (!%p5537_p2)
}
  0x32   : > { %5126 = dma.hbm_to_vmem [thread:$0]  (!%p5801_p12), %s7599_s7, 1536, %s478_s21, [#allocation3], %s5640_s25, %s5640_s25, %s5641_s20  }
  0x33   : > { %s5552_s23 = scalar_lea.vmem %s525_s29, 1024  ;;  %p5560_p11 = scmp.lt.s32.totalorder %s525_s29, %s525_s29 }
  0x34   : > { %p5553_p4 = scmp.ne.s32.totalorder %s525_s29, %s5552_s23  ;;  %p5561_p0 = scmp.lt.s32.totalorder %s5552_s23, %s5552_s23 }
  0x36   : > { %p5555_p7 = pnand %p5553_p4, %p5491_p13  ;;  %p5562_p5 = por %p5561_p0, %p5560_p11 }
  0x38   : > { %p5556_p8 = pneg %p5555_p7 }
  0x3a   : > { %p5563_p6 = pnand %p5562_p5, %p5556_p8 }
  0x3c   : > { %5566 = shalt.err (!%p5563_p6)
}
  0x3d   : > { %5132 = dma.hbm_to_vmem [thread:$0]  (!%p5801_p12), %s7608_s16, 1024, %s525_s29, [#allocation6], %s5640_s25, %s5640_s25, %s5641_s20  }
  0x3e   : > { %550 = sbr.rel (%p5793_p10) target bundleno = 2011 (0x7db), region = 92 }
  0x43   : > { %p7638_p9 = scmp.eq.s32.totalorder %s5765_s0, 0 }
  0x45   : > { %5610 = dma.done.wait (%p7638_p9), [#allocation3], 1536   ;;  %p7639_p13 = pmov %p7638_p9 }
  0x46   : > { %p7640_p1 = pmov %p7638_p9 }
  0x47   : > { %5612 = vsyncadd (%p7639_p13), [#allocation3], 4294965760 }
  0x48   : > { %5614 = dma.done.wait (%p7640_p1), [#allocation6], 9216   ;;  %p7641_p5 = pmov %p7640_p1 }
  0x49   : > { %p611_p3 = scmp.lt.s32.totalorder %s5765_s0, 1  ;;  %s7642_s21 = sld [smem:[#allocation19_spill]]  ;;  %v7620_v1 = vmov 0   ;;  %v649_v2 = vlaneseq  ;;  %vm2556_vm0 = vcmask 261120   ;;  %vm2589_vm1 = vcmask 523264  }
  0x4a   : > { %5616 = vsyncadd (%p7641_p5), [#allocation6], 4294958080  ;;  %5188 = vset.pattern.permute.xlu1 %v7620_v1  ;;  %3226 = vmatprep.subr.bf16.mxu1 %v7620_v1  ;;  %s7644_s1 = sld [smem:[#allocation20_spill]]  ;;  %s5643_s19 = smov 32   ;;  %vm2674_vm2 = vcmask 785408   ;;  %vm5646_vm4 = vmmov 1  }
  0x4b   : > { %s612_s30 = scalar_select %p611_p3, %s5765_s0, 1  ;;  %v650_v3 = vshrl.u32 %v649_v2, 7  ;;  %vm4651_vm3 = vmneg %vm2589_vm1  ;;  %vm5647_vm6 = vmmov 0  }
  0x4c   : > { %s7645_s26 = sld [smem:[#allocation21_spill]]  ;;  %vm4652_vm5 = vmpackc.low %vm5646_vm4, %vm4651_vm3  ;;  %s608_s27 = sand.u32 1, %s5627_s28  }
  0x4d   : > { %s4611_s29 = sshll.u32 %s612_s30, 3  ;;  %v5849_v4 = vsub.s32 1, %v650_v3  ;;  %v5851_v5 = vsub.s32 0, %v650_v3  ;;  %v5855_v9 = vsub.s32 2, %v650_v3  ;;  %v5860_v12 = vsub.s32 3, %v650_v3  ;;  %s4750_s24 = sshll.u32 %s5765_s0, 7 }
  0x4e   : > { %v5862_v13 = vsub.s32 4, %v650_v3  ;;  %v5867_v16 = vsub.s32 6, %v650_v3  ;;  %v5876_v21 = vsub.s32 5, %v650_v3  ;;  %v5884_v26 = vsub.s32 7, %v650_v3  ;;  %s4497_s23 = scalar_lea.sflag [#allocation4], %s608_s27  ;;  %p7651_p12 = scmp.ne.s32.totalorder %s7633_s2, 0 }
  0x4f   : > { %s614_s25 = scalar_lea.vmem %s7642_s21, %s4611_s29  ;;  %s5648_s0 = smov [#allocation8]  }
  0x50   : > { %v616_v0 = vld [vmem:[%s614_s25] sm:$0xff]  ;;  %s5644_s25 = smov 64  }
  0x51   : > { %617 = vxpose.xlu0.b32.start.end [1/1] (short) (narrow) %v616_v0, 64 }
  0x7a   : > { %5187 = vset.pattern.permute.xlu0 %v7620_v1 }
  0xcd   : > { %v633_v6 = vpop.trf.xlu0 }
  0xce   : > { %v659_v7 = vrot.slane %v633_v6, %v5849_v4  ;;  %v652_v8 = vrot.slane %v633_v6, %v5851_v5  ;;  %v666_v11 = vrot.slane %v633_v6, %v5855_v9  ;;  %v673_v15 = vrot.slane %v633_v6, %v5860_v12 }
  0xcf   : > { %v680_v20 = vrot.slane %v633_v6, %v5862_v13  ;;  %v687_v23 = vrot.slane %v633_v6, %v5876_v21  ;;  %v694_v25 = vrot.slane %v633_v6, %v5867_v16  ;;  %v701_v28 = vrot.slane %v633_v6, %v5884_v26 }
  0xd0   : > { %661 = vbcast.lane.b32.xlu1 %v659_v7, 256  ;;  %654 = vbcast.lane.b32.xlu0 %v652_v8, 256 }
  0xd1   : > { %v5857_v10 = vpop.trf.xlu0 }
  0xd2   : > { %v708_v29 = vrot.slane %v5857_v10, %v5851_v5  ;;  %v715_v33 = vrot.slane %v5857_v10, %v5849_v4  ;;  %v722_v35 = vrot.slane %v5857_v10, %v5855_v9  ;;  %v729_v38 = vrot.slane %v5857_v10, %v5860_v12 }
  0xd3   : > { %v736_v40 = vrot.slane %v5857_v10, %v5862_v13  ;;  %v743_v42 = vrot.slane %v5857_v10, %v5876_v21  ;;  %v750_v45 = vrot.slane %v5857_v10, %v5867_v16  ;;  %v757_v47 = vrot.slane %v5857_v10, %v5884_v26 }
  0xd4   : > { %668 = vbcast.lane.b32.xlu1 %v666_v11, 256 }
  0xd5   : > { %v5864_v14 = vpop.trf.xlu0 }
  0xd6   : > { %v792_v17 = vrot.slane %v5864_v14, %v5862_v13  ;;  %v806_v18 = vrot.slane %v5864_v14, %v5867_v16  ;;  %v764_v48 = vrot.slane %v5864_v14, %v5851_v5  ;;  %v771_v52 = vrot.slane %v5864_v14, %v5849_v4 }
  0xd7   : > { %v778_v54 = vrot.slane %v5864_v14, %v5855_v9  ;;  %v785_v55 = vrot.slane %v5864_v14, %v5860_v12  ;;  %v799_v56 = vrot.slane %v5864_v14, %v5876_v21  ;;  %v813_v57 = vrot.slane %v5864_v14, %v5884_v26 }
  0xd8   : > { %675 = vbcast.lane.b32.xlu1 %v673_v15, 256  ;;  %794 = vbcast.lane.b32.xlu0 %v792_v17, 256 }
  0xd9   : > { %v5873_v19 = vpop.trf.xlu0 }
  0xda   : > { %v820_v22 = vrot.slane %v5873_v19, %v5851_v5  ;;  %v834_v24 = vrot.slane %v5873_v19, %v5855_v9  ;;  %v848_v27 = vrot.slane %v5873_v19, %v5862_v13  ;;  %v862_v30 = vrot.slane %v5873_v19, %v5867_v16 }
  0xdb   : > { %v827_v58 = vrot.slane %v5873_v19, %v5849_v4  ;;  %v841_v59 = vrot.slane %v5873_v19, %v5860_v12  ;;  %v855_v60 = vrot.slane %v5873_v19, %v5876_v21  ;;  %v869_v61 = vrot.slane %v5873_v19, %v5884_v26 }
  0xdc   : > { %682 = vbcast.lane.b32.xlu1 %v680_v20, 256  ;;  %808 = vbcast.lane.b32.xlu0 %v806_v18, 256 }
  0xdd   : > { %v5893_v31 = vpop.trf.xlu0 }
  0xde   : > { %v876_v32 = vrot.slane %v5893_v31, %v5851_v5  ;;  %v890_v34 = vrot.slane %v5893_v31, %v5855_v9  ;;  %v911_v36 = vrot.slane %v5893_v31, %v5876_v21  ;;  %v883_v62 = vrot.slane %v5893_v31, %v5849_v4 }
  0xdf   : > { %v897_v63 = vrot.slane %v5893_v31, %v5860_v12  ;;  %v904_v0 = vrot.slane %v5893_v31, %v5862_v13  ;;  %v918_v2 = vrot.slane %v5893_v31, %v5867_v16  ;;  %v925_v7 = vrot.slane %v5893_v31, %v5884_v26 }
  0xe0   : > { %689 = vbcast.lane.b32.xlu1 %v687_v23, 256  ;;  %822 = vbcast.lane.b32.xlu0 %v820_v22, 256 }
  0xe1   : > { %v5905_v37 = vpop.trf.xlu0 }
  0xe2   : > { %v932_v39 = vrot.slane %v5905_v37, %v5851_v5  ;;  %v967_v41 = vrot.slane %v5905_v37, %v5876_v21  ;;  %v981_v43 = vrot.slane %v5905_v37, %v5884_v26  ;;  %v939_v10 = vrot.slane %v5905_v37, %v5849_v4 }
  0xe3   : > { %v946_v14 = vrot.slane %v5905_v37, %v5855_v9  ;;  %v953_v17 = vrot.slane %v5905_v37, %v5860_v12  ;;  %v960_v19 = vrot.slane %v5905_v37, %v5862_v13  ;;  %v974_v22 = vrot.slane %v5905_v37, %v5867_v16 }
  0xe4   : > { %696 = vbcast.lane.b32.xlu1 %v694_v25, 256  ;;  %836 = vbcast.lane.b32.xlu0 %v834_v24, 256 }
  0xe5   : > { %v5919_v44 = vpop.trf.xlu0 }
  0xe6   : > { %v995_v46 = vrot.slane %v5919_v44, %v5849_v4  ;;  %v1009_v49 = vrot.slane %v5919_v44, %v5860_v12  ;;  %v1023_v50 = vrot.slane %v5919_v44, %v5876_v21  ;;  %v988_v24 = vrot.slane %v5919_v44, %v5851_v5 }
  0xe7   : > { %v1030_v31 = vrot.slane %v5919_v44, %v5867_v16 }
  0xe8   : > { %703 = vbcast.lane.b32.xlu1 %v701_v28, 256  ;;  %850 = vbcast.lane.b32.xlu0 %v848_v27, 256  ;;  %v1002_v27 = vrot.slane %v5919_v44, %v5855_v9 }
  0xe9   : > { %v5933_v51 = vpop.trf.xlu0 }
  0xea   : > { %v1044_v53 = vrot.slane %v5933_v51, %v5851_v5 }
  0xec   : > { %710 = vbcast.lane.b32.xlu1 %v708_v29, 256  ;;  %864 = vbcast.lane.b32.xlu0 %v862_v30, 256  ;;  %v1016_v29 = vrot.slane %v5919_v44, %v5862_v13 }
  0xf0   : > { %717 = vbcast.lane.b32.xlu1 %v715_v33, 256  ;;  %878 = vbcast.lane.b32.xlu0 %v876_v32, 256  ;;  %v1037_v33 = vrot.slane %v5919_v44, %v5884_v26 }
  0xf4   : > { %724 = vbcast.lane.b32.xlu1 %v722_v35, 256  ;;  %892 = vbcast.lane.b32.xlu0 %v890_v34, 256 }
  0xf8   : > { %731 = vbcast.lane.b32.xlu1 %v729_v38, 256  ;;  %913 = vbcast.lane.b32.xlu0 %v911_v36, 256 }
  0xfc   : > { %738 = vbcast.lane.b32.xlu1 %v736_v40, 256  ;;  %934 = vbcast.lane.b32.xlu0 %v932_v39, 256 }
 0x100   : > { %745 = vbcast.lane.b32.xlu1 %v743_v42, 256  ;;  %969 = vbcast.lane.b32.xlu0 %v967_v41, 256 }
 0x104   : > { %752 = vbcast.lane.b32.xlu1 %v750_v45, 256  ;;  %983 = vbcast.lane.b32.xlu0 %v981_v43, 256 }
 0x108   : > { %759 = vbcast.lane.b32.xlu1 %v757_v47, 256  ;;  %997 = vbcast.lane.b32.xlu0 %v995_v46, 256 }
 0x10c   : > { %766 = vbcast.lane.b32.xlu1 %v764_v48, 256  ;;  %1011 = vbcast.lane.b32.xlu0 %v1009_v49, 256 }
 0x110   : > { %773 = vbcast.lane.b32.xlu1 %v771_v52, 256  ;;  %1025 = vbcast.lane.b32.xlu0 %v1023_v50, 256 }
 0x114   : > { %780 = vbcast.lane.b32.xlu1 %v778_v54, 256  ;;  %1046 = vbcast.lane.b32.xlu0 %v1044_v53, 256  ;;  %v1051_v54 = vrot.slane %v5933_v51, %v5849_v4 }
 0x118   : > { %787 = vbcast.lane.b32.xlu1 %v785_v55, 256 }
 0x11c   : > { %801 = vbcast.lane.b32.xlu1 %v799_v56, 256 }
 0x120   : > { %815 = vbcast.lane.b32.xlu1 %v813_v57, 256 }
 0x124   : > { %829 = vbcast.lane.b32.xlu1 %v827_v58, 256 }
 0x128   : > { %843 = vbcast.lane.b32.xlu1 %v841_v59, 256 }
 0x12c   : > { %857 = vbcast.lane.b32.xlu1 %v855_v60, 256  ;;  %v1058_v60 = vrot.slane %v5933_v51, %v5855_v9 }
 0x130   : > { %871 = vbcast.lane.b32.xlu1 %v869_v61, 256 }
 0x134   : > { %885 = vbcast.lane.b32.xlu1 %v883_v62, 256 }
 0x138   : > { %899 = vbcast.lane.b32.xlu1 %v897_v63, 256  ;;  %v1065_v63 = vrot.slane %v5933_v51, %v5860_v12 }
 0x13c   : > { %906 = vbcast.lane.b32.xlu1 %v904_v0, 256 }
 0x140   : > { %920 = vbcast.lane.b32.xlu1 %v918_v2, 256  ;;  %v1072_v2 = vrot.slane %v5933_v51, %v5862_v13 }
 0x142   : > { %v662_v3 = vpop.permute.xlu1 %661  ;;  %v655_v6 = vpop.permute.xlu0 %654 }
 0x143   : > { %1107 = vperm.xlu0 %5187, %v655_v6  }
 0x144   : > { %927 = vbcast.lane.b32.xlu1 %v925_v7, 256 }
 0x146   : > { %v669_v8 = vpop.permute.xlu1 %668 }
 0x148   : > { %941 = vbcast.lane.b32.xlu1 %v939_v10, 256 }
 0x14a   : > { %v676_v11 = vpop.permute.xlu1 %675  ;;  %v795_v37 = vpop.permute.xlu0 %794 }
 0x14b   : > { %1122 = vperm.xlu0 %5187, %v676_v11   ;;  %v1093_v11 = vrot.slane %v5933_v51, %v5884_v26 }
 0x14c   : > { %948 = vbcast.lane.b32.xlu1 %v946_v14, 256 }
 0x14e   : > { %v683_v15 = vpop.permute.xlu1 %682  ;;  %v809_v40 = vpop.permute.xlu0 %808 }
 0x150   : > { %955 = vbcast.lane.b32.xlu1 %v953_v17, 256 }
 0x152   : > { %v690_v18 = vpop.permute.xlu1 %689  ;;  %v823_v42 = vpop.permute.xlu0 %822 }
 0x153   : > { %1132 = vperm.xlu0 %5187, %v690_v18  }
 0x154   : > { %962 = vbcast.lane.b32.xlu1 %v960_v19, 256 }
 0x156   : > { %v697_v20 = vpop.permute.xlu1 %696  ;;  %v837_v44 = vpop.permute.xlu0 %836 }
 0x158   : > { %976 = vbcast.lane.b32.xlu1 %v974_v22, 256 }
 0x15a   : > { %v704_v23 = vpop.permute.xlu1 %703  ;;  %v851_v47 = vpop.permute.xlu0 %850 }
 0x15b   : > { %1142 = vperm.xlu0 %5187, %v704_v23  }
 0x15c   : > { %990 = vbcast.lane.b32.xlu1 %v988_v24, 256 }
 0x15e   : > { %v711_v25 = vpop.permute.xlu1 %710  ;;  %v865_v49 = vpop.permute.xlu0 %864 }
 0x160   : > { %1004 = vbcast.lane.b32.xlu1 %v1002_v27, 256 }
 0x162   : > { %v718_v28 = vpop.permute.xlu1 %717  ;;  %v879_v52 = vpop.permute.xlu0 %878 }
 0x163   : > { %1152 = vperm.xlu0 %5187, %v718_v28  }
 0x164   : > { %1018 = vbcast.lane.b32.xlu1 %v1016_v29, 256  ;;  %v1097_v29 = vld [vmem:[%s7644_s1] sm:$0x1f]  ;;  %s7551_s1 = scalar_lea.hbm %s7610_s18, %s4750_s24 }
 0x166   : > { %v725_v30 = vpop.permute.xlu1 %724  ;;  %v893_v56 = vpop.permute.xlu0 %892 }
 0x168   : > { %1032 = vbcast.lane.b32.xlu1 %v1030_v31, 256  ;;  %v6008_v31 = vrot.slane %v1097_v29, %v5851_v5 }
 0x16a   : > { %v732_v32 = vpop.permute.xlu1 %731  ;;  %v914_v58 = vpop.permute.xlu0 %913 }
 0x16b   : > { %1162 = vperm.xlu0 %5187, %v732_v32  }
 0x16c   : > { %1039 = vbcast.lane.b32.xlu1 %v1037_v33, 256 }
 0x16e   : > { %v739_v34 = vpop.permute.xlu1 %738  ;;  %v935_v62 = vpop.permute.xlu0 %934 }
 0x16f   : > { %1167 = vperm.xlu0 %5187, %v739_v34   ;;  %v6011_v34 = vrot.slane %v1097_v29, %v5855_v9 }
 0x170   : > { %1112 = vperm.xlu1 %5188, %v662_v3   ;;  %v1079_v3 = vrot.slane %v5933_v51, %v5876_v21 }
 0x172   : > { %v746_v35 = vpop.permute.xlu1 %745  ;;  %v970_v6 = vpop.permute.xlu0 %969 }
 0x174   : > { %1117 = vperm.xlu1 %5188, %v669_v8   ;;  %v1086_v8 = vrot.slane %v5933_v51, %v5867_v16 }
 0x176   : > { %v753_v36 = vpop.permute.xlu1 %752  ;;  %v984_v14 = vpop.permute.xlu0 %983 }
 0x177   : > { %1177 = vperm.xlu0 %5187, %v753_v36  }
 0x178   : > { %1127 = vperm.xlu1 %5188, %v683_v15  }
 0x17a   : > { %v760_v38 = vpop.permute.xlu1 %759  ;;  %v998_v17 = vpop.permute.xlu0 %997 }
 0x17c   : > { %1137 = vperm.xlu1 %5188, %v697_v20  }
 0x17e   : > { %v767_v39 = vpop.permute.xlu1 %766  ;;  %v1012_v19 = vpop.permute.xlu0 %1011 }
 0x17f   : > { %1187 = vperm.xlu0 %5187, %v767_v39  }
 0x180   : > { %1147 = vperm.xlu1 %5188, %v711_v25  }
 0x182   : > { %v774_v41 = vpop.permute.xlu1 %773  ;;  %v1026_v20 = vpop.permute.xlu0 %1025 }
 0x183   : > { %1192 = vperm.xlu0 %5187, %v774_v41   ;;  %v6021_v41 = vrot.slane %v1097_v29, %v5862_v13 }
 0x184   : > { %1157 = vperm.xlu1 %5188, %v725_v30   ;;  %v6005_v30 = vrot.slane %v1097_v29, %v5849_v4 }
 0x186   : > { %v781_v43 = vpop.permute.xlu1 %780  ;;  %v5999_v51 = vpop.permute.xlu0 %1046  ;;  %v1554_v36 = vmul.f32 0.0, %v6005_v30 }
 0x187   : > { %1197 = vperm.xlu0 %5187, %v781_v43   ;;  %7643 = vst [vmem:[#allocation18_spill] sm:$0xff] %v5999_v51 }
 0x188   : > { %1172 = vperm.xlu1 %5188, %v746_v35   ;;  %v1419_v35 = vmul.f32 0.0, %v6008_v31 }
 0x18a   : > { %v788_v45 = vpop.permute.xlu1 %787  ;;  %v1618_v4 = vadd.f32 %v1554_v36, %v1419_v35 }
 0x18b   : > { %1202 = vperm.xlu0 %5187, %v788_v45  }
 0x18c   : > { %1182 = vperm.xlu1 %5188, %v760_v38  }
 0x18e   : > { %v802_v46 = vpop.permute.xlu1 %801 }
 0x18f   : > { %1212 = vperm.xlu0 %5187, %v802_v46  }
 0x190   : > { %1207 = vperm.xlu1 %5188, %v795_v37  }
 0x192   : > { %v816_v48 = vpop.permute.xlu1 %815 }
 0x193   : > { %1222 = vperm.xlu0 %5187, %v816_v48  }
 0x194   : > { %1217 = vperm.xlu1 %5188, %v809_v40   ;;  %v6018_v40 = vrot.slane %v1097_v29, %v5860_v12 }
 0x196   : > { %v830_v50 = vpop.permute.xlu1 %829 }
 0x197   : > { %1232 = vperm.xlu0 %5187, %v830_v50  }
 0x198   : > { %1227 = vperm.xlu1 %5188, %v823_v42  }
 0x19a   : > { %v844_v53 = vpop.permute.xlu1 %843 }
 0x19b   : > { %1237 = vperm.xlu0 %5187, %v837_v44  }
 0x19c   : > { %1242 = vperm.xlu1 %5188, %v844_v53  }
 0x19e   : > { %v858_v55 = vpop.permute.xlu1 %857 }
 0x19f   : > { %1053 = vbcast.lane.b32.xlu0 %v1051_v54, 256 }
 0x1a0   : > { %1247 = vperm.xlu1 %5188, %v851_v47  }
 0x1a2   : > { %v872_v57 = vpop.permute.xlu1 %871 }
 0x1a3   : > { %1252 = vperm.xlu0 %5187, %v858_v55  }
 0x1a4   : > { %1257 = vperm.xlu1 %5188, %v865_v49  }
 0x1a6   : > { %v886_v59 = vpop.permute.xlu1 %885 }
 0x1a7   : > { %1262 = vperm.xlu0 %5187, %v872_v57  }
 0x1a8   : > { %1267 = vperm.xlu1 %5188, %v879_v52  }
 0x1aa   : > { %v900_v61 = vpop.permute.xlu1 %899 }
 0x1ab   : > { %1060 = vbcast.lane.b32.xlu0 %v1058_v60, 256 }
 0x1ac   : > { %1272 = vperm.xlu1 %5188, %v886_v59  }
 0x1ae   : > { %v907_v0 = vpop.permute.xlu1 %906 }
 0x1af   : > { %1067 = vbcast.lane.b32.xlu0 %v1065_v63, 256 }
 0x1b0   : > { %1074 = vbcast.lane.b32.xlu1 %v1072_v2, 256 }
 0x1b2   : > { %v921_v7 = vpop.permute.xlu1 %920 }
 0x1b3   : > { %1081 = vbcast.lane.b32.xlu0 %v1079_v3, 256 }
 0x1b4   : > { %1088 = vbcast.lane.b32.xlu1 %v1086_v8, 256 }
 0x1b6   : > { %v928_v10 = vpop.permute.xlu1 %927 }
 0x1b7   : > { %1277 = vperm.xlu0 %5187, %v893_v56  }
 0x1b8   : > { %1095 = vbcast.lane.b32.xlu1 %v1093_v11, 256 }
 0x1ba   : > { %v942_v15 = vpop.permute.xlu1 %941 }
 0x1bb   : > { %1282 = vperm.xlu0 %5187, %v900_v61  }
 0x1bc   : > { %1287 = vperm.xlu1 %5188, %v907_v0  }
 0x1be   : > { %v949_v18 = vpop.permute.xlu1 %948  ;;  %v1108_v24 = vpop.permute.xlu0 %1107 }
 0x1bf   : > { %1292 = vperm.xlu0 %5187, %v914_v58   ;;  %v1555_v38 = vmul.f32 %v6005_v30, %v1108_v24  ;;  %v1691_v39 = vmul.f32 %v6011_v34, %v1108_v24  ;;  %v1420_v9 = vmul.f32 %v6008_v31, %v1108_v24 }
 0x1c0   : > { %1297 = vperm.xlu1 %5188, %v921_v7  }
 0x1c1   : > { %v1619_v42 = vadd.f32 %v1555_v38, %v1419_v35  ;;  %v1755_v43 = vadd.f32 %v1691_v39, %v1618_v4 }
 0x1c2   : > { %v956_v21 = vpop.permute.xlu1 %955 }
 0x1c3   : > { %1302 = vperm.xlu0 %5187, %v928_v10  }
 0x1c4   : > { %1307 = vperm.xlu1 %5188, %v935_v62  }
 0x1c6   : > { %v963_v16 = vpop.permute.xlu1 %962  ;;  %v1123_v27 = vpop.permute.xlu0 %1122 }
 0x1c7   : > { %1312 = vperm.xlu0 %5187, %v942_v15   ;;  %v1423_v44 = vmul.f32 %v6008_v31, %v1123_v27  ;;  %v1558_v45 = vmul.f32 %v6005_v30, %v1123_v27  ;;  %v1694_v46 = vmul.f32 %v6011_v34, %v1123_v27  ;;  %v1825_v48 = vmul.f32 %v6018_v40, %v1123_v27 }
 0x1c8   : > { %1317 = vperm.xlu1 %5188, %v949_v18   ;;  %v1956_v49 = vmul.f32 %v6021_v41, %v1123_v27 }
 0x1ca   : > { %v977_v22 = vpop.permute.xlu1 %976 }
 0x1cb   : > { %1322 = vperm.xlu0 %5187, %v956_v21  }
 0x1cc   : > { %1327 = vperm.xlu1 %5188, %v963_v16  }
 0x1ce   : > { %v991_v26 = vpop.permute.xlu1 %990  ;;  %v1133_v32 = vpop.permute.xlu0 %1132 }
 0x1cf   : > { %1332 = vperm.xlu0 %5187, %v970_v6   ;;  %v6030_v12 = vmul.f32 %v6008_v31, %v1133_v32  ;;  %v6033_v13 = vmul.f32 %v6005_v30, %v1133_v32  ;;  %v6036_v52 = vmul.f32 %v6011_v34, %v1133_v32  ;;  %v6039_v53 = vmul.f32 %v6018_v40, %v1133_v32 }
 0x1d0   : > { %1337 = vperm.xlu1 %5188, %v977_v22   ;;  %v6042_v54 = vmul.f32 %v6021_v41, %v1133_v32 }
 0x1d2   : > { %v1005_v23 = vpop.permute.xlu1 %1004 }
 0x1d3   : > { %1342 = vperm.xlu0 %5187, %v984_v14  }
 0x1d4   : > { %1347 = vperm.xlu1 %5188, %v991_v26  }
 0x1d6   : > { %v1019_v25 = vpop.permute.xlu1 %1018  ;;  %v1143_v37 = vpop.permute.xlu0 %1142 }
 0x1d7   : > { %1352 = vperm.xlu0 %5187, %v998_v17   ;;  %v6046_v56 = vmul.f32 %v6008_v31, %v1143_v37  ;;  %v6049_v57 = vmul.f32 %v6005_v30, %v1143_v37  ;;  %v6052_v58 = vmul.f32 %v6011_v34, %v1143_v37  ;;  %v6055_v59 = vmul.f32 %v6018_v40, %v1143_v37 }
 0x1d8   : > { %1357 = vperm.xlu1 %5188, %v1005_v23   ;;  %v6058_v60 = vmul.f32 %v6021_v41, %v1143_v37 }
 0x1da   : > { %v1033_v28 = vpop.permute.xlu1 %1032 }
 0x1db   : > { %1372 = vperm.xlu0 %5187, %v1026_v20  }
 0x1dc   : > { %1362 = vperm.xlu1 %5188, %v1012_v19  }
 0x1de   : > { %v1040_v33 = vpop.permute.xlu1 %1039  ;;  %v1153_v5 = vpop.permute.xlu0 %1152 }
 0x1df   : > { %1382 = vperm.xlu0 %5187, %v1040_v33   ;;  %v6061_v61 = vmul.f32 %v6008_v31, %v1153_v5  ;;  %v6064_v62 = vmul.f32 %v6005_v30, %v1153_v5  ;;  %v6068_v0 = vmul.f32 %v6011_v34, %v1153_v5  ;;  %v6071_v2 = vmul.f32 %v6018_v40, %v1153_v5 }
 0x1e0   : > { %1367 = vperm.xlu1 %5188, %v1019_v25   ;;  %v6074_v3 = vmul.f32 %v6021_v41, %v1153_v5 }
 0x1e4   : > { %1377 = vperm.xlu1 %5188, %v1033_v28  }
 0x1e6   : > { %v1163_v47 = vpop.permute.xlu0 %1162 }
 0x1e7   : > { %v1431_v17 = vmul.f32 %v6008_v31, %v1163_v47  ;;  %v6082_v18 = vmul.f32 %v6005_v30, %v1163_v47  ;;  %v6085_v21 = vmul.f32 %v6011_v34, %v1163_v47  ;;  %v6088_v19 = vmul.f32 %v6018_v40, %v1163_v47 }
 0x1e8   : > { %v6092_v23 = vmul.f32 %v6021_v41, %v1163_v47 }
 0x1ea   : > { %v1168_v8 = vpop.permute.xlu0 %1167 }
 0x1eb   : > { %v1113_v50 = vpop.permute.xlu1 %1112  ;;  %v6095_v24 = vmul.f32 %v6008_v31, %v1168_v8  ;;  %v1567_v25 = vmul.f32 %v6005_v30, %v1168_v8  ;;  %v6100_v29 = vmul.f32 %v6011_v34, %v1168_v8  ;;  %v6103_v32 = vmul.f32 %v6018_v40, %v1168_v8 }
 0x1ec   : > { %v1556_v55 = vmul.f32 %v6005_v30, %v1113_v50  ;;  %v1692_v63 = vmul.f32 %v6011_v34, %v1113_v50  ;;  %v1421_v6 = vmul.f32 %v6008_v31, %v1113_v50  ;;  %v1823_v20 = vmul.f32 %v6018_v40, %v1113_v50 }
 0x1ed   : > { %v6112_v50 = vmul.f32 %v6021_v41, %v1168_v8 }
 0x1ee   : > { %v1620_v10 = vadd.f32 %v1556_v55, %v1420_v9  ;;  %v1756_v16 = vadd.f32 %v1692_v63, %v1619_v42  ;;  %v1887_v39 = vadd.f32 %v1823_v20, %v1755_v43 }
 0x1ef   : > { %v1118_v7 = vpop.permute.xlu1 %1117 }
 0x1f0   : > { %v1557_v11 = vmul.f32 %v6005_v30, %v1118_v7  ;;  %v1693_v14 = vmul.f32 %v6011_v34, %v1118_v7  ;;  %v1824_v15 = vmul.f32 %v6018_v40, %v1118_v7  ;;  %v1422_v27 = vmul.f32 %v6008_v31, %v1118_v7 }
 0x1f1   : > { %v1955_v35 = vmul.f32 %v6021_v41, %v1118_v7  ;;  %v6114_v7 = vadd.f32 %v1567_v25, %v1431_v17 }
 0x1f2   : > { %v1621_v22 = vadd.f32 %v1557_v11, %v1421_v6  ;;  %v1757_v26 = vadd.f32 %v1693_v14, %v1620_v10  ;;  %v1888_v33 = vadd.f32 %v1824_v15, %v1756_v16  ;;  %v1178_v5 = vpop.permute.xlu0 %1177  ;;  %v1622_v55 = vadd.f32 %v1558_v45, %v1422_v27  ;;  %v6127_v45 = vld [vmem:[%s7645_s26] ss:$0 sm:$0xff] }
 0x1f3   : > { %v1128_v28 = vpop.permute.xlu1 %1127  ;;  %v2018_v10 = vadd.f32 %v1955_v35, %v1887_v39  ;;  %v6119_v14 = vmul.f32 %v6008_v31, %v1178_v5  ;;  %v6130_v15 = vmul.f32 %v6011_v34, %v1178_v5 }
 0x1f4   : > { %v1559_v36 = vmul.f32 %v6005_v30, %v1128_v28  ;;  %v1695_v37 = vmul.f32 %v6011_v34, %v1128_v28  ;;  %v1758_v38 = vadd.f32 %v1694_v46, %v1621_v22  ;;  %v1826_v4 = vmul.f32 %v6018_v40, %v1128_v28 }
 0x1f5   : > { %v1424_v9 = vmul.f32 %v6008_v31, %v1128_v28  ;;  %v1889_v42 = vadd.f32 %v1825_v48, %v1757_v26  ;;  %v1957_v47 = vmul.f32 %v6021_v41, %v1128_v28  ;;  %v2019_v11 = vadd.f32 %v1956_v49, %v1888_v33 }
 0x1f6   : > { %v1623_v63 = vadd.f32 %v1559_v36, %v1423_v44  ;;  %v6122_v48 = vmul.f32 %v6005_v30, %v1178_v5  ;;  %v1759_v44 = vadd.f32 %v1695_v37, %v1622_v55  ;;  %v1890_v8 = vadd.f32 %v1826_v4, %v1758_v38 }
 0x1f7   : > { %v1138_v6 = vpop.permute.xlu1 %1137  ;;  %v1624_v49 = vadd.f32 %v6033_v13, %v1424_v9  ;;  %v2020_v17 = vadd.f32 %v1957_v47, %v1889_v42  ;;  %v6135_v22 = vmul.f32 %v6018_v40, %v1178_v5  ;;  %v6138_v26 = vmul.f32 %v6021_v41, %v1178_v5 }
 0x1f8   : > { %v1561_v46 = vmul.f32 %v6005_v30, %v1138_v6  ;;  %v1697_v43 = vmul.f32 %v6011_v34, %v1138_v6  ;;  %v1760_v25 = vadd.f32 %v6036_v52, %v1623_v63  ;;  %v1828_v27 = vmul.f32 %v6018_v40, %v1138_v6 }
 0x1f9   : > { %v1426_v33 = vmul.f32 %v6008_v31, %v1138_v6  ;;  %v6144_v13 = vmul.f32 %v6127_v45, %v2018_v10  ;;  %v6150_v36 = vadd.f32 %v6042_v54, %v1890_v8  ;;  %v1891_v37 = vadd.f32 %v6039_v53, %v1759_v44 }
 0x1fa   : > { %v1625_v16 = vadd.f32 %v1561_v46, %v6030_v12  ;;  %v1188_v20 = vpop.permute.xlu0 %1187  ;;  %v1761_v35 = vadd.f32 %v1697_v43, %v1624_v49  ;;  %v6147_v12 = vmul.f32 %v6127_v45, %v2019_v11  ;;  %v1959_v38 = vmul.f32 %v6021_v41, %v1138_v6 }
 0x1fb   : > { %v1148_v28 = vpop.permute.xlu1 %1147  ;;  %v6156_v4 = vmul.f32 %v6127_v45, %v2020_v17  ;;  %v1892_v47 = vadd.f32 %v1828_v27, %v1760_v25  ;;  %v1436_v54 = vmul.f32 %v6008_v31, %v1188_v20  ;;  %v1626_v6 = vadd.f32 %v6049_v57, %v1426_v33 }
 0x1fc   : > { %v1563_v52 = vmul.f32 %v6005_v30, %v1148_v28  ;;  %v1699_v39 = vmul.f32 %v6011_v34, %v1148_v28  ;;  %v1762_v5 = vadd.f32 %v6052_v58, %v1625_v16  ;;  %v1830_v9 = vmul.f32 %v6018_v40, %v1148_v28 }
 0x1fd   : > { %v1428_v55 = vmul.f32 %v6008_v31, %v1148_v28  ;;  %v1893_v10 = vadd.f32 %v6055_v59, %v1761_v35  ;;  %v1961_v46 = vmul.f32 %v6021_v41, %v1148_v28  ;;  %v2022_v43 = vadd.f32 %v1959_v38, %v1891_v37 }
 0x1fe   : > { %v1193_v42 = vpop.permute.xlu0 %1192  ;;  %v1627_v53 = vadd.f32 %v1563_v52, %v6046_v56  ;;  %v1894_v11 = vadd.f32 %v1830_v9, %v1762_v5  ;;  %v6168_v58 = vmul.f32 %v6005_v30, %v1188_v20  ;;  %v6171_v44 = vmul.f32 %v6011_v34, %v1188_v20 }
 0x1ff   : > { %v1158_v63 = vpop.permute.xlu1 %1157  ;;  %v6174_v8 = vmul.f32 %v6018_v40, %v1188_v20  ;;  %v1763_v49 = vadd.f32 %v1699_v39, %v1626_v6  ;;  %v1628_v16 = vadd.f32 %v6064_v62, %v1428_v55  ;;  %v1572_v25 = vmul.f32 %v6005_v30, %v1193_v42 }
 0x200   : > { %v1430_v56 = vmul.f32 %v6008_v31, %v1158_v63  ;;  %v1565_v57 = vmul.f32 %v6005_v30, %v1158_v63  ;;  %v1701_v59 = vmul.f32 %v6011_v34, %v1158_v63  ;;  %v1764_v27 = vadd.f32 %v6068_v0, %v1627_v53 }
 0x201   : > { %v1832_v28 = vmul.f32 %v6018_v40, %v1158_v63  ;;  %v6184_v35 = vmul.f32 %v6021_v41, %v1188_v20  ;;  %v2024_v37 = vadd.f32 %v1961_v46, %v1893_v10  ;;  %v2025_v38 = vadd.f32 %v6074_v3, %v1894_v11 }
 0x202   : > { %v1198_v17 = vpop.permute.xlu0 %1197  ;;  %v1629_v52 = vadd.f32 %v1565_v57, %v6061_v61  ;;  %v6189_v39 = vadd.f32 %v6058_v60, %v1892_v47  ;;  %v6192_v62 = vmul.f32 %v6127_v45, %v2022_v43  ;;  %v1437_v5 = vmul.f32 %v6008_v31, %v1193_v42 }
 0x203   : > { %v1173_v33 = vpop.permute.xlu1 %1172  ;;  %v1765_v0 = vadd.f32 %v1701_v59, %v1628_v16  ;;  %v6196_v9 = vmul.f32 %v6011_v34, %v1193_v42  ;;  %v1630_v20 = vadd.f32 %v6082_v18, %v1430_v56  ;;  %v1895_v55 = vadd.f32 %v6071_v2, %v1763_v49 }
 0x204   : > { %v1963_v3 = vmul.f32 %v6021_v41, %v1158_v63  ;;  %v1636_v61 = vadd.f32 %v1572_v25, %v1436_v54  ;;  %v6204_v60 = vmul.f32 %v6018_v40, %v1193_v42  ;;  %v6207_v47 = vmul.f32 %v6021_v41, %v1193_v42  ;;  %v6222_v54 = vld [vmem:[%s7595_s3] ss:$0 sm:$0xff] }
 0x205   : > { %v1896_v6 = vadd.f32 %v1832_v28, %v1764_v27  ;;  %v6210_v11 = vmul.f32 %v6127_v45, %v2024_v37  ;;  %v6213_v18 = vmul.f32 %v6127_v45, %v2025_v38  ;;  %v1766_v2 = vadd.f32 %v6085_v21, %v1629_v52 }
 0x206   : > { %v6201_v53 = vpop.permute.xlu0 %1202  ;;  %v6217_v63 = vmul.f32 %v6008_v31, %v1198_v17  ;;  %v1897_v42 = vadd.f32 %v6088_v19, %v1765_v0  ;;  %v1573_v46 = vmul.f32 %v6005_v30, %v1198_v17  ;;  %v1709_v43 = vmul.f32 %v6011_v34, %v1198_v17 }
 0x207   : > { %v1183_v10 = vpop.permute.xlu1 %1182  ;;  %v6228_v49 = vmul.f32 %v6018_v40, %v1198_v17  ;;  %v2026_v56 = vadd.f32 %v1963_v3, %v1895_v55  ;;  %v1568_v21 = vmul.f32 %v6005_v30, %v1173_v33  ;;  %v1767_v57 = vadd.f32 %v6100_v29, %v1630_v20 }
 0x208   : > { %v1835_v59 = vmul.f32 %v6018_v40, %v1173_v33  ;;  %v2027_v25 = vadd.f32 %v6092_v23, %v1896_v6  ;;  %v1433_v19 = vmul.f32 %v6008_v31, %v1173_v33  ;;  %v2091_v27 = vmul.f32 %v6127_v45, %v6150_v36 }
 0x209   : > { %v2158_v28 = vadd.f32 %v6222_v54, %v6144_v13  ;;  %v1704_v38 = vmul.f32 %v6011_v34, %v1173_v33  ;;  %v1898_v29 = vadd.f32 %v6103_v32, %v1766_v2  ;;  %v2159_v52 = vadd.f32 %v6222_v54, %v6147_v12 }
 0x20a   : > { %v6233_v16 = vpop.permute.xlu0 %1212  ;;  %v2160_v23 = vadd.f32 %v6222_v54, %v6156_v4  ;;  %v6250_v0 = vadd.f32 %v6112_v50, %v1897_v42  ;;  %v1637_v20 = vadd.f32 %v1573_v46, %v1437_v5  ;;  %v6253_v36 = vmul.f32 %v6021_v41, %v1198_v17 }
 0x20b   : > { %v6241_v37 = vpop.permute.xlu1 %1207  ;;  %v2161_v13 = vadd.f32 %v6222_v54, %v2091_v27  ;;  %v1632_v55 = vadd.f32 %v1568_v21, %v6095_v24  ;;  %v1899_v3 = vadd.f32 %v1835_v59, %v1767_v57  ;;  %v1966_v32 = vmul.f32 %v6021_v41, %v1173_v33 }
 0x20c   : > { %v2223_v6 = vmax.f32 %v2159_v52, 0.0  ;;  %v1773_v12 = vadd.f32 %v1709_v43, %v1636_v61  ;;  %v2222_v1 = vmax.f32 %v2158_v28, 0.0  ;;  %v2224_v4 = vmax.f32 %v2160_v23, 0.0 }
 0x20d   : > { %v2225_v51 = vmax.f32 %v2161_v13, 0.0  ;;  %v1633_v50 = vadd.f32 %v6122_v48, %v1433_v19  ;;  %v1768_v5 = vadd.f32 %v1704_v38, %v6114_v7  ;;  %v2029_v17 = vadd.f32 %v1966_v32, %v1898_v29 }
 0x20e   : > { %v6258_v2 = vpop.permute.xlu0 %1222  ;;  %v1574_v42 = vmul.f32 %v6005_v30, %v6201_v53  ;;  %v6266_v24 = vmax.f32 %v2222_v1, %v2223_v6  ;;  %v1435_v21 = vmul.f32 %v6008_v31, %v1183_v10  ;;  %v1570_v61 = vmul.f32 %v6005_v30, %v1183_v10 }
 0x20f   : > { %v6264_v46 = vpop.permute.xlu1 %1217  ;;  %v6268_v33 = vmax.f32 %v2224_v4, %v2225_v51  ;;  %v2030_v43 = vadd.f32 %v6138_v26, %v1899_v3  ;;  %v1706_v48 = vmul.f32 %v6011_v34, %v1183_v10  ;;  %v1769_v7 = vadd.f32 %v6130_v15, %v1632_v55 }
 0x210   : > { %v1837_v57 = vmul.f32 %v6018_v40, %v1183_v10  ;;  %v1710_v51 = vmul.f32 %v6011_v34, %v6201_v53  ;;  %v1634_v19 = vadd.f32 %v1570_v61, %v6119_v14  ;;  %v1635_v27 = vadd.f32 %v6168_v58, %v1435_v21 }
 0x211   : > { %v5189_v1 = vpack.i.bf16 %v6268_v33, %v6266_v24  ;;  %v1900_v26 = vadd.f32 %v6135_v22, %v1768_v5  ;;  %v1968_v28 = vmul.f32 %v6021_v41, %v1183_v10  ;;  %v2093_v15 = vmul.f32 %v6127_v45, %v6189_v39 }
 0x212   : > { %v6276_v59 = vpop.permute.xlu0 %1232  ;;  %v2162_v38 = vadd.f32 %v6222_v54, %v6192_v62  ;;  %v6291_v29 = vmul.f32 %v6127_v45, %v2026_v56  ;;  %v6294_v52 = vmul.f32 %v6127_v45, %v2027_v25  ;;  %v1841_v14 = vmul.f32 %v6018_v40, %v6201_v53 }
 0x213   : > { %5190 = vrot.lane.b32.xlu0 %v5189_v1, %s5643_s19  ;;  %v1770_v22 = vadd.f32 %v1706_v48, %v1633_v50  ;;  %v1439_v58 = vmul.f32 %v6008_v31, %v6201_v53  ;;  %v1771_v39 = vadd.f32 %v6171_v44, %v1634_v19  ;;  %v1901_v10 = vadd.f32 %v1837_v57, %v1769_v7  ;;  %v6303_v56 = vpop.permute.xlu1 %1227  ;;  %v5389_v1 = vld [vmem:[%s7596_s4 + $0x28] sm:$0xff]  }
 0x214   : > { %v2163_v62 = vadd.f32 %v6222_v54, %v2093_v15  ;;  %v6306_v25 = vmul.f32 %v6127_v45, %v2029_v17  ;;  %v6309_v23 = vmul.f32 %v6127_v45, %v2030_v43  ;;  %v1638_v13 = vadd.f32 %v1574_v42, %v6217_v63  ;;  %4865 = vmatprep.subr.bf16.mxu0 %v5389_v1 }
 0x215   : > { %v1772_v55 = vadd.f32 %v6196_v9, %v1635_v27  ;;  %v1774_v3 = vadd.f32 %v1710_v51, %v1637_v20  ;;  %v2031_v32 = vadd.f32 %v1968_v28, %v1900_v26  ;;  %v2226_v6 = vmax.f32 %v2162_v38, 0.0  ;;  %4866 = vmatpush3.bf16.msra.mxu0 %v5389_v1 }
 0x216   : > { %v2227_v4 = vmax.f32 %v2163_v62, 0.0  ;;  %v6313_v44 = vpop.permute.xlu0 %1237  ;;  %v1905_v50 = vadd.f32 %v1841_v14, %v1773_v12  ;;  %v1972_v5 = vmul.f32 %v6021_v41, %v6201_v53  ;;  %v1902_v17 = vadd.f32 %v6174_v8, %v1770_v22  ;;  %v5390_v22 = vld [vmem:[%s7596_s4 + $0x20] sm:$0xff]  }
 0x217   : > { %v1441_v21 = vmul.f32 %v6008_v31, %v6233_v16  ;;  %v1903_v61 = vadd.f32 %v6204_v60, %v1771_v39  ;;  %v2032_v63 = vadd.f32 %v6184_v35, %v1901_v10  ;;  %v1575_v20 = vmul.f32 %v6005_v30, %v6241_v37  ;;  %v6342_v48 = vpop.permute.xlu1 %1242  ;;  %4867 = vmatprep.subr.bf16.mxu0 %v5390_v22 }
 0x218   : > { %v6322_v9 = vmax.f32 %v2226_v6, %v2227_v4  ;;  %v1904_v42 = vadd.f32 %v6228_v49, %v1772_v55  ;;  %v1842_v12 = vmul.f32 %v6018_v40, %v6241_v37  ;;  %v2164_v8 = vadd.f32 %v6222_v54, %v6210_v11 }
 0x219   : > { %v2165_v53 = vadd.f32 %v6222_v54, %v6213_v18  ;;  %v6334_v60 = vmul.f32 %v6127_v45, %v2031_v32  ;;  %v1576_v43 = vmul.f32 %v6005_v30, %v6233_v16  ;;  %v1711_v49 = vmul.f32 %v6011_v34, %v6241_v37  ;;  %v5391_v32 = vld [vmem:[%s7596_s4 + $0x18] sm:$0xff]   ;;  %4868 = vmatpush3.bf16.msra.mxu0 %v5390_v22 }
 0x21a   : > { %v5199_v35 = vpack.i.bf16 %v6322_v9, %v6268_v33  ;;  %v1440_v11 = vmul.f32 %v6008_v31, %v6241_v37  ;;  %v1639_v7 = vadd.f32 %v1575_v20, %v1439_v58  ;;  %v2228_v57 = vmax.f32 %v2164_v8, 0.0  ;;  %v6358_v28 = vpop.permute.xlu0 %1053  ;;  %4869 = vmatprep.subr.bf16.mxu0 %v5391_v32 }
 0x21b   : > { %v2229_v18 = vmax.f32 %v2165_v53, 0.0  ;;  %v6350_v51 = vadd.f32 %v6207_v47, %v1902_v17  ;;  %v6353_v19 = vmul.f32 %v6127_v45, %v2032_v63  ;;  %v1906_v27 = vadd.f32 %v1842_v12, %v1774_v3 }
 0x21c   : > { %5200 = vrot.lane.b32.xlu1 %v5199_v35, %s5644_s25  ;;  %v1973_v26 = vmul.f32 %v6021_v41, %v6241_v37  ;;  %v6361_v15 = vadd.f32 %v6253_v36, %v1903_v61  ;;  %v6363_v38 = vadd.f32 %v1972_v5, %v1904_v42  ;;  %v1712_v47 = vmul.f32 %v6011_v34, %v6233_v16  ;;  %v6389_v5 = vpop.permute.xlu1 %1247 }
 0x21d   : > { %v6367_v14 = vmax.f32 %v2228_v57, %v2229_v18  ;;  %v1843_v37 = vmul.f32 %v6018_v40, %v6233_v16  ;;  %v1974_v58 = vmul.f32 %v6021_v41, %v6233_v16  ;;  %v1775_v36 = vadd.f32 %v1711_v49, %v1638_v13  ;;  %4870 = vmatpush3.bf16.msra.mxu0 %v5391_v32 }
 0x21e   : > { %v1577_v39 = vmul.f32 %v6005_v30, %v6264_v46  ;;  %v1640_v10 = vadd.f32 %v1576_v43, %v1440_v11  ;;  %v1776_v55 = vadd.f32 %v1712_v47, %v1639_v7  ;;  %v1844_v3 = vmul.f32 %v6018_v40, %v6264_v46  ;;  %v6404_v53 = vpop.permute.xlu0 %1252 }
 0x21f   : > { %v5194_v62 = vpack.i.bf16 %v6367_v14, %v6322_v9  ;;  %v2036_v6 = vadd.f32 %v1973_v26, %v1905_v50  ;;  %v2037_v16 = vadd.f32 %v1974_v58, %v1906_v27  ;;  %v1443_v13 = vmul.f32 %v6008_v31, %v6258_v2 }
 0x220   : > { %v1578_v4 = vmul.f32 %v6005_v30, %v6258_v2  ;;  %v1442_v17 = vmul.f32 %v6008_v31, %v6264_v46  ;;  %v1713_v61 = vmul.f32 %v6011_v34, %v6264_v46  ;;  %v2166_v50 = vadd.f32 %v6222_v54, %v6291_v29 }
 0x221   : > { %5195 = vrot.lane.b32.xlu0 %v5194_v62, %s5643_s19  ;;  %v2167_v63 = vadd.f32 %v6222_v54, %v6294_v52  ;;  %v1714_v20 = vmul.f32 %v6011_v34, %v6258_v2  ;;  %v1641_v42 = vadd.f32 %v1577_v39, %v1441_v21  ;;  %v1907_v12 = vadd.f32 %v1843_v37, %v1775_v36  ;;  %v5392_v52 = vld [vmem:[%s7596_s4 + $0x10] sm:$0xff]   ;;  %v6429_v37 = vpop.permute.xlu1 %1257  ;;  %v5393_v62 = vld [vmem:[%s7596_s4 + $0x8] sm:$0xff]  }
 0x222   : > { %v1975_v8 = vmul.f32 %v6021_v41, %v6264_v46  ;;  %v1845_v35 = vmul.f32 %v6018_v40, %v6258_v2  ;;  %v1908_v43 = vadd.f32 %v1844_v3, %v1776_v55  ;;  %v2230_v49 = vmax.f32 %v2166_v50, 0.0  ;;  %4871 = vmatprep.subr.bf16.mxu0 %v5392_v52 }
 0x223   : > { %v2231_v29 = vmax.f32 %v2167_v63, 0.0  ;;  %v6412_v21 = vmul.f32 %v6127_v45, %v2036_v6  ;;  %v1976_v46 = vmul.f32 %v6021_v41, %v6258_v2  ;;  %v1579_v11 = vmul.f32 %v6005_v30, %v6303_v56  ;;  %4872 = vmatpush3.bf16.msra.mxu0 %v5392_v52 }
 0x224   : > { %v1715_v7 = vmul.f32 %v6011_v34, %v6303_v56  ;;  %v6421_v57 = vmul.f32 %v6127_v45, %v2037_v16  ;;  %v1642_v18 = vadd.f32 %v1578_v4, %v1442_v17  ;;  %v1777_v1 = vadd.f32 %v1713_v61, %v1640_v10  ;;  %v6444_v16 = vpop.permute.xlu0 %1262  ;;  %4873 = vmatprep.subr.bf16.mxu0 %v5393_v62 }
 0x225   : > { %v6423_v27 = vmax.f32 %v2230_v49, %v2231_v29  ;;  %v2038_v26 = vadd.f32 %v1975_v8, %v1907_v12  ;;  %v1445_v47 = vmul.f32 %v6008_v31, %v6276_v59  ;;  %v1778_v22 = vadd.f32 %v1714_v20, %v1641_v42  ;;  %v5394_v8 = vld [vmem:[%s7596_s4] sm:$0xff]   ;;  %v6471_v29 = vpop.permute.xlu1 %1267 }
 0x226   : > { %v1846_v2 = vmul.f32 %v6018_v40, %v6303_v56  ;;  %v2039_v58 = vadd.f32 %v1976_v46, %v1908_v43  ;;  %v1580_v39 = vmul.f32 %v6005_v30, %v6276_v59  ;;  %v2098_v10 = vmul.f32 %v6127_v45, %v6250_v0 }
 0x227   : > { %v5204_v36 = vpack.i.bf16 %v6423_v27, %v6367_v14  ;;  %v1444_v55 = vmul.f32 %v6008_v31, %v6303_v56  ;;  %v1643_v3 = vadd.f32 %v1579_v11, %v1443_v13  ;;  %v1779_v32 = vadd.f32 %v1715_v7, %v1642_v18  ;;  %4874 = vmatpush3.bf16.msra.mxu0 %v5393_v62 }
 0x228   : > { %v2169_v6 = vadd.f32 %v6222_v54, %v6306_v25  ;;  %v1716_v0 = vmul.f32 %v6011_v34, %v6276_v59  ;;  %v1909_v4 = vadd.f32 %v1845_v35, %v1777_v1  ;;  %v1977_v17 = vmul.f32 %v6021_v41, %v6303_v56  ;;  %4875 = vmatprep.subr.bf16.mxu0 %v5394_v8 }
 0x229   : > { %5205 = vrot.lane.b32.xlu0 %v5204_v36, %s5644_s25  ;;  %v2168_v61 = vadd.f32 %v6222_v54, %v2098_v10  ;;  %v1847_v13 = vmul.f32 %v6018_v40, %v6276_v59  ;;  %v1978_v50 = vmul.f32 %v6021_v41, %v6276_v59  ;;  %v1910_v25 = vadd.f32 %v1846_v2, %v1778_v22  ;;  %v6491_v2 = vpop.permute.xlu0 %1060 }
 0x22a   : > { %v2233_v63 = vmax.f32 %v2169_v6, 0.0  ;;  %v6457_v20 = vmul.f32 %v6127_v45, %v2038_v26  ;;  %v6460_v42 = vmul.f32 %v6127_v45, %v2039_v58  ;;  %v1581_v56 = vmul.f32 %v6005_v30, %v6313_v44 }
 0x22b   : > { %v2232_v12 = vmax.f32 %v2168_v61, 0.0  ;;  %v1644_v35 = vadd.f32 %v1580_v39, %v1444_v55  ;;  %v1780_v59 = vadd.f32 %v1716_v0, %v1643_v3  ;;  %v6467_v43 = vadd.f32 %v1847_v13, %v1779_v32  ;;  %4876 = vmatpush3.bf16.msra.mxu0 %v5394_v8 }
 0x22c   : > { %v1717_v49 = vmul.f32 %v6011_v34, %v6313_v44  ;;  %v6473_v52 = vadd.f32 %v1977_v17, %v1909_v4  ;;  %v1446_v11 = vmul.f32 %v6008_v31, %v6313_v44  ;;  %v1848_v7 = vmul.f32 %v6018_v40, %v6313_v44  ;;  %v6515_v17 = vpop.permute.xlu1 %1272 }
 0x22d   : > { %v6475_v46 = vmax.f32 %v2232_v12, %v2233_v63  ;;  %v6481_v18 = vadd.f32 %v1978_v50, %v1910_v25  ;;  %v6485_v1 = vmul.f32 %v6021_v41, %v6313_v44  ;;  %v2170_v26 = vadd.f32 %v6222_v54, %v6309_v23 }
 0x22e   : > { %v2171_v22 = vadd.f32 %v6222_v54, %v6334_v60  ;;  %v1645_v36 = vadd.f32 %v1581_v56, %v1445_v47  ;;  %v1582_v39 = vmul.f32 %v6005_v30, %v6342_v48  ;;  %v1718_v44 = vmul.f32 %v6011_v34, %v6342_v48 }
 0x22f   : > { %v5209_v58 = vpack.i.bf16 %v6475_v46, %v6423_v27  ;;  %v1781_v10 = vadd.f32 %v1717_v49, %v1644_v35  ;;  %v2234_v55 = vmax.f32 %v2170_v26, 0.0  ;;  %v2103_v60 = vmul.f32 %v6127_v45, %v6350_v51  ;;  %v6525_v35 = vpop.permute.xlu0 %1067 }
 0x230   : > { %v2235_v23 = vmax.f32 %v2171_v22, 0.0  ;;  %v1912_v62 = vadd.f32 %v1848_v7, %v1780_v59  ;;  %v2172_v3 = vadd.f32 %v6222_v54, %v6353_v19  ;;  %v1583_v47 = vmul.f32 %v6005_v30, %v6389_v5 }
 0x231   : > { %5210 = vrot.lane.b32.xlu1 %v5209_v58, %s5643_s19  ;;  %v1719_v32 = vmul.f32 %v6011_v34, %v6389_v5  ;;  %v1447_v6 = vmul.f32 %v6008_v31, %v6342_v48  ;;  %v1849_v0 = vmul.f32 %v6018_v40, %v6342_v48  ;;  %v2173_v51 = vadd.f32 %v6222_v54, %v2103_v60  ;;  %v1075_v60 = vpop.permute.xlu1 %1074 }
 0x232   : > { %v6512_v4 = vmax.f32 %v2234_v55, %v2235_v23  ;;  %v1646_v19 = vadd.f32 %v1582_v39, %v1446_v11  ;;  %v1782_v61 = vadd.f32 %v1718_v44, %v1645_v36  ;;  %v1980_v13 = vmul.f32 %v6021_v41, %v6342_v48 }
 0x233   : > { %v1850_v50 = vmul.f32 %v6018_v40, %v6389_v5  ;;  %v2236_v63 = vmax.f32 %v2172_v3, 0.0  ;;  %v2237_v12 = vmax.f32 %v2173_v51, 0.0  ;;  %v2104_v56 = vmul.f32 %v6127_v45, %v6361_v15 }
 0x234   : > { %v5219_v25 = vpack.i.bf16 %v6512_v4, %v6475_v46  ;;  %v1647_v59 = vadd.f32 %v1583_v47, %v1447_v6  ;;  %v1783_v8 = vadd.f32 %v1719_v32, %v1646_v19  ;;  %v2105_v49 = vmul.f32 %v6127_v45, %v6363_v38  ;;  %v7646_v6 = vld [vmem:[#allocation18_spill] sm:$0xff] }
 0x235   : > { %v1584_v48 = vmul.f32 %v6005_v30, %v6404_v53  ;;  %v6532_v11 = vmax.f32 %v2236_v63, %v2237_v12  ;;  %v2174_v7 = vadd.f32 %v6222_v54, %v2104_v56  ;;  %v1720_v26 = vmul.f32 %v6011_v34, %v6404_v53 }
 0x236   : > { %5220 = vrot.lane.b32.xlu1 %v5219_v25, %s5644_s25  ;;  %v1851_v15 = vmul.f32 %v6018_v40, %v6404_v53  ;;  %v1913_v22 = vadd.f32 %v1849_v0, %v1781_v10  ;;  %v1448_v58 = vmul.f32 %v6008_v31, %v6389_v5  ;;  %v2175_v38 = vadd.f32 %v6222_v54, %v2105_v49 }
 0x237   : > { %v1449_v36 = vmul.f32 %v6008_v31, %v6404_v53  ;;  %v5214_v39 = vpack.i.bf16 %v6532_v11, %v6512_v4  ;;  %v1914_v44 = vadd.f32 %v1850_v50, %v1782_v61  ;;  %v1981_v55 = vmul.f32 %v6021_v41, %v6389_v5  ;;  %v6556_v5 = vpop.permute.xlu0 %1081 }
 0x238   : > { %v2238_v23 = vmax.f32 %v2174_v7, 0.0  ;;  %v2239_v3 = vmax.f32 %v2175_v38, 0.0  ;;  %v1648_v47 = vadd.f32 %v1584_v48, %v1448_v58  ;;  %v1982_v10 = vmul.f32 %v6021_v41, %v6404_v53 }
 0x239   : > { %v1585_v32 = vmul.f32 %v6005_v30, %v6429_v37  ;;  %5215 = vrot.lane.b32.xlu0 %v5214_v39, %s5643_s19  ;;  %v1784_v0 = vadd.f32 %v1720_v26, %v1647_v59  ;;  %v1915_v51 = vadd.f32 %v1851_v15, %v1783_v8  ;;  %v1721_v19 = vmul.f32 %v6011_v34, %v6429_v37 }
 0x23a   : > { %1387 = vperm.xlu1 %5188, %v7646_v6   ;;  %v6558_v61 = vmax.f32 %v2238_v23, %v2239_v3  ;;  %v1852_v53 = vmul.f32 %v6018_v40, %v6429_v37  ;;  %v1983_v25 = vmul.f32 %v6021_v41, %v6429_v37  ;;  %v6566_v63 = vmul.f32 %v6127_v45, %v6473_v52 }
 0x23b   : > { %v1649_v50 = vadd.f32 %v1585_v32, %v1449_v36  ;;  %v2042_v12 = vadd.f32 %v6485_v1, %v6467_v43  ;;  %v2043_v56 = vadd.f32 %v1980_v13, %v1912_v62  ;;  %v1586_v59 = vmul.f32 %v6005_v30, %v6444_v16  ;;  %v1089_v1 = vpop.permute.xlu1 %1088 }
 0x23c   : > { %v5224_v8 = vpack.i.bf16 %v6558_v61, %v6532_v11  ;;  %v1785_v49 = vadd.f32 %v1721_v19, %v1648_v47  ;;  %v1722_v48 = vmul.f32 %v6011_v34, %v6444_v16  ;;  %v1853_v7 = vmul.f32 %v6018_v40, %v6444_v16 }
 0x23d   : > { %v2044_v26 = vadd.f32 %v1981_v55, %v1913_v22  ;;  %v2045_v52 = vadd.f32 %v1982_v10, %v1914_v44  ;;  %v1450_v15 = vmul.f32 %v6008_v31, %v6429_v37  ;;  %v1451_v43 = vmul.f32 %v6008_v31, %v6444_v16 }
 0x23e   : > { %1397 = vperm.xlu1 %5188, %v6491_v2   ;;  %5225 = vrot.lane.b32.xlu0 %v5224_v8, %s5644_s25  ;;  %v1916_v62 = vadd.f32 %v1852_v53, %v1784_v0  ;;  %v2046_v13 = vadd.f32 %v1983_v25, %v1915_v51  ;;  %v1786_v58 = vadd.f32 %v1722_v48, %v1649_v50  ;;  %v1278_v2 = vpop.permute.xlu0 %1277 }
 0x23f   : > { %v1984_v38 = vmul.f32 %v6021_v41, %v6444_v16  ;;  %v1650_v36 = vadd.f32 %v1586_v59, %v1450_v15  ;;  %v1587_v22 = vmul.f32 %v6005_v30, %v6471_v29  ;;  %v1723_v37 = vmul.f32 %v6011_v34, %v6471_v29  ;;  %v1096_v25 = vpop.permute.xlu1 %1095 }
 0x240   : > { %v1854_v39 = vmul.f32 %v6018_v40, %v6471_v29  ;;  %v6594_v44 = vmul.f32 %v6127_v45, %v6481_v18  ;;  %v6597_v55 = vmul.f32 %v6127_v45, %v2042_v12  ;;  %v1917_v23 = vadd.f32 %v1853_v7, %v1785_v49 }
 0x241   : > { %v1985_v16 = vmul.f32 %v6021_v41, %v6471_v29  ;;  %v6602_v3 = vmul.f32 %v6127_v45, %v2043_v56  ;;  %v6605_v47 = vmul.f32 %v6127_v45, %v2044_v26  ;;  %v1986_v32 = vmul.f32 %v6021_v41, %v6515_v17 }
 0x242   : > { %v1918_v10 = vadd.f32 %v1854_v39, %v1786_v58  ;;  %1407 = vperm.xlu1 %5188, %v1075_v60   ;;  %v6610_v18 = vmul.f32 %v6127_v45, %v2045_v52  ;;  %1392 = vperm.xlu0 %5187, %v6358_v28   ;;  %v2047_v6 = vadd.f32 %v1984_v38, %v1916_v62  ;;  %v1283_v7 = vpop.permute.xlu0 %1282 }
 0x243   : > { %v1588_v0 = vmul.f32 %v6005_v30, %v6515_v17  ;;  %v1724_v51 = vmul.f32 %v6011_v34, %v6515_v17  ;;  %v6618_v19 = vmul.f32 %v6127_v45, %v2046_v13  ;;  %v1452_v50 = vmul.f32 %v6008_v31, %v6471_v29  ;;  %v1288_v39 = vpop.permute.xlu1 %1287 }
 0x244   : > { %v1651_v53 = vadd.f32 %v1587_v22, %v1451_v43  ;;  %v1787_v60 = vadd.f32 %v1723_v37, %v1650_v36  ;;  %v2048_v12 = vadd.f32 %v1985_v16, %v1917_v23  ;;  %v1855_v28 = vmul.f32 %v6018_v40, %v6515_v17 }
 0x245   : > { %v1589_v56 = vmul.f32 %v6005_v30, %v1278_v2  ;;  %v2176_v59 = vadd.f32 %v6222_v54, %v6412_v21  ;;  %v1453_v8 = vmul.f32 %v6008_v31, %v6515_v17  ;;  %v2049_v49 = vadd.f32 %v1986_v32, %v1918_v10 }
 0x246   : > { %1547 = vperm.xlu1 %5188, %v1089_v1   ;;  %v1725_v48 = vmul.f32 %v6011_v34, %v1278_v2  ;;  %v2177_v29 = vadd.f32 %v6222_v54, %v6421_v57  ;;  %v6633_v26 = vmul.f32 %v6127_v45, %v2047_v6  ;;  %v1652_v52 = vadd.f32 %v1588_v0, %v1452_v50 }
 0x247   : > { %v1788_v15 = vadd.f32 %v1724_v51, %v1651_v53  ;;  %1402 = vperm.xlu0 %5187, %v6525_v35   ;;  %v1856_v21 = vmul.f32 %v6018_v40, %v1278_v2  ;;  %v1454_v43 = vmul.f32 %v6008_v31, %v1278_v2  ;;  %v1987_v17 = vmul.f32 %v6021_v41, %v1278_v2 }
 0x248   : > { %v2240_v1 = vmax.f32 %v2176_v59, 0.0  ;;  %v2241_v62 = vmax.f32 %v2177_v29, 0.0  ;;  %v6640_v13 = vmul.f32 %v6127_v45, %v2048_v12  ;;  %v1919_v57 = vadd.f32 %v1855_v28, %v1787_v60 }
 0x249   : > { %v1653_v58 = vadd.f32 %v1589_v56, %v1453_v8  ;;  %v1726_v38 = vmul.f32 %v6011_v34, %v1283_v7  ;;  %v6644_v36 = vmul.f32 %v6127_v45, %v2049_v49  ;;  %v1789_v22 = vadd.f32 %v1725_v48, %v1652_v52 }
 0x24a   : > { %v6646_v35 = vmax.f32 %v2240_v1, %v2241_v62  ;;  %v1988_v37 = vmul.f32 %v6021_v41, %v1283_v7  ;;  %v1920_v2 = vadd.f32 %v1856_v21, %v1788_v15  ;;  %v1455_v23 = vmul.f32 %v6008_v31, %v1283_v7 }
 0x24b   : > { %1412 = vperm.xlu0 %5187, %v6556_v5   ;;  %v1590_v16 = vmul.f32 %v6005_v30, %v1283_v7  ;;  %v1857_v10 = vmul.f32 %v6018_v40, %v1283_v7  ;;  %v2050_v32 = vadd.f32 %v1987_v17, %v1919_v57  ;;  %v2178_v0 = vadd.f32 %v6222_v54, %v6457_v20  ;;  %v1293_v20 = vpop.permute.xlu0 %1292  ;;  %v1298_v57 = vpop.permute.xlu1 %1297 }
 0x24c   : > { %v5229_v6 = vpack.i.bf16 %v6646_v35, %v6558_v61  ;;  %v2179_v51 = vadd.f32 %v6222_v54, %v6460_v42  ;;  %v1790_v50 = vadd.f32 %v1726_v38, %v1653_v58  ;;  %v1591_v5 = vmul.f32 %v6005_v30, %v1288_v39 }
 0x24d   : > { %v1858_v53 = vmul.f32 %v6018_v40, %v1288_v39  ;;  %v2180_v60 = vadd.f32 %v6222_v54, %v6566_v63  ;;  %v2051_v12 = vadd.f32 %v1988_v37, %v1920_v2  ;;  %v2242_v28 = vmax.f32 %v2178_v0, 0.0 }
 0x24e   : > { %5230 = vrot.lane.b32.xlu1 %v5229_v6, %s5643_s19  ;;  %v2243_v56 = vmax.f32 %v2179_v51, 0.0  ;;  %v2181_v59 = vadd.f32 %v6222_v54, %v6594_v44  ;;  %v1654_v8 = vadd.f32 %v1590_v16, %v1454_v43  ;;  %v1921_v42 = vadd.f32 %v1857_v10, %v1789_v22 }
 0x24f   : > { %1684 = vperm.xlu0 %5187, %v1096_v25   ;;  %v1727_v49 = vmul.f32 %v6011_v34, %v1288_v39  ;;  %v1989_v48 = vmul.f32 %v6021_v41, %v1288_v39  ;;  %v6669_v29 = vmul.f32 %v6127_v45, %v2050_v32  ;;  %v2244_v7 = vmax.f32 %v2180_v60, 0.0  ;;  %v1303_v10 = vpop.permute.xlu0 %1302 }
 0x250   : > { %v6671_v63 = vmax.f32 %v2242_v28, %v2243_v56  ;;  %v2245_v52 = vmax.f32 %v2181_v59, 0.0  ;;  %v1456_v15 = vmul.f32 %v6008_v31, %v1288_v39  ;;  %v1922_v21 = vadd.f32 %v1858_v53, %v1790_v50 }
 0x251   : > { %v1592_v44 = vmul.f32 %v6005_v30, %v1293_v20  ;;  %v1990_v25 = vmul.f32 %v6021_v41, %v1293_v20  ;;  %v6677_v43 = vmul.f32 %v6127_v45, %v2051_v12  ;;  %v1655_v17 = vadd.f32 %v1591_v5, %v1455_v23 }
 0x252   : > { %v5239_v1 = vpack.i.bf16 %v6671_v63, %v6646_v35  ;;  %v6681_v62 = vmax.f32 %v2244_v7, %v2245_v52  ;;  %v1791_v58 = vadd.f32 %v1727_v49, %v1654_v8  ;;  %v2052_v38 = vadd.f32 %v1989_v48, %v1921_v42  ;;  %v1308_v8 = vpop.permute.xlu1 %1307 }
 0x253   : > { %v1457_v22 = vmul.f32 %v6008_v31, %v1293_v20  ;;  %v1728_v37 = vmul.f32 %v6011_v34, %v1293_v20  ;;  %v1859_v2 = vmul.f32 %v6018_v40, %v1293_v20  ;;  %v2182_v23 = vadd.f32 %v6222_v54, %v6597_v55 }
 0x254   : > { %5240 = vrot.lane.b32.xlu1 %v5239_v1, %s5644_s25  ;;  %v5234_v39 = vpack.i.bf16 %v6681_v62, %v6671_v63  ;;  %v2183_v16 = vadd.f32 %v6222_v54, %v6602_v3  ;;  %v1656_v32 = vadd.f32 %v1592_v44, %v1456_v15  ;;  %v2053_v6 = vadd.f32 %v1990_v25, %v1922_v21 }
 0x255   : > { %v1593_v0 = vmul.f32 %v6005_v30, %v1298_v57  ;;  %v2184_v51 = vadd.f32 %v6222_v54, %v6605_v47  ;;  %v1729_v50 = vmul.f32 %v6011_v34, %v1298_v57  ;;  %v2185_v5 = vadd.f32 %v6222_v54, %v6610_v18 }
 0x256   : > { %5235 = vrot.lane.b32.xlu0 %v5234_v39, %s5643_s19  ;;  %v2246_v53 = vmax.f32 %v2182_v23, 0.0  ;;  %v2247_v55 = vmax.f32 %v2183_v16, 0.0  ;;  %v6701_v60 = vmul.f32 %v6127_v45, %v2052_v38  ;;  %v1792_v3 = vadd.f32 %v1728_v37, %v1655_v17 }
 0x257   : > { %v1458_v12 = vmul.f32 %v6008_v31, %v1298_v57  ;;  %v1594_v28 = vmul.f32 %v6005_v30, %v1303_v10  ;;  %v1860_v56 = vmul.f32 %v6018_v40, %v1298_v57  ;;  %v2248_v47 = vmax.f32 %v2184_v51, 0.0 }
 0x258   : > { %v2249_v59 = vmax.f32 %v2185_v5, 0.0  ;;  %v6706_v20 = vmax.f32 %v2246_v53, %v2247_v55  ;;  %v1923_v42 = vadd.f32 %v1859_v2, %v1791_v58  ;;  %v1657_v49 = vadd.f32 %v1593_v0, %v1457_v22  ;;  %v1313_v22 = vpop.permute.xlu0 %1312  ;;  %v1318_v5 = vpop.permute.xlu1 %1317 }
 0x259   : > { %v1991_v18 = vmul.f32 %v6021_v41, %v1298_v57  ;;  %v1730_v48 = vmul.f32 %v6011_v34, %v1303_v10  ;;  %v6711_v7 = vmul.f32 %v6127_v45, %v2053_v6  ;;  %v1793_v52 = vadd.f32 %v1729_v50, %v1656_v32 }
 0x25a   : > { %v6713_v15 = vmax.f32 %v2248_v47, %v2249_v59  ;;  %v5244_v21 = vpack.i.bf16 %v6706_v20, %v6681_v62  ;;  %v1459_v44 = vmul.f32 %v6008_v31, %v1303_v10  ;;  %v1658_v25 = vadd.f32 %v1594_v28, %v1458_v12 }
 0x25b   : > { %v1595_v17 = vmul.f32 %v6005_v30, %v1308_v8  ;;  %v1731_v1 = vmul.f32 %v6011_v34, %v1308_v8  ;;  %v1924_v58 = vadd.f32 %v1860_v56, %v1792_v3  ;;  %v2186_v45 = vadd.f32 %v6222_v54, %v6618_v19 }
 0x25c   : > { %v5249_v57 = vpack.i.bf16 %v6713_v15, %v6706_v20  ;;  %5245 = vrot.lane.b32.xlu0 %v5244_v21, %s5644_s25  ;;  %v2187_v38 = vadd.f32 %v6222_v54, %v6633_v26  ;;  %v1794_v37 = vadd.f32 %v1730_v48, %v1657_v49  ;;  %v1861_v39 = vmul.f32 %v6018_v40, %v1303_v10 }
 0x25d   : > { %v1992_v2 = vmul.f32 %v6021_v41, %v1303_v10  ;;  %v2188_v23 = vadd.f32 %v6222_v54, %v6640_v13  ;;  %v1862_v16 = vmul.f32 %v6018_v40, %v1308_v8  ;;  %v2250_v32 = vmax.f32 %v2186_v45, 0.0 }
 0x25e   : > { %5250 = vrot.lane.b32.xlu1 %v5249_v57, %s5643_s19  ;;  %v2251_v6 = vmax.f32 %v2187_v38, 0.0  ;;  %v2189_v19 = vadd.f32 %v6222_v54, %v6644_v36  ;;  %v2054_v0 = vadd.f32 %v1991_v18, %v1923_v42  ;;  %v1659_v26 = vadd.f32 %v1595_v17, %v1459_v44  ;;  %v1328_v38 = vpop.permute.xlu1 %1327 }
 0x25f   : > { %v1795_v51 = vadd.f32 %v1731_v1, %v1658_v25  ;;  %v1732_v50 = vmul.f32 %v6011_v34, %v1313_v22  ;;  %v2252_v10 = vmax.f32 %v2188_v23, 0.0  ;;  %v1863_v13 = vmul.f32 %v6018_v40, %v1313_v22 }
 0x260   : > { %v6736_v53 = vmax.f32 %v2250_v32, %v2251_v6  ;;  %v2253_v55 = vmax.f32 %v2189_v19, 0.0  ;;  %v1925_v3 = vadd.f32 %v1861_v39, %v1793_v52  ;;  %v2055_v12 = vadd.f32 %v1992_v2, %v1924_v58  ;;  %v1323_v52 = vpop.permute.xlu0 %1322 }
 0x261   : > { %v1460_v28 = vmul.f32 %v6008_v31, %v1308_v8  ;;  %v1596_v56 = vmul.f32 %v6005_v30, %v1313_v22  ;;  %v1926_v47 = vadd.f32 %v1862_v16, %v1794_v37  ;;  %v1993_v36 = vmul.f32 %v6021_v41, %v1308_v8  ;;  %v6762_v37 = vld [vmem:[%s7645_s26] ss:$0 sm:$0xff] }
 0x262   : > { %v5259_v59 = vpack.i.bf16 %v6736_v53, %v6713_v15  ;;  %v6744_v42 = vmax.f32 %v2252_v10, %v2253_v55  ;;  %v1796_v49 = vadd.f32 %v1732_v50, %v1659_v26  ;;  %v1927_v18 = vadd.f32 %v1863_v13, %v1795_v51 }
 0x263   : > { %v1994_v48 = vmul.f32 %v6021_v41, %v1313_v22  ;;  %v1864_v21 = vmul.f32 %v6018_v40, %v1318_v5  ;;  %v1995_v25 = vmul.f32 %v6021_v41, %v1318_v5  ;;  %v2190_v8 = vadd.f32 %v6222_v54, %v6669_v29 }
 0x264   : > { %5260 = vrot.lane.b32.xlu1 %v5259_v59, %s5644_s25  ;;  %v5254_v44 = vpack.i.bf16 %v6744_v42, %v6736_v53  ;;  %v2191_v17 = vadd.f32 %v6222_v54, %v6677_v43  ;;  %v1461_v1 = vmul.f32 %v6008_v31, %v1313_v22  ;;  %v1660_v58 = vadd.f32 %v1596_v56, %v1460_v28  ;;  %v1333_v13 = vpop.permute.xlu0 %1332 }
 0x265   : > { %v1597_v57 = vmul.f32 %v6005_v30, %v1318_v5  ;;  %v1733_v45 = vmul.f32 %v6011_v34, %v1318_v5  ;;  %v2124_v39 = vmul.f32 %v6762_v37, %v2054_v0  ;;  %v2125_v29 = vmul.f32 %v6762_v37, %v2055_v12 }
 0x266   : > { %5255 = vrot.lane.b32.xlu0 %v5254_v44, %s5643_s19  ;;  %v2254_v43 = vmax.f32 %v2190_v8, 0.0  ;;  %v2255_v2 = vmax.f32 %v2191_v17, 0.0  ;;  %v2056_v22 = vadd.f32 %v1993_v36, %v1925_v3  ;;  %v1928_v23 = vadd.f32 %v1864_v21, %v1796_v49  ;;  %v1338_v49 = vpop.permute.xlu1 %1337 }
 0x267   : > { %v1598_v16 = vmul.f32 %v6005_v30, %v1323_v52  ;;  %v1996_v32 = vmul.f32 %v6021_v41, %v1323_v52  ;;  %v2057_v6 = vadd.f32 %v1994_v48, %v1926_v47  ;;  %v1462_v19 = vmul.f32 %v6008_v31, %v1318_v5 }
 0x268   : > { %v2058_v26 = vadd.f32 %v1995_v25, %v1927_v18  ;;  %v6770_v51 = vmax.f32 %v2254_v43, %v2255_v2  ;;  %v1661_v50 = vadd.f32 %v1597_v57, %v1461_v1  ;;  %v1797_v0 = vadd.f32 %v1733_v45, %v1660_v58 }
 0x269   : > { %v1463_v10 = vmul.f32 %v6008_v31, %v1323_v52  ;;  %v1734_v55 = vmul.f32 %v6011_v34, %v1323_v52  ;;  %v1865_v12 = vmul.f32 %v6018_v40, %v1323_v52  ;;  %v1599_v28 = vmul.f32 %v6005_v30, %v1328_v38 }
 0x26a   : > { %v5264_v3 = vpack.i.bf16 %v6770_v51, %v6744_v42  ;;  %v2192_v5 = vadd.f32 %v6222_v54, %v6701_v60  ;;  %v1662_v56 = vadd.f32 %v1598_v16, %v1462_v19  ;;  %v2059_v47 = vadd.f32 %v1996_v32, %v1928_v23 }
 0x26b   : > { %v1735_v36 = vmul.f32 %v6011_v34, %v1328_v38  ;;  %v2193_v59 = vadd.f32 %v6222_v54, %v6711_v7  ;;  %v2126_v18 = vmul.f32 %v6762_v37, %v2056_v22  ;;  %v2127_v48 = vmul.f32 %v6762_v37, %v2057_v6  ;;  %v1343_v6 = vpop.permute.xlu0 %1342 }
 0x26c   : > { %v6786_v21 = vmul.f32 %v6762_v37, %v2058_v26  ;;  %5265 = vrot.lane.b32.xlu0 %v5264_v3, %s5644_s25  ;;  %v1600_v52 = vmul.f32 %v6005_v30, %v1333_v13  ;;  %v1798_v60 = vadd.f32 %v1734_v55, %v1661_v50  ;;  %v1464_v44 = vmul.f32 %v6008_v31, %v1328_v38 }
 0x26d   : > { %v2256_v25 = vmax.f32 %v2192_v5, 0.0  ;;  %v2257_v8 = vmax.f32 %v2193_v59, 0.0  ;;  %v1929_v17 = vadd.f32 %v1865_v12, %v1797_v0  ;;  %v1663_v1 = vadd.f32 %v1599_v28, %v1463_v10 }
 0x26e   : > { %v1866_v7 = vmul.f32 %v6018_v40, %v1328_v38  ;;  %v1736_v58 = vmul.f32 %v6011_v34, %v1333_v13  ;;  %v6794_v57 = vmul.f32 %v6762_v37, %v2059_v47  ;;  %v1799_v45 = vadd.f32 %v1735_v36, %v1662_v56 }
 0x26f   : > { %v1997_v43 = vmul.f32 %v6021_v41, %v1328_v38  ;;  %v6797_v2 = vmax.f32 %v2256_v25, %v2257_v8  ;;  %v1465_v22 = vmul.f32 %v6008_v31, %v1333_v13  ;;  %v1664_v23 = vadd.f32 %v1600_v52, %v1464_v44  ;;  %v1348_v38 = vpop.permute.xlu1 %1347 }
 0x270   : > { %v1867_v16 = vmul.f32 %v6018_v40, %v1333_v13  ;;  %v1601_v32 = vmul.f32 %v6005_v30, %v1338_v49  ;;  %v1737_v26 = vmul.f32 %v6011_v34, %v1338_v49  ;;  %v2194_v50 = vadd.f32 %v6222_v54, %v2124_v39 }
 0x271   : > { %v5269_v19 = vpack.i.bf16 %v6797_v2, %v6770_v51  ;;  %v2195_v0 = vadd.f32 %v6222_v54, %v2125_v29  ;;  %v1930_v10 = vadd.f32 %v1866_v7, %v1798_v60  ;;  %v1800_v55 = vadd.f32 %v1736_v58, %v1663_v1 }
 0x272   : > { %v1998_v3 = vmul.f32 %v6021_v41, %v1333_v13  ;;  %v1868_v12 = vmul.f32 %v6018_v40, %v1338_v49  ;;  %v1466_v28 = vmul.f32 %v6008_v31, %v1338_v49  ;;  %v2258_v5 = vmax.f32 %v2194_v50, 0.0 }
 0x273   : > { %5270 = vrot.lane.b32.xlu1 %v5269_v19, %s5643_s19  ;;  %v2259_v56 = vmax.f32 %v2195_v0, 0.0  ;;  %v1602_v47 = vmul.f32 %v6005_v30, %v1343_v6  ;;  %v1931_v36 = vadd.f32 %v1867_v16, %v1799_v45  ;;  %v1665_v59 = vadd.f32 %v1601_v32, %v1465_v22  ;;  %v6825_v45 = vld [vmem:[%s7595_s3] ss:$0 sm:$0xff] }
 0x274   : > { %v1999_v39 = vmul.f32 %v6021_v41, %v1338_v49  ;;  %v1738_v54 = vmul.f32 %v6011_v34, %v1343_v6  ;;  %v1801_v29 = vadd.f32 %v1737_v26, %v1664_v23  ;;  %v1869_v60 = vmul.f32 %v6018_v40, %v1343_v6  ;;  %v1353_v23 = vpop.permute.xlu0 %1352 }
 0x275   : > { %v6814_v52 = vmax.f32 %v2258_v5, %v2259_v56  ;;  %v1666_v13 = vadd.f32 %v1602_v47, %v1466_v28  ;;  %v2060_v44 = vadd.f32 %v1997_v43, %v1929_v17  ;;  %v2061_v25 = vadd.f32 %v1998_v3, %v1930_v10  ;;  %v1358_v17 = vpop.permute.xlu1 %1357 }
 0x276   : > { %v1932_v8 = vadd.f32 %v1868_v12, %v1800_v55  ;;  %v1739_v1 = vmul.f32 %v6011_v34, %v1348_v38  ;;  %v1467_v58 = vmul.f32 %v6008_v31, %v1343_v6  ;;  %v1603_v49 = vmul.f32 %v6005_v30, %v1348_v38 }
 0x277   : > { %v5279_v7 = vpack.i.bf16 %v6814_v52, %v6797_v2  ;;  %v2196_v22 = vadd.f32 %v6825_v45, %v2126_v18  ;;  %v2062_v43 = vadd.f32 %v1999_v39, %v1931_v36  ;;  %v1802_v16 = vadd.f32 %v1738_v54, %v1665_v59 }
 0x278   : > { %v2000_v32 = vmul.f32 %v6021_v41, %v1343_v6  ;;  %v2197_v19 = vadd.f32 %v6825_v45, %v2127_v48  ;;  %v1933_v26 = vadd.f32 %v1869_v60, %v1801_v29  ;;  %v1803_v50 = vadd.f32 %v1739_v1, %v1666_v13 }
 0x279   : > { %5280 = vrot.lane.b32.xlu1 %v5279_v7, %s5644_s25  ;;  %v1870_v0 = vmul.f32 %v6018_v40, %v1348_v38  ;;  %v2001_v10 = vmul.f32 %v6021_v41, %v1348_v38  ;;  %v2130_v55 = vmul.f32 %v6762_v37, %v2060_v44  ;;  %v2260_v3 = vmax.f32 %v2196_v22, 0.0  ;;  %v1363_v60 = vpop.permute.xlu1 %1362 }
 0x27a   : > { %v2261_v18 = vmax.f32 %v2197_v19, 0.0  ;;  %v1871_v12 = vmul.f32 %v6018_v40, %v1353_v23  ;;  %v2131_v28 = vmul.f32 %v6762_v37, %v2061_v25  ;;  %v1667_v5 = vadd.f32 %v1603_v49, %v1467_v58 }
 0x27b   : > { %v1604_v6 = vmul.f32 %v6005_v30, %v1353_v23  ;;  %v1740_v48 = vmul.f32 %v6011_v34, %v1353_v23  ;;  %v2132_v56 = vmul.f32 %v6762_v37, %v2062_v43  ;;  %v2063_v47 = vadd.f32 %v2000_v32, %v1932_v8 }
 0x27c   : > { %v1468_v36 = vmul.f32 %v6008_v31, %v1348_v38  ;;  %v6840_v59 = vmax.f32 %v2260_v3, %v2261_v18  ;;  %v1934_v39 = vadd.f32 %v1870_v0, %v1802_v16  ;;  %v2064_v54 = vadd.f32 %v2001_v10, %v1933_v26  ;;  %v6860_v0 = vpop.permute.xlu0 %1372 }
 0x27d   : > { %v1935_v29 = vadd.f32 %v1871_v12, %v1803_v50  ;;  %v2002_v13 = vmul.f32 %v6021_v41, %v1353_v23  ;;  %v2003_v25 = vmul.f32 %v6021_v41, %v1358_v17  ;;  %v2198_v1 = vadd.f32 %v6825_v45, %v6786_v21 }
 0x27e   : > { %v5274_v44 = vpack.i.bf16 %v6840_v59, %v6814_v52  ;;  %v2199_v8 = vadd.f32 %v6825_v45, %v6794_v57  ;;  %v1469_v38 = vmul.f32 %v6008_v31, %v1353_v23  ;;  %v1668_v7 = vadd.f32 %v1604_v6, %v1468_v36 }
 0x27f   : > { %v1804_v58 = vadd.f32 %v1740_v48, %v1667_v5  ;;  %v1872_v49 = vmul.f32 %v6018_v40, %v1358_v17  ;;  %v1605_v22 = vmul.f32 %v6005_v30, %v1358_v17  ;;  %v1741_v43 = vmul.f32 %v6011_v34, %v1358_v17  ;;  %v6867_v48 = vpop.permute.xlu1 %1367 }
 0x280   : > { %5275 = vrot.lane.b32.xlu0 %v5274_v44, %s5643_s19  ;;  %v2262_v16 = vmax.f32 %v2198_v1, 0.0  ;;  %v2263_v32 = vmax.f32 %v2199_v8, 0.0  ;;  %v2133_v19 = vmul.f32 %v6762_v37, %v2063_v47  ;;  %v2134_v21 = vmul.f32 %v6762_v37, %v2064_v54 }
 0x281   : > { %v2065_v26 = vadd.f32 %v2002_v13, %v1934_v39  ;;  %v1470_v57 = vmul.f32 %v6008_v31, %v1358_v17  ;;  %v2066_v23 = vadd.f32 %v2003_v25, %v1935_v29  ;;  %v1606_v10 = vmul.f32 %v6005_v30, %v1363_v60 }
 0x282   : > { %v6858_v50 = vmax.f32 %v2262_v16, %v2263_v32  ;;  %v1742_v3 = vmul.f32 %v6011_v34, %v1363_v60  ;;  %v1936_v18 = vadd.f32 %v1872_v49, %v1804_v58  ;;  %v2004_v12 = vmul.f32 %v6021_v41, %v1363_v60 }
 0x283   : > { %v2200_v5 = vadd.f32 %v6825_v45, %v2130_v55  ;;  %v2201_v6 = vadd.f32 %v6825_v45, %v2131_v28  ;;  %v1669_v47 = vadd.f32 %v1605_v22, %v1469_v38  ;;  %v1805_v17 = vadd.f32 %v1741_v43, %v1668_v7 }
 0x284   : > { %v5284_v36 = vpack.i.bf16 %v6858_v50, %v6840_v59  ;;  %v1873_v39 = vmul.f32 %v6018_v40, %v1363_v60  ;;  %v2135_v54 = vmul.f32 %v6762_v37, %v2065_v26  ;;  %v1744_v29 = vmul.f32 %v6011_v34, %v6860_v0 }
 0x285   : > { %v2264_v13 = vmax.f32 %v2200_v5, 0.0  ;;  %v2265_v44 = vmax.f32 %v2201_v6, 0.0  ;;  %v2136_v55 = vmul.f32 %v6762_v37, %v2066_v23  ;;  %v1471_v28 = vmul.f32 %v6008_v31, %v1363_v60  ;;  %v6892_v23 = vpop.permute.xlu1 %1377 }
 0x286   : > { %5285 = vrot.lane.b32.xlu0 %v5284_v36, %s5644_s25  ;;  %v1670_v25 = vadd.f32 %v1606_v10, %v1470_v57  ;;  %v1806_v1 = vadd.f32 %v1742_v3, %v1669_v47  ;;  %v2067_v8 = vadd.f32 %v2004_v12, %v1936_v18  ;;  %v1607_v7 = vmul.f32 %v6005_v30, %v6867_v48  ;;  %v6898_v18 = vpop.permute.xlu0 %1382 }
 0x287   : > { %v6878_v38 = vmax.f32 %v2264_v13, %v2265_v44  ;;  %v1743_v58 = vmul.f32 %v6011_v34, %v6867_v48  ;;  %v1937_v49 = vadd.f32 %v1873_v39, %v1805_v17  ;;  %v1874_v22 = vmul.f32 %v6018_v40, %v6867_v48 }
 0x288   : > { %v2005_v43 = vmul.f32 %v6021_v41, %v6867_v48  ;;  %v2202_v60 = vadd.f32 %v6825_v45, %v2132_v56  ;;  %v1671_v32 = vadd.f32 %v1607_v7, %v1471_v28  ;;  %v2203_v57 = vadd.f32 %v6825_v45, %v2133_v19 }
 0x289   : > { %v5289_v16 = vpack.i.bf16 %v6878_v38, %v6858_v50  ;;  %v1807_v26 = vadd.f32 %v1743_v58, %v1670_v25  ;;  %v1875_v10 = vmul.f32 %v6018_v40, %v6860_v0  ;;  %v2006_v3 = vmul.f32 %v6021_v41, %v6860_v0 }
 0x28a   : > { %v1938_v12 = vadd.f32 %v1874_v22, %v1806_v1  ;;  %v2068_v5 = vadd.f32 %v2005_v43, %v1937_v49  ;;  %v2137_v56 = vmul.f32 %v6762_v37, %v2067_v8  ;;  %v2266_v6 = vmax.f32 %v2202_v60, 0.0 }
 0x28b   : > { %5290 = vrot.lane.b32.xlu1 %v5289_v16, %s5643_s19  ;;  %v2267_v47 = vmax.f32 %v2203_v57, 0.0  ;;  %v1808_v17 = vadd.f32 %v1744_v29, %v1671_v32  ;;  %v1876_v39 = vmul.f32 %v6018_v40, %v6892_v23  ;;  %v2008_v13 = vmul.f32 %v6021_v41, %v6898_v18 }
 0x28c   : > { %v2069_v19 = vadd.f32 %v2006_v3, %v1938_v12  ;;  %v2138_v36 = vmul.f32 %v6762_v37, %v2068_v5  ;;  %v1939_v28 = vadd.f32 %v1875_v10, %v1807_v26  ;;  %v2007_v8 = vmul.f32 %v6021_v41, %v6892_v23  ;;  %v5191_v26 = vpop.permute.xlu0 %5190 }
 0x28d   : > { %v6907_v44 = vmax.f32 %v2266_v6, %v2267_v47  ;;  %v1940_v1 = vadd.f32 %v1876_v39, %v1808_v17  ;;  %v2204_v29 = vadd.f32 %v6825_v45, %v2134_v21  ;;  %v2205_v58 = vadd.f32 %v6825_v45, %v2135_v54 }
 0x28e   : > { %v2139_v25 = vmul.f32 %v6762_v37, %v2069_v19  ;;  %v2206_v49 = vadd.f32 %v6825_v45, %v2136_v55  ;;  %v2207_v22 = vadd.f32 %v6825_v45, %v2137_v56  ;;  %v2070_v43 = vadd.f32 %v2007_v8, %v1939_v28  ;;  %v5201_v12 = vpop.permute.xlu1 %5200 }
 0x28f   : > { %v5299_v7 = vpack.i.bf16 %v6907_v44, %v6878_v38  ;;  %v2071_v60 = vadd.f32 %v2008_v13, %v1940_v1  ;;  %v2268_v16 = vmax.f32 %v2204_v29, 0.0  ;;  %v2208_v32 = vadd.f32 %v6825_v45, %v2138_v36 }
 0x290   : > { %v2269_v57 = vmax.f32 %v2205_v58, 0.0  ;;  %v2270_v10 = vmax.f32 %v2206_v49, 0.0  ;;  %v2271_v21 = vmax.f32 %v2207_v22, 0.0  ;;  %v2209_v3 = vadd.f32 %v6825_v45, %v2139_v25 }
 0x291   : > { %5300 = vrot.lane.b32.xlu1 %v5299_v7, %s5644_s25  ;;  %v2140_v54 = vmul.f32 %v6762_v37, %v2070_v43  ;;  %v2141_v55 = vmul.f32 %v6762_v37, %v2071_v60  ;;  %v2272_v5 = vmax.f32 %v2208_v32, 0.0  ;;  %v5192_v17 = vunpack.i.l.bf16 %v5191_v26 }
 0x292   : > { %v6923_v56 = vmax.f32 %v2268_v16, %v2269_v57  ;;  %v6925_v6 = vmax.f32 %v2270_v10, %v2271_v21  ;;  %v2273_v47 = vmax.f32 %v2209_v3, 0.0  ;;  %v5193_v39 = vunpack.i.h.bf16 %v5191_v26 }
 0x293   : > { %v2210_v19 = vadd.f32 %v6825_v45, %v2140_v54  ;;  %v2211_v36 = vadd.f32 %v6825_v45, %v2141_v55  ;;  %v5202_v13 = vunpack.i.l.bf16 %v5201_v12  ;;  %v5203_v1 = vunpack.i.h.bf16 %v5201_v12  ;;  %v5196_v8 = vpop.permute.xlu0 %5195 }
 0x294   : > { %v5294_v28 = vpack.i.bf16 %v6923_v56, %v6907_v44  ;;  %v6931_v25 = vmax.f32 %v2272_v5, %v2273_v47  ;;  %v5304_v58 = vpack.i.bf16 %v6925_v6, %v6923_v56  ;;  %v2557_v22 = vsel %vm2556_vm0, 0.0, %v5192_v17 }
 0x295   : > { %v2274_v29 = vmax.f32 %v2210_v19, 0.0  ;;  %v2275_v7 = vmax.f32 %v2211_v36, 0.0  ;;  %v2558_v60 = vsel %vm2556_vm0, %v6266_v24, %v5193_v39  ;;  %v2590_v16 = vsel %vm2589_vm1, %v2557_v22, %v5202_v13 }
 0x296   : > { %7647 = vst [vmem:[#allocation18_spill] sm:$0xff] %v6931_v25  ;;  %5295 = vrot.lane.b32.xlu0 %v5294_v28, %s5643_s19  ;;  %v5309_v49 = vpack.i.bf16 %v6931_v25, %v6925_v6  ;;  %v5198_v32 = vunpack.i.h.bf16 %v5196_v8  ;;  %v5197_v26 = vunpack.i.l.bf16 %v5196_v8  ;;  %v2591_v57 = vsel %vm2589_vm1, %v2558_v60, %v5203_v1 }
 0x297   : > { %v6939_v43 = vmax.f32 %v2274_v29, %v2275_v7  ;;  %v2622_v21 = vpack.c.bf16 %v2591_v57, %v2590_v16  ;;  %v7622_v12 = vmov 0.0   ;;  %v1472_v22 = vmul.f32 %v6008_v31, %v6867_v48 }
 0x298   : > { %5310 = vrot.lane.b32.xlu1 %v5309_v49, %s5643_s19  ;;  %4909 = vmatprep.subr.bf16.mxu0 %v7622_v12  ;;  %v2560_v55 = vsel %vm2556_vm0, %v6322_v9, %v5198_v32  ;;  %v2559_v5 = vsel %vm2556_vm0, %v6268_v33, %v5197_v26  ;;  %v1608_v60 = vmul.f32 %v6005_v30, %v6860_v0 }
 0x299   : > { %v5319_v10 = vpack.i.bf16 %v6939_v43, %v6931_v25  ;;  %4877 = vmatprep.mubr.msk.bf16.mxu0 %vm2674_vm2, %v2622_v21  ;;  %v1609_v57 = vmul.f32 %v6005_v30, %v6892_v23 }
 0x29a   : > { %5305 = vrot.lane.b32.xlu0 %v5304_v58, %s5644_s25 }
 0x29b   : > { %v5206_v3 = vpop.permute.xlu0 %5205 }
 0x29c   : > { %v5208_v24 = vunpack.i.h.bf16 %v5206_v3  ;;  %v5207_v54 = vunpack.i.l.bf16 %v5206_v3  ;;  %5320 = vrot.lane.b32.xlu1 %v5319_v10, %s5644_s25 }
 0x29e   : > { %v2592_v47 = vsel %vm2589_vm1, %v2559_v5, %v5207_v54  ;;  %v2593_v17 = vsel %vm2589_vm1, %v2560_v55, %v5208_v24  ;;  %v1473_v54 = vmul.f32 %v6008_v31, %v6860_v0 }
 0x29f   : > { %v2623_v19 = vpack.c.bf16 %v2593_v17, %v2592_v47  ;;  %v1877_v47 = vmul.f32 %v6018_v40, %v6898_v18 }
 0x2a1   : > { %4878 = vmatmul.mubr.msk.bf16.vlgmr.msra.gmra.mxu0 %vm2674_vm2, %v2623_v19 }
 0x2a3   : > { %v5211_v36 = vpop.permute.xlu1 %5210 }
 0x2a4   : > { %v5213_v39 = vunpack.i.h.bf16 %v5211_v36  ;;  %v5212_v13 = vunpack.i.l.bf16 %v5211_v36  ;;  %v1474_v36 = vmul.f32 %v6008_v31, %v6892_v23 }
 0x2a6   : > { %v2562_v29 = vsel %vm2556_vm0, %v6423_v27, %v5213_v39  ;;  %v2561_v9 = vsel %vm2556_vm0, %v6367_v14, %v5212_v13  ;;  %v1745_v27 = vmul.f32 %v6011_v34, %v6892_v23  ;;  %v1672_v14 = vadd.f32 %v1608_v60, %v1472_v22 }
 0x2a7   : > { %v1673_v39 = vadd.f32 %v1609_v57, %v1473_v54  ;;  %v1746_v13 = vmul.f32 %v6011_v34, %v6898_v18  ;;  %v7002_v22 = vmul.f32 0.0, %v6021_v41 }
 0x2a8   : > { %v5221_v28 = vpop.permute.xlu1 %5220  ;;  %v1809_v3 = vadd.f32 %v1745_v27, %v1672_v14 }
 0x2a9   : > { %v5223_v1 = vunpack.i.h.bf16 %v5221_v28  ;;  %v5222_v8 = vunpack.i.l.bf16 %v5221_v28 }
 0x2ab   : > { %v2595_v33 = vsel %vm2589_vm1, %v2562_v29, %v5223_v1  ;;  %v2594_v7 = vsel %vm2589_vm1, %v2561_v9, %v5222_v8  ;;  %v5216_v49 = vpop.permute.xlu0 %5215  ;;  %v1475_v9 = vmul.f32 %v6008_v31, %v6898_v18 }
 0x2ac   : > { %v2624_v58 = vpack.c.bf16 %v2595_v33, %v2594_v7  ;;  %v5218_v16 = vunpack.i.h.bf16 %v5216_v49  ;;  %v5217_v32 = vunpack.i.l.bf16 %v5216_v49  ;;  %v1810_v7 = vadd.f32 %v1746_v13, %v1673_v39 }
 0x2ad   : > { %v6999_v49 = vmul.f32 0.0, %v6018_v40 }
 0x2ae   : > { %4881 = vmatprep.mubr.msk.bf16.mxu0 %vm2674_vm2, %v2624_v58  ;;  %v2564_v48 = vsel %vm2556_vm0, %v6512_v4, %v5218_v16  ;;  %v2563_v24 = vsel %vm2556_vm0, %v6475_v46, %v5217_v32  ;;  %v1610_v4 = vmul.f32 %v6005_v30, %v6898_v18  ;;  %v1941_v46 = vadd.f32 %v1877_v47, %v1809_v3 }
 0x2b0   : > { %v5226_v26 = vpop.permute.xlu0 %5225  ;;  %v1674_v33 = vadd.f32 %v1610_v4, %v1474_v36 }
 0x2b1   : > { %v5228_v10 = vunpack.i.h.bf16 %v5226_v26  ;;  %v5227_v21 = vunpack.i.l.bf16 %v5226_v26 }
 0x2b3   : > { %v2596_v55 = vsel %vm2589_vm1, %v2563_v24, %v5227_v21  ;;  %v2597_v5 = vsel %vm2589_vm1, %v2564_v48, %v5228_v10 }
 0x2b4   : > { %v2625_v17 = vpack.c.bf16 %v2597_v5, %v2596_v55 }
 0x2b5   : > { %v1388_v19 = vpop.permute.xlu1 %1387 }
 0x2b6   : > { %4882 = vmatmul.mubr.msk.bf16.gmra.mxu0 %vm2674_vm2, %v2625_v17  ;;  %v2009_v0 = vmul.f32 %v6021_v41, %v1388_v19  ;;  %v1611_v28 = vmul.f32 %v6005_v30, %v1388_v19  ;;  %v1747_v1 = vmul.f32 %v6011_v34, %v1388_v19  ;;  %v1878_v8 = vmul.f32 %v6018_v40, %v1388_v19 }
 0x2b7   : > { %v1476_v60 = vmul.f32 %v6008_v31, %v1388_v19 }
 0x2b8   : > { %v2072_v29 = vadd.f32 %v2009_v0, %v1941_v46  ;;  %v1675_v27 = vadd.f32 %v1611_v28, %v1475_v9  ;;  %v1811_v16 = vadd.f32 %v1747_v1, %v1674_v33  ;;  %v1942_v32 = vadd.f32 %v1878_v8, %v1810_v7 }
 0x2b9   : > { %v1398_v23 = vpop.permute.xlu1 %1397 }
 0x2ba   : > { %v2142_v58 = vmul.f32 %v6762_v37, %v2072_v29  ;;  %v1478_v14 = vmul.f32 %v6008_v31, %v1398_v23  ;;  %v1613_v26 = vmul.f32 %v6005_v30, %v1398_v23  ;;  %v1749_v18 = vmul.f32 %v6011_v34, %v1398_v23 }
 0x2bb   : > { %v1880_v3 = vmul.f32 %v6018_v40, %v1398_v23  ;;  %v2011_v48 = vmul.f32 %v6021_v41, %v1398_v23 }
 0x2bc   : > { %v7009_v10 = vadd.f32 %v6825_v45, %v2142_v58 }
 0x2bd   : > { %v1408_v57 = vpop.permute.xlu1 %1407  ;;  %v1393_v21 = vpop.permute.xlu0 %1392 }
 0x2be   : > { %v1480_v24 = vmul.f32 %v6008_v31, %v1408_v57  ;;  %v1615_v54 = vmul.f32 %v6005_v30, %v1408_v57  ;;  %v1612_v55 = vmul.f32 %v6005_v30, %v1393_v21  ;;  %v1748_v5 = vmul.f32 %v6011_v34, %v1393_v21 }
 0x2bf   : > { %v1879_v47 = vmul.f32 %v6018_v40, %v1393_v21  ;;  %v1751_v17 = vmul.f32 %v6011_v34, %v1408_v57  ;;  %v1477_v19 = vmul.f32 %v6008_v31, %v1393_v21  ;;  %v2010_v36 = vmul.f32 %v6021_v41, %v1393_v21 }
 0x2c0   : > { %v1882_v39 = vmul.f32 %v6018_v40, %v1408_v57  ;;  %v2013_v4 = vmul.f32 %v6021_v41, %v1408_v57  ;;  %v1676_v46 = vadd.f32 %v1612_v55, %v1476_v60  ;;  %v1812_v0 = vadd.f32 %v1748_v5, %v1675_v27 }
 0x2c1   : > { %v1943_v13 = vadd.f32 %v1879_v47, %v1811_v16  ;;  %v1548_v28 = vpop.permute.xlu1 %1547  ;;  %v2276_v1 = vmax.f32 %v7009_v10, 0.0  ;;  %v2073_v8 = vadd.f32 %v2010_v36, %v1942_v32  ;;  %v1677_v29 = vadd.f32 %v1613_v26, %v1477_v19 }
 0x2c2   : > { %v1403_v23 = vpop.permute.xlu0 %1402  ;;  %v1617_v9 = vmul.f32 %v6005_v30, %v1548_v28  ;;  %v1753_v33 = vmul.f32 %v6011_v34, %v1548_v28  ;;  %v1813_v7 = vadd.f32 %v1749_v18, %v1676_v46  ;;  %v1944_v58 = vadd.f32 %v1880_v3, %v1812_v0 }
 0x2c3   : > { %v1479_v21 = vmul.f32 %v6008_v31, %v1403_v23  ;;  %v1884_v12 = vmul.f32 %v6018_v40, %v1548_v28  ;;  %v2143_v60 = vmul.f32 %v6762_v37, %v2073_v8  ;;  %v1614_v27 = vmul.f32 %v6005_v30, %v1403_v23 }
 0x2c4   : > { %v1750_v16 = vmul.f32 %v6011_v34, %v1403_v23  ;;  %v1881_v32 = vmul.f32 %v6018_v40, %v1403_v23  ;;  %v2074_v26 = vadd.f32 %v2011_v48, %v1943_v13  ;;  %v2012_v57 = vmul.f32 %v6021_v41, %v1403_v23 }
 0x2c5   : > { %v1679_v10 = vadd.f32 %v1615_v54, %v1479_v21  ;;  %v2015_v55 = vmul.f32 %v6021_v41, %v1548_v28  ;;  %v5231_v18 = vpop.permute.xlu1 %5230  ;;  %v1678_v3 = vadd.f32 %v1614_v27, %v1478_v14  ;;  %v2213_v36 = vadd.f32 %v6825_v45, %v2143_v60 }
 0x2c6   : > { %v1814_v5 = vadd.f32 %v1750_v16, %v1677_v29  ;;  %v1945_v47 = vadd.f32 %v1881_v32, %v1813_v7  ;;  %v1413_v19 = vpop.permute.xlu0 %1412  ;;  %v2075_v46 = vadd.f32 %v2012_v57, %v1944_v58  ;;  %v2144_v28 = vmul.f32 %v6762_v37, %v2074_v26 }
 0x2c7   : > { %v1481_v0 = vmul.f32 %v6008_v31, %v1413_v19  ;;  %v1616_v8 = vmul.f32 %v6005_v30, %v1413_v19  ;;  %v1752_v25 = vmul.f32 %v6011_v34, %v1413_v19  ;;  %v1815_v48 = vadd.f32 %v1751_v17, %v1678_v3 }
 0x2c8   : > { %v1946_v13 = vadd.f32 %v1882_v39, %v1814_v5  ;;  %v2076_v23 = vadd.f32 %v2013_v4, %v1945_v47  ;;  %v1883_v54 = vmul.f32 %v6018_v40, %v1413_v19  ;;  %v2014_v14 = vmul.f32 %v6021_v41, %v1413_v19 }
 0x2c9   : > { %v2277_v29 = vmax.f32 %v2213_v36, 0.0  ;;  %v5233_v7 = vunpack.i.h.bf16 %v5231_v18  ;;  %v2145_v21 = vmul.f32 %v6762_v37, %v2075_v46  ;;  %v5232_v60 = vunpack.i.l.bf16 %v5231_v18  ;;  %v5241_v30 = vpop.permute.xlu1 %5240 }
 0x2ca   : > { %v1947_v58 = vadd.f32 %v1883_v54, %v1815_v48  ;;  %v1680_v31 = vadd.f32 %v1616_v8, %v1480_v24  ;;  %v1685_v27 = vpop.permute.xlu0 %1684  ;;  %v2146_v16 = vmul.f32 %v6762_v37, %v2076_v23  ;;  %v2077_v17 = vadd.f32 %v2014_v14, %v1946_v13 }
 0x2cb   : > { %v7043_v39 = vmax.f32 %v2276_v1, %v2277_v29  ;;  %v2566_v4 = vsel %vm2556_vm0, %v6558_v61, %v5233_v7  ;;  %v1681_v26 = vadd.f32 %v1617_v9, %v1481_v0  ;;  %v1816_v57 = vadd.f32 %v1752_v25, %v1679_v10 }
 0x2cc   : > { %v2078_v32 = vadd.f32 %v2015_v55, %v1947_v58  ;;  %v1817_v3 = vadd.f32 %v1753_v33, %v1680_v31  ;;  %v2565_v24 = vsel %vm2556_vm0, %v6532_v11, %v5232_v60  ;;  %v1754_v18 = vmul.f32 %v6011_v34, %v1685_v27 }
 0x2cd   : > { %v5314_v5 = vpack.i.bf16 %v7043_v39, %v6939_v43  ;;  %v1885_v47 = vmul.f32 %v6018_v40, %v1685_v27  ;;  %v1948_v19 = vadd.f32 %v1884_v12, %v1816_v57  ;;  %v2016_v36 = vmul.f32 %v6021_v41, %v1685_v27 }
 0x2ce   : > { %v2148_v1 = vmul.f32 %v6762_v37, %v2078_v32  ;;  %v5243_v61 = vunpack.i.h.bf16 %v5241_v30  ;;  %v5236_v55 = vpop.permute.xlu0 %5235  ;;  %v1818_v25 = vadd.f32 %v1754_v18, %v1681_v26  ;;  %v5242_v33 = vunpack.i.l.bf16 %v5241_v30 }
 0x2cf   : > { %5315 = vrot.lane.b32.xlu0 %v5314_v5, %s5643_s19  ;;  %v1949_v9 = vadd.f32 %v1885_v47, %v1817_v3  ;;  %v5238_v10 = vunpack.i.h.bf16 %v5236_v55  ;;  %v2147_v46 = vmul.f32 %v6762_v37, %v2077_v17  ;;  %v2079_v34 = vadd.f32 %v2016_v36, %v1948_v19 }
 0x2d0   : > { %v2218_v11 = vadd.f32 %v6825_v45, %v2148_v1  ;;  %v2599_v40 = vsel %vm2589_vm1, %v2566_v4, %v5243_v61  ;;  %v5251_v0 = vpop.permute.xlu1 %5250  ;;  %v1950_v12 = vadd.f32 %v6999_v49, %v1818_v25  ;;  %v2598_v8 = vsel %vm2589_vm1, %v2565_v24, %v5242_v33 }
 0x2d1   : > { %v2080_v41 = vadd.f32 %v7002_v22, %v1949_v9  ;;  %v5237_v48 = vunpack.i.l.bf16 %v5236_v55  ;;  %v2149_v23 = vmul.f32 %v6762_v37, %v2079_v34  ;;  %v2626_v54 = vpack.c.bf16 %v2599_v40, %v2598_v8 }
 0x2d2   : > { %v2282_v13 = vmax.f32 %v2218_v11, 0.0  ;;  %v2568_v14 = vsel %vm2556_vm0, %v6671_v63, %v5238_v10  ;;  %v5246_v29 = vpop.permute.xlu0 %5245  ;;  %v2081_v7 = vadd.f32 %v7002_v22, %v1950_v12  ;;  %v2214_v60 = vadd.f32 %v6825_v45, %v2144_v28 }
 0x2d3   : > { %v2150_v58 = vmul.f32 %v6762_v37, %v2080_v41  ;;  %v2215_v49 = vadd.f32 %v6825_v45, %v2145_v21  ;;  %v2219_v31 = vadd.f32 %v6825_v45, %v2149_v23  ;;  %v5253_v27 = vunpack.i.h.bf16 %v5251_v0  ;;  %4885 = vmatprep.mubr.msk.bf16.mxu0 %vm2674_vm2, %v2626_v54 }
 0x2d4   : > { %v5252_v30 = vunpack.i.l.bf16 %v5251_v0  ;;  %v5248_v17 = vunpack.i.h.bf16 %v5246_v29  ;;  %v2151_v4 = vmul.f32 %v6762_v37, %v2081_v7  ;;  %v2567_v63 = vsel %vm2556_vm0, %v6646_v35, %v5237_v48 }
 0x2d5   : > { %v2278_v32 = vmax.f32 %v2214_v60, 0.0  ;;  %v2279_v22 = vmax.f32 %v2215_v49, 0.0  ;;  %v2220_v26 = vadd.f32 %v6825_v45, %v2150_v58  ;;  %v2283_v57 = vmax.f32 %v2219_v31, 0.0 }
 0x2d6   : > { %v2570_v28 = vsel %vm2556_vm0, %v6706_v20, %v5253_v27  ;;  %v5247_v21 = vunpack.i.l.bf16 %v5246_v29  ;;  %v5261_v3 = vpop.permute.xlu1 %5260  ;;  %v2601_v24 = vsel %vm2589_vm1, %v2568_v14, %v5248_v17  ;;  %v2216_v18 = vadd.f32 %v6825_v45, %v2146_v16 }
 0x2d7   : > { %v7077_v5 = vmax.f32 %v2278_v32, %v2279_v22  ;;  %v2217_v37 = vadd.f32 %v6825_v45, %v2147_v46  ;;  %v2569_v35 = vsel %vm2556_vm0, %v6681_v62, %v5252_v30  ;;  %v5263_v1 = vunpack.i.h.bf16 %v5261_v3 }
 0x2d8   : > { %v2600_v47 = vsel %vm2589_vm1, %v2567_v63, %v5247_v21  ;;  %v5262_v19 = vunpack.i.l.bf16 %v5261_v3  ;;  %v5256_v36 = vpop.permute.xlu0 %5255  ;;  %v2280_v55 = vmax.f32 %v2216_v18, 0.0  ;;  %v7089_v33 = vmax.f32 %v2282_v13, %v2283_v57 }
 0x2d9   : > { %v5324_v20 = vpack.i.bf16 %v7077_v5, %v7043_v39  ;;  %v2627_v61 = vpack.c.bf16 %v2601_v24, %v2600_v47  ;;  %v2281_v25 = vmax.f32 %v2217_v37, 0.0  ;;  %v2603_v16 = vsel %vm2589_vm1, %v2570_v28, %v5263_v1 }
 0x2da   : > { %v2602_v9 = vsel %vm2589_vm1, %v2569_v35, %v5262_v19  ;;  %v2221_v46 = vadd.f32 %v6825_v45, %v2151_v4  ;;  %v5258_v11 = vunpack.i.h.bf16 %v5256_v36  ;;  %v5257_v34 = vunpack.i.l.bf16 %v5256_v36 }
 0x2db   : > { %5325 = vrot.lane.b32.xlu0 %v5324_v20, %s5644_s25  ;;  %v7092_v62 = vmax.f32 %v2280_v55, %v2281_v25  ;;  %v2628_v10 = vpack.c.bf16 %v2603_v16, %v2602_v9  ;;  %4886 = vmatmul.mubr.msk.bf16.gmra.mxu0 %vm2674_vm2, %v2627_v61  ;;  %v2284_v0 = vmax.f32 %v2220_v26, 0.0  ;;  %v7648_v49 = vmov 0.0  }
 0x2dc   : > { %v2285_v12 = vmax.f32 %v2221_v46, 0.0  ;;  %v2572_v45 = vsel %vm2556_vm0, %v6736_v53, %v5258_v11  ;;  %v2571_v54 = vsel %vm2556_vm0, %v6713_v15, %v5257_v34 }
 0x2dd   : > { %v5329_v40 = vpack.i.bf16 %v7092_v62, %v7077_v5  ;;  %4889 = vmatprep.mubr.msk.bf16.mxu0 %vm2674_vm2, %v2628_v10  ;;  %v5339_v8 = vpack.i.bf16 %v7089_v33, %v7092_v62 }
 0x2de   : > { %v5266_v41 = vpop.permute.xlu0 %5265  ;;  %v2317_v23 = vmax.f32 %v2284_v0, %v2285_v12 }
 0x2df   : > { %5330 = vrot.lane.b32.xlu1 %v5329_v40, %s5643_s19  ;;  %v5268_v48 = vunpack.i.h.bf16 %v5266_v41  ;;  %v5267_v13 = vunpack.i.l.bf16 %v5266_v41 }
 0x2e0   : > { %v5334_v7 = vpack.i.bf16 %v2317_v23, %v7089_v33  ;;  %v5344_v31 = vpack.i.bf16 %v7648_v49, %v2317_v23 }
 0x2e1   : > { %v2604_v14 = vsel %vm2589_vm1, %v2571_v54, %v5267_v13  ;;  %v2605_v29 = vsel %vm2589_vm1, %v2572_v45, %v5268_v48 }
 0x2e2   : > { %v2629_v58 = vpack.c.bf16 %v2605_v29, %v2604_v14  ;;  %5335 = vrot.lane.b32.xlu0 %v5334_v7, %s5643_s19  ;;  %s4610_s19 = sshll.u32 %s608_s27, 3 }
 0x2e3   : > { %5340 = vrot.lane.b32.xlu1 %v5339_v8, %s5644_s25 }
 0x2e4   : > { %4890 = vmatmul.mubr.msk.bf16.gmra.mxu0 %vm2674_vm2, %v2629_v58 }
 0x2e5   : > { %v5271_v60 = vpop.permute.xlu1 %5270 }
 0x2e6   : > { %5345 = vrot.lane.b32.xlu0 %v5344_v31, %s5644_s25  ;;  %v5273_v53 = vunpack.i.h.bf16 %v5271_v60  ;;  %v5272_v15 = vunpack.i.l.bf16 %v5271_v60 }
 0x2e8   : > { %v2574_v4 = vsel %vm2556_vm0, %v6770_v51, %v5273_v53  ;;  %v2573_v63 = vsel %vm2556_vm0, %v6744_v42, %v5272_v15 }
 0x2eb   : > { %v5281_v27 = vpop.permute.xlu1 %5280 }
 0x2ec   : > { %v5283_v30 = vunpack.i.h.bf16 %v5281_v27  ;;  %v5282_v17 = vunpack.i.l.bf16 %v5281_v27 }
 0x2ee   : > { %v2607_v32 = vsel %vm2589_vm1, %v2574_v4, %v5283_v30  ;;  %v2606_v22 = vsel %vm2589_vm1, %v2573_v63, %v5282_v17  ;;  %v7649_v17 = vld [vmem:[#allocation18_spill] sm:$0xff] }
 0x2ef   : > { %v2630_v26 = vpack.c.bf16 %v2607_v32, %v2606_v22 }
 0x2f1   : > { %4893 = vmatprep.mubr.msk.bf16.mxu0 %vm2674_vm2, %v2630_v26 }
 0x2f2   : > { %v5276_v57 = vpop.permute.xlu0 %5275 }
 0x2f3   : > { %v5278_v28 = vunpack.i.h.bf16 %v5276_v57  ;;  %v5277_v21 = vunpack.i.l.bf16 %v5276_v57 }
 0x2f5   : > { %v2576_v37 = vsel %vm2556_vm0, %v6814_v52, %v5278_v28  ;;  %v2575_v51 = vsel %vm2556_vm0, %v6797_v2, %v5277_v21 }
 0x2f8   : > { %v5286_v3 = vpop.permute.xlu0 %5285 }
 0x2f9   : > { %v5288_v24 = vunpack.i.h.bf16 %v5286_v3  ;;  %v5287_v18 = vunpack.i.l.bf16 %v5286_v3 }
 0x2fb   : > { %v2608_v42 = vsel %vm2589_vm1, %v2575_v51, %v5287_v18  ;;  %v2609_v35 = vsel %vm2589_vm1, %v2576_v37, %v5288_v24 }
 0x2fc   : > { %v2631_v47 = vpack.c.bf16 %v2609_v35, %v2608_v42  ;;  %v5395_v42 = vld [vmem:[#allocation2 + $0x38] sm:$0xff]  }
 0x2fd   : > { %v5291_v1 = vpop.permute.xlu1 %5290  ;;  %3227 = vmatpush1.bf16.msra.mxu1 %v5395_v42 }
 0x2fe   : > { %4894 = vmatmul.mubr.msk.bf16.gmra.mxu0 %vm2674_vm2, %v2631_v47  ;;  %v5293_v19 = vunpack.i.h.bf16 %v5291_v1  ;;  %v5292_v36 = vunpack.i.l.bf16 %v5291_v1 }
 0x300   : > { %v2578_v25 = vsel %vm2556_vm0, %v6858_v50, %v5293_v19  ;;  %v2577_v52 = vsel %vm2556_vm0, %v6840_v59, %v5292_v36 }
 0x303   : > { %v5301_v20 = vpop.permute.xlu1 %5300 }
 0x304   : > { %v5303_v61 = vunpack.i.h.bf16 %v5301_v20  ;;  %v5302_v55 = vunpack.i.l.bf16 %v5301_v20 }
 0x306   : > { %v2611_v2 = vsel %vm2589_vm1, %v2578_v25, %v5303_v61  ;;  %v2610_v9 = vsel %vm2589_vm1, %v2577_v52, %v5302_v55  ;;  %v7650_v61 = vmov 0   ;;  %v5396_v55 = vld [vmem:[#allocation2 + $0x30] sm:$0xff]  }
 0x307   : > { %v2632_v16 = vpack.c.bf16 %v2611_v2, %v2610_v9  ;;  %3228 = vmatprep.subr.bf16.mxu1 %v7650_v61  ;;  %v5397_v9 = vld [vmem:[#allocation2 + $0x28] sm:$0xff]  }
 0x308   : > { %v5296_v10 = vpop.permute.xlu0 %5295  ;;  %3229 = vmatpush1.bf16.msra.mxu1 %v5396_v55 }
 0x309   : > { %4897 = vmatprep.mubr.msk.bf16.mxu0 %vm2674_vm2, %v2632_v16  ;;  %v5298_v46 = vunpack.i.h.bf16 %v5296_v10  ;;  %v5297_v11 = vunpack.i.l.bf16 %v5296_v10  ;;  %3230 = vmatprep.subr.bf16.mxu1 %v7650_v61  ;;  %v5398_v16 = vld [vmem:[#allocation2 + $0x20] sm:$0xff]  }
 0x30a   : > { %v5311_v34 = vpop.permute.xlu1 %5310 }
 0x30b   : > { %v5313_v0 = vunpack.i.h.bf16 %v5311_v34  ;;  %v5312_v12 = vunpack.i.l.bf16 %v5311_v34  ;;  %v2580_v50 = vsel %vm2556_vm0, %v6907_v44, %v5298_v46  ;;  %v2579_v59 = vsel %vm2556_vm0, %v6878_v38, %v5297_v11  ;;  %v7183_v34 = vld [vmem:[%s7598_s6] ss:$0 sm:$0xff] }
 0x30c   : > { %v5306_v40 = vpop.permute.xlu0 %5305  ;;  %3231 = vmatpush1.bf16.msra.mxu1 %v5397_v9 }
 0x30d   : > { %v5308_v41 = vunpack.i.h.bf16 %v5306_v40  ;;  %v5307_v8 = vunpack.i.l.bf16 %v5306_v40  ;;  %v2582_v29 = vsel %vm2556_vm0, %v6925_v6, %v5313_v0  ;;  %v2581_v7 = vsel %vm2556_vm0, %v6923_v56, %v5312_v12  ;;  %3232 = vmatprep.subr.bf16.mxu1 %v7650_v61  ;;  %v5399_v0 = vld [vmem:[#allocation2 + $0x18] sm:$0xff]  }
 0x30e   : > { %v5321_v48 = vpop.permute.xlu1 %5320 }
 0x30f   : > { %v2612_v13 = vsel %vm2589_vm1, %v2579_v59, %v5307_v8  ;;  %v2613_v23 = vsel %vm2589_vm1, %v2580_v50, %v5308_v41  ;;  %v5323_v45 = vunpack.i.h.bf16 %v5321_v48  ;;  %v5322_v54 = vunpack.i.l.bf16 %v5321_v48 }
 0x310   : > { %v2633_v14 = vpack.c.bf16 %v2613_v23, %v2612_v13  ;;  %3233 = vmatpush1.bf16.msra.mxu1 %v5398_v16  ;;  %v5400_v13 = vld [vmem:[#allocation2 + $0x10] sm:$0xff]  }
 0x311   : > { %v2615_v58 = vsel %vm2589_vm1, %v2582_v29, %v5323_v45  ;;  %v2614_v44 = vsel %vm2589_vm1, %v2581_v7, %v5322_v54  ;;  %3234 = vmatprep.subr.bf16.mxu1 %v7650_v61  ;;  %v5401_v7 = vld [vmem:[#allocation2 + $0x8] sm:$0xff]  }
 0x312   : > { %4898 = vmatmul.mubr.msk.bf16.gmra.mxu0 %vm2674_vm2, %v2633_v14  ;;  %v2634_v38 = vpack.c.bf16 %v2615_v58, %v2614_v44 }
 0x314   : > { %4901 = vmatprep.mubr.msk.bf16.mxu0 %vm2674_vm2, %v2634_v38  ;;  %3235 = vmatpush1.bf16.msra.mxu1 %v5399_v0 }
 0x315   : > { %3236 = vmatprep.subr.bf16.mxu1 %v7650_v61 }
 0x318   : > { %3237 = vmatpush1.bf16.msra.mxu1 %v5400_v13 }
 0x319   : > { %3238 = vmatprep.subr.bf16.mxu1 %v7650_v61 }
 0x31c   : > { %3239 = vmatpush1.bf16.msra.mxu1 %v5401_v7 }
 0x31d   : > { %3240 = vmatprep.subr.bf16.mxu1 %v7650_v61 }
 0x341   : > { %v5316_v60 = vpop.permute.xlu0 %5315 }
 0x342   : > { %v5318_v31 = vunpack.i.h.bf16 %v5316_v60  ;;  %v5317_v53 = vunpack.i.l.bf16 %v5316_v60  ;;  %v5402_v60 = vld [vmem:[#allocation2] sm:$0xff]  }
 0x343   : > { %3241 = vmatpush1.bf16.msra.mxu1 %v5402_v60 }
 0x344   : > { %v2584_v6 = vsel %vm2556_vm0, %v6939_v43, %v5318_v31  ;;  %v2583_v56 = vsel %vm2556_vm0, %v7649_v17, %v5317_v53  ;;  %v5403_v31 = vld [vmem:[#allocation2 + $0x58] sm:$0xff]   ;;  %3250 = vmatprep.subr.bf16.mxu1 %v7650_v61 }
 0x347   : > { %3251 = vmatpush2.bf16.msra.mxu1 %v5403_v31 }
 0x348   : > { %3252 = vmatprep.subr.bf16.mxu1 %v7650_v61 }
 0x34d   : > { %v5326_v15 = vpop.permute.xlu0 %5325 }
 0x34e   : > { %v5328_v27 = vunpack.i.h.bf16 %v5326_v15  ;;  %v5327_v30 = vunpack.i.l.bf16 %v5326_v15 }
 0x350   : > { %v2616_v4 = vsel %vm2589_vm1, %v2583_v56, %v5327_v30  ;;  %v2617_v63 = vsel %vm2589_vm1, %v2584_v6, %v5328_v27  ;;  %v5404_v27 = vld [vmem:[#allocation2 + $0x50] sm:$0xff]  }
 0x351   : > { %v2635_v32 = vpack.c.bf16 %v2617_v63, %v2616_v4  ;;  %v5331_v22 = vpop.permute.xlu1 %5330  ;;  %3253 = vmatpush2.bf16.msra.mxu1 %v5404_v27  ;;  %v5405_v63 = vld [vmem:[#allocation2 + $0x48] sm:$0xff]  }
 0x352   : > { %v5333_v26 = vunpack.i.h.bf16 %v5331_v22  ;;  %v5332_v57 = vunpack.i.l.bf16 %v5331_v22  ;;  %3254 = vmatprep.subr.bf16.mxu1 %v7650_v61 }
 0x353   : > { %4902 = vmatmul.mubr.msk.bf16.gmra.mxu0 %vm2674_vm2, %v2635_v32 }
 0x354   : > { %v5336_v21 = vpop.permute.xlu0 %5335  ;;  %v2586_v43 = vsel %vm2556_vm0, %v7077_v5, %v5333_v26  ;;  %v2585_v18 = vsel %vm2556_vm0, %v7043_v39, %v5332_v57 }
 0x355   : > { %v5341_v28 = vpop.permute.xlu1 %5340  ;;  %v5338_v37 = vunpack.i.h.bf16 %v5336_v21  ;;  %v5337_v51 = vunpack.i.l.bf16 %v5336_v21  ;;  %3255 = vmatpush2.bf16.msra.mxu1 %v5405_v63 }
 0x356   : > { %v5343_v3 = vunpack.i.h.bf16 %v5341_v28  ;;  %v5342_v24 = vunpack.i.l.bf16 %v5341_v28  ;;  %3256 = vmatprep.subr.bf16.mxu1 %v7650_v61 }
 0x357   : > { %v2588_v5 = vsel %vm2556_vm0, %v7089_v33, %v5338_v37  ;;  %v2587_v39 = vsel %vm2556_vm0, %v7092_v62, %v5337_v51  ;;  %v7175_v33 = vld [vmem:[%s7597_s5] ss:$0 sm:$0xff] }
 0x358   : > { %v2619_v35 = vsel %vm2589_vm1, %v2586_v43, %v5343_v3  ;;  %v2618_v47 = vsel %vm2589_vm1, %v2585_v18, %v5342_v24  ;;  %v5346_v19 = vpop.permute.xlu0 %5345  ;;  %v5406_v3 = vld [vmem:[#allocation2 + $0x40] sm:$0xff]  }
 0x359   : > { %v2636_v1 = vpack.c.bf16 %v2619_v35, %v2618_v47  ;;  %v5348_v36 = vunpack.i.h.bf16 %v5346_v19  ;;  %v5347_v20 = vunpack.i.l.bf16 %v5346_v19  ;;  %3257 = vmatpush2.bf16.msra.mxu1 %v5406_v3 }
 0x35a   : > { %4929 = vmatprep.subr.bf16.mxu1 %v7648_v49 }
 0x35b   : > { %4905 = vmatprep.mubr.msk.bf16.mxu0 %vm2674_vm2, %v2636_v1  ;;  %v2620_v25 = vsel %vm2589_vm1, %v2587_v39, %v5347_v20  ;;  %v2621_v52 = vsel %vm2589_vm1, %v2588_v5, %v5348_v36 }
 0x35c   : > { %v2637_v2 = vpack.c.bf16 %v2621_v52, %v2620_v25 }
 0x35e   : > { %4906 = vmatmul.mubr.msk.bf16.gmra.mxu0 %vm2674_vm2, %v2637_v2 }
 0x35f   : > { %4925 = vmatprep.mubr.msk.bf16.mxu0 %vm5647_vm6, %v7648_v49 }
 0x361   : > { %v4879_v62 = vpop.f32.mrf.mxu0 }
 0x362   : > { %v2892_v46 = vmul.f32 %v4879_v62, %v7175_v33 }
 0x363   : > { %v2757_v10 = vpop.f32.mrf.mxu0 }
 0x364   : > { %v2890_v11 = vmul.f32 %v7175_v33, %v2757_v10  ;;  %v2930_v8 = vadd.f32 %v7183_v34, %v2892_v46 }
 0x365   : > { %v4880_v40 = vpop.f32.mrf.mxu0 }
 0x366   : > { %v2893_v12 = vmul.f32 %v4880_v40, %v7175_v33  ;;  %v2928_v50 = vadd.f32 %v7183_v34, %v2890_v11  ;;  %v2962_v54 = vmax.f32 %v2930_v8, 0.0 }
 0x367   : > { %v2760_v41 = vpop.f32.mrf.mxu0 }
 0x368   : > { %v2931_v59 = vadd.f32 %v7183_v34, %v2893_v12  ;;  %v2891_v48 = vmul.f32 %v7175_v33, %v2760_v41  ;;  %v2960_v14 = vmax.f32 %v2928_v50, 0.0 }
 0x36a   : > { %v2963_v23 = vmax.f32 %v2931_v59, 0.0  ;;  %v2929_v45 = vadd.f32 %v7183_v34, %v2891_v48 }
 0x36c   : > { %v2961_v29 = vmax.f32 %v2929_v45, 0.0  ;;  %v7193_v58 = vmax.f32 %v2962_v54, %v2963_v23 }
 0x36e   : > { %v7195_v44 = vmax.f32 %v2960_v14, %v2961_v29 }
 0x370   : > { %v5349_v38 = vpack.i.bf16 %v7195_v44, %v7193_v58 }
 0x372   : > { %5350 = vrot.lane.b32.xlu1 %v5349_v38, %s5644_s25 }
 0x376   : > { %v4883_v53 = vpop.f32.mrf.mxu0 }
 0x377   : > { %v2896_v30 = vmul.f32 %v4883_v53, %v7175_v33 }
 0x378   : > { %v2773_v15 = vpop.f32.mrf.mxu0 }
 0x379   : > { %v2894_v6 = vmul.f32 %v7175_v33, %v2773_v15  ;;  %v2934_v32 = vadd.f32 %v7183_v34, %v2896_v30 }
 0x37a   : > { %v4884_v17 = vpop.f32.mrf.mxu0 }
 0x37b   : > { %v2897_v56 = vmul.f32 %v4884_v17, %v7175_v33  ;;  %v2932_v22 = vadd.f32 %v7183_v34, %v2894_v6  ;;  %v2966_v24 = vmax.f32 %v2934_v32, 0.0 }
 0x37c   : > { %v2776_v4 = vpop.f32.mrf.mxu0 }
 0x37d   : > { %v2935_v26 = vadd.f32 %v7183_v34, %v2897_v56  ;;  %v2895_v57 = vmul.f32 %v7175_v33, %v2776_v4  ;;  %v2964_v43 = vmax.f32 %v2932_v22, 0.0 }
 0x37f   : > { %v2967_v28 = vmax.f32 %v2935_v26, 0.0  ;;  %v2933_v21 = vadd.f32 %v7183_v34, %v2895_v57 }
 0x381   : > { %v2965_v18 = vmax.f32 %v2933_v21, 0.0  ;;  %v7214_v37 = vmax.f32 %v2966_v24, %v2967_v28 }
 0x383   : > { %v7216_v51 = vmax.f32 %v2964_v43, %v2965_v18 }
 0x385   : > { %v5354_v42 = vpack.i.bf16 %v7214_v37, %v7216_v51  ;;  %v3115_v35 = vpack.c.bf16 %v7216_v51, %v7193_v58 }
 0x387   : > { %5355 = vrot.lane.b32.xlu0 %v5354_v42, %s5644_s25  ;;  %4650 = vmatprep.mubr.msk.bf16.mxu1 %vm2589_vm1, %v3115_v35 }
 0x39b   : > { %v4887_v47 = vpop.f32.mrf.mxu0 }
 0x39c   : > { %v2900_v19 = vmul.f32 %v4887_v47, %v7175_v33 }
 0x39d   : > { %v2789_v1 = vpop.f32.mrf.mxu0 }
 0x39e   : > { %v2898_v36 = vmul.f32 %v7175_v33, %v2789_v1  ;;  %v2938_v39 = vadd.f32 %v7183_v34, %v2900_v19 }
 0x39f   : > { %v4888_v20 = vpop.f32.mrf.mxu0 }
 0x3a0   : > { %v2901_v61 = vmul.f32 %v4888_v20, %v7175_v33  ;;  %v2936_v55 = vadd.f32 %v7183_v34, %v2898_v36  ;;  %v2970_v16 = vmax.f32 %v2938_v39, 0.0 }
 0x3a1   : > { %v2792_v5 = vpop.f32.mrf.mxu0 }
 0x3a2   : > { %v2939_v25 = vadd.f32 %v7183_v34, %v2901_v61  ;;  %v2899_v52 = vmul.f32 %v7175_v33, %v2792_v5  ;;  %v2968_v10 = vmax.f32 %v2936_v55, 0.0 }
 0x3a4   : > { %v2971_v2 = vmax.f32 %v2939_v25, 0.0  ;;  %v2937_v9 = vadd.f32 %v7183_v34, %v2899_v52  ;;  %v4891_v62 = vpop.f32.mrf.mxu0 }
 0x3a5   : > { %v2904_v40 = vmul.f32 %v4891_v62, %v7175_v33 }
 0x3a6   : > { %v2969_v46 = vmax.f32 %v2937_v9, 0.0  ;;  %v2805_v11 = vpop.f32.mrf.mxu0  ;;  %v7235_v12 = vmax.f32 %v2970_v16, %v2971_v2 }
 0x3a7   : > { %v2902_v0 = vmul.f32 %v7175_v33, %v2805_v11  ;;  %v2942_v13 = vadd.f32 %v7183_v34, %v2904_v40 }
 0x3a8   : > { %v7237_v41 = vmax.f32 %v2968_v10, %v2969_v46  ;;  %v4892_v8 = vpop.f32.mrf.mxu0 }
 0x3a9   : > { %v2905_v50 = vmul.f32 %v4892_v8, %v7175_v33  ;;  %v2940_v23 = vadd.f32 %v7183_v34, %v2902_v0  ;;  %v2974_v7 = vmax.f32 %v2942_v13, 0.0 }
 0x3aa   : > { %v2808_v59 = vpop.f32.mrf.mxu0  ;;  %v5359_v48 = vpack.i.bf16 %v7235_v12, %v7237_v41  ;;  %v3117_v13 = vpack.c.bf16 %v7237_v41, %v7214_v37 }
 0x3ab   : > { %v2943_v45 = vadd.f32 %v7183_v34, %v2905_v50  ;;  %v2903_v54 = vmul.f32 %v7175_v33, %v2808_v59  ;;  %v2972_v38 = vmax.f32 %v2940_v23, 0.0 }
 0x3ac   : > { %5360 = vrot.lane.b32.xlu1 %v5359_v48, %s5644_s25 }
 0x3ad   : > { %v2975_v14 = vmax.f32 %v2943_v45, 0.0  ;;  %v2941_v29 = vadd.f32 %v7183_v34, %v2903_v54 }
 0x3af   : > { %v2973_v60 = vmax.f32 %v2941_v29, 0.0  ;;  %v7248_v31 = vmax.f32 %v2974_v7, %v2975_v14 }
 0x3b1   : > { %v7250_v53 = vmax.f32 %v2972_v38, %v2973_v60 }
 0x3b3   : > { %v5364_v15 = vpack.i.bf16 %v7248_v31, %v7250_v53 }
 0x3b5   : > { %5365 = vrot.lane.b32.xlu0 %v5364_v15, %s5644_s25 }
 0x3be   : > { %v4895_v27 = vpop.f32.mrf.mxu0 }
 0x3bf   : > { %v2908_v6 = vmul.f32 %v4895_v27, %v7175_v33 }
 0x3c0   : > { %v2821_v30 = vpop.f32.mrf.mxu0 }
 0x3c1   : > { %v2906_v17 = vmul.f32 %v7175_v33, %v2821_v30  ;;  %v2946_v32 = vadd.f32 %v7183_v34, %v2908_v6 }
 0x3c2   : > { %v4896_v56 = vpop.f32.mrf.mxu0 }
 0x3c3   : > { %v2909_v4 = vmul.f32 %v4896_v56, %v7175_v33  ;;  %v2944_v22 = vadd.f32 %v7183_v34, %v2906_v17  ;;  %v2978_v3 = vmax.f32 %v2946_v32, 0.0 }
 0x3c4   : > { %v2824_v63 = vpop.f32.mrf.mxu0 }
 0x3c5   : > { %v2947_v26 = vadd.f32 %v7183_v34, %v2909_v4  ;;  %v2907_v57 = vmul.f32 %v7175_v33, %v2824_v63  ;;  %v2976_v24 = vmax.f32 %v2944_v22, 0.0  ;;  %v5407_v22 = vld [vmem:[#allocation5 + $0x38] sm:$0xff]  }
 0x3c7   : > { %v2979_v28 = vmax.f32 %v2947_v26, 0.0  ;;  %v2945_v21 = vadd.f32 %v7183_v34, %v2907_v57 }
 0x3c9   : > { %v2977_v43 = vmax.f32 %v2945_v21, 0.0  ;;  %v7263_v18 = vmax.f32 %v2978_v3, %v2979_v28 }
 0x3cb   : > { %v7265_v42 = vmax.f32 %v2976_v24, %v2977_v43 }
 0x3cd   : > { %v5369_v35 = vpack.i.bf16 %v7263_v18, %v7265_v42 }
 0x3cf   : > { %5370 = vrot.lane.b32.xlu1 %v5369_v35, %s5644_s25 }
 0x3d2   : > { %v4899_v47 = vpop.f32.mrf.mxu0 }
 0x3d3   : > { %v2912_v19 = vmul.f32 %v4899_v47, %v7175_v33 }
 0x3d4   : > { %v2837_v1 = vpop.f32.mrf.mxu0 }
 0x3d5   : > { %v2910_v36 = vmul.f32 %v7175_v33, %v2837_v1  ;;  %v2950_v39 = vadd.f32 %v7183_v34, %v2912_v19 }
 0x3d6   : > { %v4900_v20 = vpop.f32.mrf.mxu0 }
 0x3d7   : > { %v2913_v61 = vmul.f32 %v4900_v20, %v7175_v33  ;;  %v2948_v55 = vadd.f32 %v7183_v34, %v2910_v36  ;;  %v2982_v62 = vmax.f32 %v2950_v39, 0.0 }
 0x3d8   : > { %v2840_v5 = vpop.f32.mrf.mxu0 }
 0x3d9   : > { %v2951_v25 = vadd.f32 %v7183_v34, %v2913_v61  ;;  %v2911_v52 = vmul.f32 %v7175_v33, %v2840_v5  ;;  %v2980_v16 = vmax.f32 %v2948_v55, 0.0 }
 0x3db   : > { %v2983_v2 = vmax.f32 %v2951_v25, 0.0  ;;  %v2949_v9 = vadd.f32 %v7183_v34, %v2911_v52  ;;  %v3121_v25 = vpack.c.bf16 %v7265_v42, %v7248_v31  ;;  %v5408_v52 = vld [vmem:[#allocation5 + $0x30] sm:$0xff]  }
 0x3dd   : > { %v2981_v10 = vmax.f32 %v2949_v9, 0.0  ;;  %v7278_v46 = vmax.f32 %v2982_v62, %v2983_v2 }
 0x3df   : > { %v7280_v11 = vmax.f32 %v2980_v16, %v2981_v10 }
 0x3e1   : > { %v5374_v40 = vpack.i.bf16 %v7278_v46, %v7280_v11 }
 0x3e3   : > { %5375 = vrot.lane.b32.xlu0 %v5374_v40, %s5644_s25 }
 0x3e4   : > { %v5351_v0 = vpop.permute.xlu1 %5350 }
 0x3e5   : > { %v5353_v8 = vunpack.i.h.bf16 %v5351_v0  ;;  %v5352_v50 = vunpack.i.l.bf16 %v5351_v0 }
 0x3e7   : > { %v3099_v59 = vsel %vm2589_vm1, %v7195_v44, %v5352_v50  ;;  %v3119_v44 = vpack.c.bf16 %v7250_v53, %v7235_v12 }
 0x3e8   : > { %v4653_v48 = vpack.c.bf16 %v3099_v59, %v5353_v8  ;;  %v5409_v59 = vld [vmem:[#allocation5 + $0x28] sm:$0xff]  }
 0x3ea   : > { %4654 = vmatmul.mubr.msk.bf16.vlgmr.msra.gmra.mxu1 %vm4652_vm5, %v4653_v48  ;;  %v5411_v48 = vld [vmem:[#allocation5 + $0x78] sm:$0xff]  }
 0x3eb   : > { %4655 = vmatprep.mubr.msk.bf16.mxu1 %vm2589_vm1, %v3117_v13  ;;  %4930 = vmatpush3.bf16.msra.mxu1 %v5407_v22 }
 0x3ec   : > { %4931 = vmatprep.subr.bf16.mxu1 %v7648_v49  ;;  %4910 = vmatpush3.bf16.msra.mxu0 %v5411_v48  ;;  %v5426_v48 = vld [vmem:[#allocation5 + $0xf8] sm:$0xff]  }
 0x3ed   : > { %4911 = vmatprep.subr.bf16.mxu0 %v7648_v49 }
 0x3ef   : > { %4932 = vmatpush3.bf16.msra.mxu1 %v5408_v52 }
 0x3f0   : > { %4933 = vmatprep.subr.bf16.mxu1 %v7648_v49 }
 0x3f3   : > { %4934 = vmatpush3.bf16.msra.mxu1 %v5409_v59 }
 0x3f4   : > { %4935 = vmatprep.subr.bf16.mxu1 %v7648_v49 }
 0x3f9   : > { %v5356_v23 = vpop.permute.xlu0 %5355 }
 0x3fa   : > { %v5358_v45 = vunpack.i.h.bf16 %v5356_v23  ;;  %v5357_v54 = vunpack.i.l.bf16 %v5356_v23 }
 0x3fc   : > { %v3100_v14 = vsel %vm2589_vm1, %v7193_v58, %v5357_v54  ;;  %v3101_v29 = vsel %vm2589_vm1, %v7216_v51, %v5358_v45 }
 0x3fd   : > { %v3116_v7 = vpack.c.bf16 %v3101_v29, %v3100_v14 }
 0x3ff   : > { %3267 = vmatmul.mubr.bf16.gmra.mxu1 %v3116_v7 }
 0x400   : > { %4656 = vmatprep.mubr.msk.bf16.mxu1 %vm2589_vm1, %v3119_v44  ;;  %v3123_v44 = vpack.c.bf16 %v7280_v11, %v7263_v18 }
 0x413   : > { %v4903_v38 = vpop.f32.mrf.mxu0 }
 0x414   : > { %v2916_v15 = vmul.f32 %v4903_v38, %v7175_v33  ;;  %v5413_v38 = vld [vmem:[#allocation5 + $0x70] sm:$0xff]  }
 0x415   : > { %v2853_v60 = vpop.f32.mrf.mxu0  ;;  %4912 = vmatpush3.bf16.msra.mxu0 %v5413_v38 }
 0x416   : > { %v2914_v27 = vmul.f32 %v7175_v33, %v2853_v60  ;;  %v2954_v17 = vadd.f32 %v7183_v34, %v2916_v15  ;;  %4913 = vmatprep.subr.bf16.mxu0 %v7648_v49  ;;  %v5414_v60 = vld [vmem:[#allocation5 + $0x10] sm:$0xff]   ;;  %v5415_v15 = vld [vmem:[#allocation5 + $0x68] sm:$0xff]  }
 0x417   : > { %v4904_v30 = vpop.f32.mrf.mxu0 }
 0x418   : > { %v2917_v6 = vmul.f32 %v4904_v30, %v7175_v33  ;;  %v2952_v51 = vadd.f32 %v7183_v34, %v2914_v27  ;;  %v2986_v26 = vmax.f32 %v2954_v17, 0.0  ;;  %v5416_v27 = vld [vmem:[#allocation5 + $0x8] sm:$0xff]   ;;  %v5417_v30 = vld [vmem:[#allocation5 + $0x60] sm:$0xff]  }
 0x419   : > { %v2856_v58 = vpop.f32.mrf.mxu0  ;;  %4914 = vmatpush3.bf16.msra.mxu0 %v5415_v15 }
 0x41a   : > { %v2955_v56 = vadd.f32 %v7183_v34, %v2917_v6  ;;  %v2915_v4 = vmul.f32 %v7175_v33, %v2856_v58  ;;  %v2984_v57 = vmax.f32 %v2952_v51, 0.0  ;;  %4915 = vmatprep.subr.bf16.mxu0 %v7648_v49  ;;  %v5418_v6 = vld [vmem:[#allocation5] sm:$0xff]  }
 0x41c   : > { %v2987_v63 = vmax.f32 %v2955_v56, 0.0  ;;  %v2953_v32 = vadd.f32 %v7183_v34, %v2915_v4 }
 0x41d   : > { %4916 = vmatpush3.bf16.msra.mxu0 %v5417_v30 }
 0x41e   : > { %v2985_v28 = vmax.f32 %v2953_v32, 0.0  ;;  %v5361_v21 = vpop.permute.xlu1 %5360  ;;  %v4907_v3 = vpop.f32.mrf.mxu0  ;;  %v7306_v35 = vmax.f32 %v2986_v26, %v2987_v63  ;;  %4917 = vmatprep.subr.bf16.mxu0 %v7648_v49  ;;  %v5419_v32 = vld [vmem:[#allocation5 + $0x58] sm:$0xff]   ;;  %v5420_v26 = vld [vmem:[#allocation5 + $0x50] sm:$0xff]  }
 0x41f   : > { %v5363_v24 = vunpack.i.h.bf16 %v5361_v21  ;;  %v5362_v43 = vunpack.i.l.bf16 %v5361_v21  ;;  %v2920_v1 = vmul.f32 %v4907_v3, %v7175_v33 }
 0x420   : > { %v7308_v47 = vmax.f32 %v2984_v57, %v2985_v28  ;;  %v2869_v19 = vpop.f32.mrf.mxu0 }
 0x421   : > { %v3102_v36 = vsel %vm2589_vm1, %v7214_v37, %v5362_v43  ;;  %v3103_v20 = vsel %vm2589_vm1, %v7237_v41, %v5363_v24  ;;  %v2918_v5 = vmul.f32 %v7175_v33, %v2869_v19  ;;  %v2958_v37 = vadd.f32 %v7183_v34, %v2920_v1  ;;  %4918 = vmatpush3.bf16.msra.mxu0 %v5419_v32  ;;  %v5429_v32 = vld [vmem:[#allocation5 + $0x98] sm:$0xff]  }
 0x422   : > { %v5379_v61 = vpack.i.bf16 %v7306_v35, %v7308_v47  ;;  %v3118_v39 = vpack.c.bf16 %v3103_v20, %v3102_v36  ;;  %v4908_v55 = vpop.f32.mrf.mxu0  ;;  %v3125_v22 = vpack.c.bf16 %v7308_v47, %v7278_v46  ;;  %4919 = vmatprep.subr.bf16.mxu0 %v7648_v49 }
 0x423   : > { %v2921_v2 = vmul.f32 %v4908_v55, %v7175_v33  ;;  %v2956_v41 = vadd.f32 %v7183_v34, %v2918_v5  ;;  %v2990_v13 = vmax.f32 %v2958_v37, 0.0 }
 0x424   : > { %5380 = vrot.lane.b32.xlu1 %v5379_v61, %s5644_s25  ;;  %3275 = vmatmul.mubr.bf16.gmra.mxu1 %v3118_v39  ;;  %v2872_v9 = vpop.f32.mrf.mxu0 }
 0x425   : > { %4657 = vmatprep.mubr.msk.bf16.mxu1 %vm2589_vm1, %v3121_v25  ;;  %v2959_v62 = vadd.f32 %v7183_v34, %v2921_v2  ;;  %v2919_v16 = vmul.f32 %v7175_v33, %v2872_v9  ;;  %v2988_v23 = vmax.f32 %v2956_v41, 0.0  ;;  %v5410_v33 = vld [vmem:[#allocation5 + $0x20] sm:$0xff]   ;;  %4920 = vmatpush3.bf16.msra.mxu0 %v5420_v26 }
 0x426   : > { %4936 = vmatpush3.bf16.msra.mxu1 %v5410_v33  ;;  %4921 = vmatprep.subr.bf16.mxu0 %v7648_v49 }
 0x427   : > { %v5366_v10 = vpop.permute.xlu0 %5365  ;;  %v2991_v40 = vmax.f32 %v2959_v62, 0.0  ;;  %v2957_v0 = vadd.f32 %v7183_v34, %v2919_v16  ;;  %4937 = vmatprep.subr.bf16.mxu1 %v7648_v49 }
 0x428   : > { %v5368_v8 = vunpack.i.h.bf16 %v5366_v10  ;;  %v5367_v50 = vunpack.i.l.bf16 %v5366_v10 }
 0x429   : > { %v2989_v45 = vmax.f32 %v2957_v0, 0.0  ;;  %v7336_v34 = vmax.f32 %v2990_v13, %v2991_v40 }
 0x42a   : > { %v3104_v54 = vsel %vm2589_vm1, %v7235_v12, %v5367_v50  ;;  %v3105_v14 = vsel %vm2589_vm1, %v7250_v53, %v5368_v8  ;;  %v5412_v53 = vld [vmem:[#allocation5 + $0x18] sm:$0xff]  }
 0x42b   : > { %v3120_v29 = vpack.c.bf16 %v3105_v14, %v3104_v54  ;;  %v7338_v7 = vmax.f32 %v2988_v23, %v2989_v45  ;;  %4938 = vmatpush3.bf16.msra.mxu1 %v5412_v53  ;;  %v5428_v23 = vld [vmem:[#allocation5 + $0xf0] sm:$0xff]   ;;  %v5430_v45 = vld [vmem:[#allocation5 + $0xe8] sm:$0xff]   ;;  %v5434_v53 = vld [vmem:[#allocation5 + $0xd8] sm:$0xff]  }
 0x42c   : > { %4939 = vmatprep.subr.bf16.mxu1 %v7648_v49 }
 0x42d   : > { %3283 = vmatmul.mubr.bf16.gmra.mxu1 %v3120_v29  ;;  %v5384_v12 = vpack.i.bf16 %v7336_v34, %v7338_v7  ;;  %v3127_v1 = vpack.c.bf16 %v7338_v7, %v7306_v35  ;;  %v5432_v29 = vld [vmem:[#allocation5 + $0xe0] sm:$0xff]  }
 0x42e   : > { %4658 = vmatprep.mubr.msk.bf16.mxu1 %vm2589_vm1, %v3123_v44 }
 0x42f   : > { %5385 = vrot.lane.b32.xlu0 %v5384_v12, %s5644_s25  ;;  %4940 = vmatpush3.bf16.msra.mxu1 %v5414_v60  ;;  %s610_s25 = scalar_lea.vmem [#allocation8], %s4610_s19  ;;  %s5571_s19 = sshll.u32 %s5648_s0, 4  ;;  %s5572_s19 = int_to_ptr.vmem [resolvable:$false] %s5571_s19 }
 0x430   : > { %4941 = vmatprep.subr.bf16.mxu1 %v7648_v49  ;;  %s4510_s21 = sshll.u32 %s610_s25, 4  ;;  %s5573_s29 = scalar_lea.vmem %s5572_s19, 256  ;;  %s7553_s21 = int_to_ptr.vmem [resolvable:$true] %s4510_s21 }
 0x431   : > { %s5567_s30 = scalar_lea.vmem %s7553_s21, 128  ;;  %p5574_p7 = scmp.lt.s32.totalorder %s7553_s21, %s5572_s19 }
 0x432   : > { %p5568_p10 = scmp.ne.s32.totalorder %s7553_s21, %s5567_s30  ;;  %p5575_p8 = scmp.lt.s32.totalorder %s5573_s29, %s5567_s30 }
 0x433   : > { %4942 = vmatpush3.bf16.msra.mxu1 %v5416_v27  ;;  %v5436_v27 = vld [vmem:[#allocation5 + $0xd0] sm:$0xff]  }
 0x434   : > { %4943 = vmatprep.subr.bf16.mxu1 %v7648_v49  ;;  %p5569_p2 = pnand %p5568_p10, %p7651_p12  ;;  %p5576_p11 = por %p5575_p8, %p5574_p7 }
 0x436   : > { %p5570_p4 = pneg %p5569_p2 }
 0x437   : > { %4944 = vmatpush3.bf16.msra.mxu1 %v5418_v6  ;;  %v5423_v6 = vld [vmem:[#allocation5 + $0xb8] sm:$0xff]  }
 0x438   : > { %4969 = vmatprep.subr.bf16.mxu1 %v7648_v49  ;;  %p5577_p0 = pnand %p5576_p11, %p5570_p4 }
 0x441   : > { %v5371_v58 = vpop.permute.xlu1 %5370 }
 0x442   : > { %v5373_v17 = vunpack.i.h.bf16 %v5371_v58  ;;  %v5372_v51 = vunpack.i.l.bf16 %v5371_v58 }
 0x444   : > { %v3106_v56 = vsel %vm2589_vm1, %v7248_v31, %v5372_v51  ;;  %v3107_v4 = vsel %vm2589_vm1, %v7265_v42, %v5373_v17  ;;  %v5421_v31 = vld [vmem:[#allocation5 + $0x48] sm:$0xff]   ;;  %v5422_v42 = vld [vmem:[#allocation5 + $0x40] sm:$0xff]   ;;  %v5424_v51 = vld [vmem:[#allocation5 + $0xb0] sm:$0xff]  }
 0x445   : > { %v3122_v63 = vpack.c.bf16 %v3107_v4, %v3106_v56  ;;  %4922 = vmatpush3.bf16.msra.mxu0 %v5421_v31  ;;  %v5437_v17 = vld [vmem:[#allocation5 + $0xc8] sm:$0xff]   ;;  %v5439_v56 = vld [vmem:[#allocation5 + $0xc0] sm:$0xff]  }
 0x446   : > { %4923 = vmatprep.subr.bf16.mxu0 %v7648_v49  ;;  %v5425_v4 = vld [vmem:[#allocation5 + $0xa8] sm:$0xff]  }
 0x447   : > { %3291 = vmatmul.mubr.bf16.gmra.mxu1 %v3122_v63  ;;  %v5427_v63 = vld [vmem:[#allocation5 + $0xa0] sm:$0xff]   ;;  %v5433_v31 = vld [vmem:[#allocation5 + $0x88] sm:$0xff]  }
 0x448   : > { %4659 = vmatprep.mubr.msk.bf16.mxu1 %vm2589_vm1, %v3125_v22  ;;  %v5431_v22 = vld [vmem:[#allocation5 + $0x90] sm:$0xff]  }
 0x449   : > { %4924 = vmatpush3.bf16.msra.mxu0 %v5422_v42 }
 0x44a   : > { %4949 = vmatprep.subr.bf16.mxu0 %v7648_v49 }
 0x455   : > { %v5376_v57 = vpop.permute.xlu0 %5375 }
 0x456   : > { %v5378_v28 = vunpack.i.h.bf16 %v5376_v57  ;;  %v5377_v21 = vunpack.i.l.bf16 %v5376_v57 }
 0x458   : > { %v3108_v3 = vsel %vm2589_vm1, %v7263_v18, %v5377_v21  ;;  %v3109_v24 = vsel %vm2589_vm1, %v7280_v11, %v5378_v28  ;;  %v3129_v11 = vpack.c.bf16 %v7648_v49, %v7336_v34  ;;  %v5435_v21 = vld [vmem:[#allocation5 + $0x80] sm:$0xff]  }
 0x459   : > { %v3124_v43 = vpack.c.bf16 %v3109_v24, %v3108_v3 }
 0x45b   : > { %3299 = vmatmul.mubr.bf16.gmra.mxu1 %v3124_v43 }
 0x45c   : > { %4660 = vmatprep.mubr.msk.bf16.mxu1 %vm2589_vm1, %v3127_v1 }
 0x496   : > { %v5381_v19 = vpop.permute.xlu1 %5380 }
 0x497   : > { %v5383_v36 = vunpack.i.h.bf16 %v5381_v19  ;;  %v5382_v20 = vunpack.i.l.bf16 %v5381_v19 }
 0x499   : > { %v3110_v61 = vsel %vm2589_vm1, %v7278_v46, %v5382_v20  ;;  %v3111_v5 = vsel %vm2589_vm1, %v7308_v47, %v5383_v36  ;;  %v7388_v47 = vld [vmem:[%s7600_s8] ss:$0 sm:$0xff] }
 0x49a   : > { %v3126_v18 = vpack.c.bf16 %v3111_v5, %v3110_v61 }
 0x49c   : > { %3307 = vmatmul.mubr.bf16.gmra.mxu1 %v3126_v18 }
 0x49d   : > { %4661 = vmatprep.mubr.msk.bf16.mxu1 %vm2589_vm1, %v3129_v11  ;;  %v5438_v11 = vld [vmem:[#allocation5 + $0x138] sm:$0xff]  }
 0x4a1   : > { %v5386_v39 = vpop.permute.xlu0 %5385 }
 0x4a2   : > { %v5388_v55 = vunpack.i.h.bf16 %v5386_v39  ;;  %v5387_v25 = vunpack.i.l.bf16 %v5386_v39 }
 0x4a4   : > { %v3112_v52 = vsel %vm2589_vm1, %v7306_v35, %v5387_v25  ;;  %v3113_v2 = vsel %vm2589_vm1, %v7338_v7, %v5388_v55  ;;  %v7396_v35 = vld [vmem:[%s7601_s9] ss:$0 sm:$0xff] }
 0x4a5   : > { %v3128_v46 = vpack.c.bf16 %v3113_v2, %v3112_v52 }
 0x4a7   : > { %3315 = vmatmul.mubr.bf16.gmra.mxu1 %v3128_v46 }
 0x4a8   : > { %4945 = vmatprep.mubr.msk.bf16.mxu1 %vm5647_vm6, %v7648_v49 }
 0x4aa   : > { %v3260_v37 = vpop.f32.mrf.mxu1 }
 0x4ab   : > { %v3329_v9 = vmul.f32 %v7388_v47, %v3260_v37  ;;  %v5440_v37 = vld [vmem:[#allocation5 + $0x130] sm:$0xff]  }
 0x4ac   : > { %v3262_v41 = vpop.f32.mrf.mxu1 }
 0x4ad   : > { %v3351_v16 = vadd.f32 %v7396_v35, %v3329_v9 }
 0x4ae   : > { %v3263_v62 = vpop.f32.mrf.mxu1 }
 0x4af   : > { %v3330_v10 = vmul.f32 %v7388_v47, %v3263_v62  ;;  %v3367_v8 = vmax.f32 %v3351_v16, 0.0  ;;  %v5441_v16 = vld [vmem:[#allocation5 + $0x128] sm:$0xff]  }
 0x4b0   : > { %v3265_v40 = vpop.f32.mrf.mxu1 }
 0x4b1   : > { %v3352_v0 = vadd.f32 %v7396_v35, %v3330_v10  ;;  %v5442_v10 = vld [vmem:[#allocation5 + $0x178] sm:$0xff]  }
 0x4b3   : > { %v3368_v50 = vmax.f32 %v3352_v0, 0.0  ;;  %v5443_v0 = vld [vmem:[#allocation5 + $0x120] sm:$0xff]  }
 0x4b5   : > { %v3383_v59 = vmax.f32 %v3367_v8, %v3368_v50  ;;  %v5444_v8 = vld [vmem:[#allocation5 + $0x170] sm:$0xff]   ;;  %v5445_v50 = vld [vmem:[#allocation5 + $0x118] sm:$0xff]  }
 0x4b7   : > { %v3391_v13 = vpack.c.bf16 %v3383_v59, %v3383_v59  ;;  %v5446_v59 = vld [vmem:[#allocation5 + $0x168] sm:$0xff]  }
 0x4b9   : > { %4946 = vmatmul.mubr.bf16.vlgmr.msra.gmra.mxu1 %v3391_v13  ;;  %v5448_v13 = vld [vmem:[#allocation5 + $0x160] sm:$0xff]  }
 0x4ba   : > { %4970 = vmatpush3.bf16.msra.mxu1 %v5426_v48  ;;  %4985 = vmatprep.mubr.msk.bf16.mxu1 %vm5647_vm6, %v7648_v49  ;;  %v5447_v48 = vld [vmem:[#allocation5 + $0x110] sm:$0xff]  }
 0x4bb   : > { %4971 = vmatprep.subr.bf16.mxu1 %v7648_v49 }
 0x4be   : > { %4972 = vmatpush3.bf16.msra.mxu1 %v5428_v23 }
 0x4bf   : > { %4973 = vmatprep.subr.bf16.mxu1 %v7648_v49  ;;  %v3268_v54 = vpop.f32.mrf.mxu1 }
 0x4c0   : > { %v3331_v14 = vmul.f32 %v7388_v47, %v3268_v54  ;;  %v5449_v54 = vld [vmem:[#allocation5 + $0x108] sm:$0xff]  }
 0x4c1   : > { %v3270_v33 = vpop.f32.mrf.mxu1 }
 0x4c2   : > { %4974 = vmatpush3.bf16.msra.mxu1 %v5430_v45  ;;  %v3353_v7 = vadd.f32 %v7396_v35, %v3331_v14  ;;  %v5450_v33 = vld [vmem:[#allocation5 + $0x158] sm:$0xff]  }
 0x4c3   : > { %4975 = vmatprep.subr.bf16.mxu1 %v7648_v49  ;;  %v3271_v34 = vpop.f32.mrf.mxu1 }
 0x4c4   : > { %v3332_v44 = vmul.f32 %v7388_v47, %v3271_v34  ;;  %v3369_v60 = vmax.f32 %v3353_v7, 0.0 }
 0x4c5   : > { %v3273_v12 = vpop.f32.mrf.mxu1 }
 0x4c6   : > { %4976 = vmatpush3.bf16.msra.mxu1 %v5432_v29  ;;  %v3354_v38 = vadd.f32 %v7396_v35, %v3332_v44  ;;  %v5451_v44 = vld [vmem:[#allocation5 + $0x100] sm:$0xff]  }
 0x4c7   : > { %4977 = vmatprep.subr.bf16.mxu1 %v7648_v49 }
 0x4c8   : > { %v3370_v15 = vmax.f32 %v3354_v38, 0.0 }
 0x4ca   : > { %4978 = vmatpush3.bf16.msra.mxu1 %v5434_v53  ;;  %v3384_v30 = vmax.f32 %v3369_v60, %v3370_v15  ;;  %v5452_v53 = vld [vmem:[#allocation5 + $0x150] sm:$0xff]  }
 0x4cb   : > { %4979 = vmatprep.subr.bf16.mxu1 %v7648_v49 }
 0x4cc   : > { %v3408_v58 = vpack.c.bf16 %v3384_v30, %v3384_v30 }
 0x4ce   : > { %4980 = vmatpush3.bf16.msra.mxu1 %v5436_v27  ;;  %4926 = vmatmul.mubr.bf16.vlgmr.msra.gmra.mxu0 %v3408_v58  ;;  %v5453_v27 = vld [vmem:[#allocation5 + $0x148] sm:$0xff]  }
 0x4cf   : > { %4981 = vmatprep.subr.bf16.mxu1 %v7648_v49  ;;  %4950 = vmatpush3.bf16.msra.mxu0 %v5423_v6  ;;  %v5455_v6 = vld [vmem:[#allocation5 + $0x1b8] sm:$0xff]  }
 0x4d0   : > { %4965 = vmatprep.mubr.msk.bf16.mxu0 %vm5647_vm6, %v7648_v49  ;;  %4951 = vmatprep.subr.bf16.mxu0 %v7648_v49 }
 0x4d2   : > { %4982 = vmatpush3.bf16.msra.mxu1 %v5437_v17  ;;  %v5454_v17 = vld [vmem:[#allocation5 + $0x140] sm:$0xff]  }
 0x4d3   : > { %4983 = vmatprep.subr.bf16.mxu1 %v7648_v49  ;;  %4952 = vmatpush3.bf16.msra.mxu0 %v5424_v51  ;;  %v5456_v51 = vld [vmem:[#allocation5 + $0x1b0] sm:$0xff]  }
 0x4d4   : > { %4953 = vmatprep.subr.bf16.mxu0 %v7648_v49 }
 0x4d6   : > { %4984 = vmatpush3.bf16.msra.mxu1 %v5439_v56  ;;  %v5457_v56 = vld [vmem:[#allocation5 + $0x1a8] sm:$0xff]  }
 0x4d7   : > { %5009 = vmatprep.subr.bf16.mxu1 %v7648_v49  ;;  %4954 = vmatpush3.bf16.msra.mxu0 %v5425_v4 }
 0x4d8   : > { %4955 = vmatprep.subr.bf16.mxu0 %v7648_v49 }
 0x4db   : > { %4956 = vmatpush3.bf16.msra.mxu0 %v5427_v63 }
 0x4dc   : > { %4957 = vmatprep.subr.bf16.mxu0 %v7648_v49 }
 0x4df   : > { %4958 = vmatpush3.bf16.msra.mxu0 %v5429_v32 }
 0x4e0   : > { %4959 = vmatprep.subr.bf16.mxu0 %v7648_v49 }
 0x4e3   : > { %4960 = vmatpush3.bf16.msra.mxu0 %v5431_v22  ;;  %v5458_v22 = vld [vmem:[#allocation5 + $0x1a0] sm:$0xff]  }
 0x4e4   : > { %v3276_v26 = vpop.f32.mrf.mxu1  ;;  %4961 = vmatprep.subr.bf16.mxu0 %v7648_v49 }
 0x4e5   : > { %v3333_v42 = vmul.f32 %v7388_v47, %v3276_v26 }
 0x4e6   : > { %v3278_v57 = vpop.f32.mrf.mxu1 }
 0x4e7   : > { %4962 = vmatpush3.bf16.msra.mxu0 %v5433_v31  ;;  %v3355_v3 = vadd.f32 %v7396_v35, %v3333_v42 }
 0x4e8   : > { %v3279_v28 = vpop.f32.mrf.mxu1  ;;  %4963 = vmatprep.subr.bf16.mxu0 %v7648_v49 }
 0x4e9   : > { %v3334_v24 = vmul.f32 %v7388_v47, %v3279_v28  ;;  %v3371_v19 = vmax.f32 %v3355_v3, 0.0 }
 0x4ea   : > { %v3281_v43 = vpop.f32.mrf.mxu1 }
 0x4eb   : > { %v3356_v1 = vadd.f32 %v7396_v35, %v3334_v24  ;;  %4964 = vmatpush3.bf16.msra.mxu0 %v5435_v21  ;;  %v5459_v21 = vld [vmem:[#allocation5 + $0x198] sm:$0xff]  }
 0x4ec   : > { %4989 = vmatprep.subr.bf16.mxu0 %v7648_v49 }
 0x4ed   : > { %v3372_v36 = vmax.f32 %v3356_v1, 0.0  ;;  %v3284_v20 = vpop.f32.mrf.mxu1  ;;  %v5461_v1 = vld [vmem:[#allocation5 + $0x190] sm:$0xff]  }
 0x4ee   : > { %v3335_v61 = vmul.f32 %v7388_v47, %v3284_v20  ;;  %v5463_v20 = vld [vmem:[#allocation5 + $0x188] sm:$0xff]  }
 0x4ef   : > { %v3385_v5 = vmax.f32 %v3371_v19, %v3372_v36  ;;  %v3286_v18 = vpop.f32.mrf.mxu1  ;;  %v5460_v19 = vld [vmem:[#allocation5 + $0x1f8] sm:$0xff]  }
 0x4f0   : > { %v3357_v25 = vadd.f32 %v7396_v35, %v3335_v61  ;;  %v5462_v61 = vld [vmem:[#allocation5 + $0x1f0] sm:$0xff]   ;;  %v5464_v18 = vld [vmem:[#allocation5 + $0x1e8] sm:$0xff]  }
 0x4f1   : > { %v3602_v39 = vpack.c.bf16 %v3385_v5, %v3385_v5  ;;  %v3287_v55 = vpop.f32.mrf.mxu1  ;;  %v5465_v5 = vld [vmem:[#allocation5 + $0x180] sm:$0xff]  }
 0x4f2   : > { %v3336_v52 = vmul.f32 %v7388_v47, %v3287_v55  ;;  %v3373_v9 = vmax.f32 %v3357_v25, 0.0  ;;  %v5468_v55 = vld [vmem:[#allocation5 + $0x1d0] sm:$0xff]   ;;  %v5469_v25 = vld [vmem:[#allocation5 + $0x1c8] sm:$0xff]  }
 0x4f3   : > { %v3289_v2 = vpop.f32.mrf.mxu1  ;;  %4966 = vmatmul.mubr.bf16.vlgmr.msra.gmra.mxu0 %v3602_v39  ;;  %v5467_v39 = vld [vmem:[#allocation5 + $0x1d8] sm:$0xff]  }
 0x4f4   : > { %v3358_v46 = vadd.f32 %v7396_v35, %v3336_v52  ;;  %4990 = vmatpush3.bf16.msra.mxu0 %v5438_v11  ;;  %5005 = vmatprep.mubr.msk.bf16.mxu0 %vm5647_vm6, %v7648_v49  ;;  %v5466_v11 = vld [vmem:[#allocation5 + $0x1e0] sm:$0xff]  }
 0x4f5   : > { %4991 = vmatprep.subr.bf16.mxu0 %v7648_v49  ;;  %v5470_v52 = vld [vmem:[#allocation5 + $0x1c0] sm:$0xff]  }
 0x4f6   : > { %v3374_v41 = vmax.f32 %v3358_v46, 0.0 }
 0x4f8   : > { %v3386_v62 = vmax.f32 %v3373_v9, %v3374_v41  ;;  %4992 = vmatpush3.bf16.msra.mxu0 %v5440_v37 }
 0x4f9   : > { %4993 = vmatprep.subr.bf16.mxu0 %v7648_v49 }
 0x4fa   : > { %v3709_v40 = vpack.c.bf16 %v3386_v62, %v3386_v62 }
 0x4fc   : > { %4986 = vmatmul.mubr.bf16.vlgmr.msra.gmra.mxu1 %v3709_v40  ;;  %4994 = vmatpush3.bf16.msra.mxu0 %v5441_v16 }
 0x4fd   : > { %5010 = vmatpush3.bf16.msra.mxu1 %v5442_v10  ;;  %4995 = vmatprep.subr.bf16.mxu0 %v7648_v49 }
 0x4fe   : > { %5011 = vmatprep.subr.bf16.mxu1 %v7648_v49  ;;  %5025 = vmatprep.mubr.msk.bf16.mxu1 %vm5647_vm6, %v7648_v49 }
 0x500   : > { %4996 = vmatpush3.bf16.msra.mxu0 %v5443_v0 }
 0x501   : > { %5012 = vmatpush3.bf16.msra.mxu1 %v5444_v8  ;;  %4997 = vmatprep.subr.bf16.mxu0 %v7648_v49 }
 0x502   : > { %5013 = vmatprep.subr.bf16.mxu1 %v7648_v49 }
 0x504   : > { %4998 = vmatpush3.bf16.msra.mxu0 %v5445_v50 }
 0x505   : > { %5014 = vmatpush3.bf16.msra.mxu1 %v5446_v59  ;;  %4999 = vmatprep.subr.bf16.mxu0 %v7648_v49 }
 0x506   : > { %5015 = vmatprep.subr.bf16.mxu1 %v7648_v49 }
 0x507   : > { %v3292_v23 = vpop.f32.mrf.mxu1 }
 0x508   : > { %v3337_v45 = vmul.f32 %v7388_v47, %v3292_v23  ;;  %5000 = vmatpush3.bf16.msra.mxu0 %v5447_v48 }
 0x509   : > { %v3294_v14 = vpop.f32.mrf.mxu1  ;;  %5016 = vmatpush3.bf16.msra.mxu1 %v5448_v13  ;;  %5001 = vmatprep.subr.bf16.mxu0 %v7648_v49 }
 0x50a   : > { %5017 = vmatprep.subr.bf16.mxu1 %v7648_v49  ;;  %v3359_v34 = vadd.f32 %v7396_v35, %v3337_v45 }
 0x50b   : > { %v3295_v29 = vpop.f32.mrf.mxu1 }
 0x50c   : > { %v3338_v7 = vmul.f32 %v7388_v47, %v3295_v29  ;;  %5002 = vmatpush3.bf16.msra.mxu0 %v5449_v54  ;;  %v3375_v60 = vmax.f32 %v3359_v34, 0.0 }
 0x50d   : > { %v3297_v12 = vpop.f32.mrf.mxu1  ;;  %5018 = vmatpush3.bf16.msra.mxu1 %v5450_v33  ;;  %5003 = vmatprep.subr.bf16.mxu0 %v7648_v49 }
 0x50e   : > { %v3360_v38 = vadd.f32 %v7396_v35, %v3338_v7  ;;  %5019 = vmatprep.subr.bf16.mxu1 %v7648_v49  ;;  %v5471_v7 = vld [vmem:[%s7605_s13 + $0x38] sm:$0xff]  }
 0x510   : > { %v3376_v15 = vmax.f32 %v3360_v38, 0.0  ;;  %5004 = vmatpush3.bf16.msra.mxu0 %v5451_v44 }
 0x511   : > { %5020 = vmatpush3.bf16.msra.mxu1 %v5452_v53  ;;  %5029 = vmatprep.subr.bf16.mxu0 %v7648_v49 }
 0x512   : > { %v3387_v30 = vmax.f32 %v3375_v60, %v3376_v15  ;;  %5021 = vmatprep.subr.bf16.mxu1 %v7648_v49 }
 0x514   : > { %v3816_v58 = vpack.c.bf16 %v3387_v30, %v3387_v30 }
 0x515   : > { %5022 = vmatpush3.bf16.msra.mxu1 %v5453_v27 }
 0x516   : > { %5006 = vmatmul.mubr.bf16.vlgmr.msra.gmra.mxu0 %v3816_v58  ;;  %5023 = vmatprep.subr.bf16.mxu1 %v7648_v49  ;;  %v5472_v58 = vld [vmem:[%s7605_s13 + $0x30] sm:$0xff]  }
 0x517   : > { %5030 = vmatpush3.bf16.msra.mxu0 %v5455_v6  ;;  %5045 = vmatprep.mubr.msk.bf16.mxu0 %vm5647_vm6, %v7648_v49 }
 0x518   : > { %5031 = vmatprep.subr.bf16.mxu0 %v7648_v49 }
 0x519   : > { %5024 = vmatpush3.bf16.msra.mxu1 %v5454_v17  ;;  %v5473_v17 = vld [vmem:[%s7605_s13 + $0x28] sm:$0xff]  }
 0x51a   : > { %5049 = vmatprep.subr.bf16.mxu1 %v7648_v49 }
 0x51b   : > { %5032 = vmatpush3.bf16.msra.mxu0 %v5456_v51  ;;  %v3300_v4 = vpop.f32.mrf.mxu1  ;;  %v5474_v51 = vld [vmem:[%s7605_s13 + $0x20] sm:$0xff]  }
 0x51c   : > { %5033 = vmatprep.subr.bf16.mxu0 %v7648_v49  ;;  %v3339_v63 = vmul.f32 %v7388_v47, %v3300_v4 }
 0x51d   : > { %v3302_v32 = vpop.f32.mrf.mxu1 }
 0x51e   : > { %v3361_v31 = vadd.f32 %v7396_v35, %v3339_v63  ;;  %v5475_v32 = vld [vmem:[%s7605_s13 + $0x18] sm:$0xff]  }
 0x51f   : > { %5034 = vmatpush3.bf16.msra.mxu0 %v5457_v56  ;;  %v3303_v26 = vpop.f32.mrf.mxu1 }
 0x520   : > { %5035 = vmatprep.subr.bf16.mxu0 %v7648_v49  ;;  %v3340_v42 = vmul.f32 %v7388_v47, %v3303_v26  ;;  %v3377_v3 = vmax.f32 %v3361_v31, 0.0 }
 0x521   : > { %v3305_v57 = vpop.f32.mrf.mxu1 }
 0x522   : > { %v3362_v28 = vadd.f32 %v7396_v35, %v3340_v42 }
 0x523   : > { %5036 = vmatpush3.bf16.msra.mxu0 %v5458_v22 }
 0x524   : > { %5037 = vmatprep.subr.bf16.mxu0 %v7648_v49  ;;  %v3378_v24 = vmax.f32 %v3362_v28, 0.0 }
 0x526   : > { %v3388_v43 = vmax.f32 %v3377_v3, %v3378_v24  ;;  %v5477_v24 = vld [vmem:[%s7605_s13 + $0x8] sm:$0xff]  }
 0x527   : > { %5038 = vmatpush3.bf16.msra.mxu0 %v5459_v21  ;;  %v5476_v21 = vld [vmem:[%s7605_s13 + $0x10] sm:$0xff]  }
 0x528   : > { %5039 = vmatprep.subr.bf16.mxu0 %v7648_v49  ;;  %v3923_v36 = vpack.c.bf16 %v3388_v43, %v3388_v43  ;;  %v5479_v43 = vld [vmem:[#allocation7 + $0x38] sm:$0xff]  }
 0x52a   : > { %5026 = vmatmul.mubr.bf16.vlgmr.msra.gmra.mxu1 %v3923_v36  ;;  %v5481_v36 = vld [vmem:[#allocation7 + $0x28] sm:$0xff]  }
 0x52b   : > { %5040 = vmatpush3.bf16.msra.mxu0 %v5461_v1  ;;  %5050 = vmatpush3.bf16.msra.mxu1 %v5460_v19  ;;  %v5480_v1 = vld [vmem:[#allocation7 + $0x30] sm:$0xff]   ;;  %v5478_v19 = vld [vmem:[%s7605_s13] sm:$0xff]  }
 0x52c   : > { %5041 = vmatprep.subr.bf16.mxu0 %v7648_v49  ;;  %5051 = vmatprep.subr.bf16.mxu1 %v7648_v49 }
 0x52d   : > { %5065 = vmatprep.mubr.msk.bf16.mxu1 %vm5647_vm6, %v7648_v49 }
 0x52f   : > { %5042 = vmatpush3.bf16.msra.mxu0 %v5463_v20  ;;  %5052 = vmatpush3.bf16.msra.mxu1 %v5462_v61  ;;  %v5482_v20 = vld [vmem:[#allocation7 + $0x20] sm:$0xff]   ;;  %v5483_v61 = vld [vmem:[#allocation7 + $0x18] sm:$0xff]  }
 0x530   : > { %5043 = vmatprep.subr.bf16.mxu0 %v7648_v49  ;;  %5053 = vmatprep.subr.bf16.mxu1 %v7648_v49 }
 0x533   : > { %5044 = vmatpush3.bf16.msra.mxu0 %v5465_v5  ;;  %5054 = vmatpush3.bf16.msra.mxu1 %v5464_v18  ;;  %v5484_v5 = vld [vmem:[#allocation7 + $0x10] sm:$0xff]  }
 0x534   : > { %5069 = vmatprep.subr.bf16.mxu0 %v7648_v49  ;;  %5055 = vmatprep.subr.bf16.mxu1 %v7648_v49 }
 0x537   : > { %5056 = vmatpush3.bf16.msra.mxu1 %v5466_v11 }
 0x538   : > { %5057 = vmatprep.subr.bf16.mxu1 %v7648_v49 }
 0x53b   : > { %5058 = vmatpush3.bf16.msra.mxu1 %v5467_v39 }
 0x53c   : > { %5059 = vmatprep.subr.bf16.mxu1 %v7648_v49 }
 0x53f   : > { %5060 = vmatpush3.bf16.msra.mxu1 %v5468_v55 }
 0x540   : > { %5061 = vmatprep.subr.bf16.mxu1 %v7648_v49 }
 0x543   : > { %5062 = vmatpush3.bf16.msra.mxu1 %v5469_v25 }
 0x544   : > { %5063 = vmatprep.subr.bf16.mxu1 %v7648_v49 }
 0x547   : > { %5064 = vmatpush3.bf16.msra.mxu1 %v5470_v52 }
 0x548   : > { %5089 = vmatprep.subr.bf16.mxu1 %v7648_v49 }
 0x55c   : > { %v3308_v2 = vpop.f32.mrf.mxu1 }
 0x55d   : > { %v3341_v46 = vmul.f32 %v7388_v47, %v3308_v2 }
 0x55e   : > { %v3310_v37 = vpop.f32.mrf.mxu1 }
 0x55f   : > { %v3363_v41 = vadd.f32 %v7396_v35, %v3341_v46 }
 0x560   : > { %v3311_v9 = vpop.f32.mrf.mxu1 }
 0x561   : > { %v3342_v62 = vmul.f32 %v7388_v47, %v3311_v9  ;;  %v3379_v40 = vmax.f32 %v3363_v41, 0.0 }
 0x562   : > { %v3313_v16 = vpop.f32.mrf.mxu1 }
 0x563   : > { %v3364_v10 = vadd.f32 %v7396_v35, %v3342_v62 }
 0x565   : > { %v3380_v0 = vmax.f32 %v3364_v10, 0.0 }
 0x567   : > { %v3389_v8 = vmax.f32 %v3379_v40, %v3380_v0  ;;  %v3316_v50 = vpop.f32.mrf.mxu1 }
 0x568   : > { %v3343_v48 = vmul.f32 %v7388_v47, %v3316_v50 }
 0x569   : > { %v4030_v59 = vpack.c.bf16 %v3389_v8, %v3389_v8  ;;  %v3318_v13 = vpop.f32.mrf.mxu1  ;;  %v4728_v8 = vld [vmem:[%s7603_s11] ss:$0 sm:$0xff] }
 0x56a   : > { %v3365_v45 = vadd.f32 %v7396_v35, %v3343_v48 }
 0x56b   : > { %5046 = vmatmul.mubr.bf16.vlgmr.msra.gmra.mxu0 %v4030_v59  ;;  %v3319_v23 = vpop.f32.mrf.mxu1  ;;  %v4729_v59 = vld [vmem:[%s7604_s12] ss:$0 sm:$0xff] }
 0x56c   : > { %5085 = vmatprep.mubr.msk.bf16.mxu0 %vm5647_vm6, %v7648_v49  ;;  %v3344_v54 = vmul.f32 %v7388_v47, %v3319_v23  ;;  %v3381_v29 = vmax.f32 %v3365_v45, 0.0  ;;  %5070 = vmatpush3.bf16.msra.mxu0 %v5471_v7  ;;  %v4738_v7 = vld [vmem:[%s7606_s14] ss:$0 sm:$0xff] }
 0x56d   : > { %v3321_v14 = vpop.f32.mrf.mxu1  ;;  %5071 = vmatprep.subr.bf16.mxu0 %v7648_v49 }
 0x56e   : > { %v3366_v33 = vadd.f32 %v7396_v35, %v3344_v54 }
 0x570   : > { %v3382_v34 = vmax.f32 %v3366_v33, 0.0  ;;  %5072 = vmatpush3.bf16.msra.mxu0 %v5472_v58 }
 0x571   : > { %5073 = vmatprep.subr.bf16.mxu0 %v7648_v49 }
 0x572   : > { %v3390_v44 = vmax.f32 %v3381_v29, %v3382_v34  ;;  %v5485_v29 = vld [vmem:[#allocation7 + $0x8] sm:$0xff]   ;;  %v5486_v34 = vld [vmem:[#allocation7] sm:$0xff]  }
 0x574   : > { %v4137_v12 = vpack.c.bf16 %v3390_v44, %v3390_v44  ;;  %5074 = vmatpush3.bf16.msra.mxu0 %v5473_v17 }
 0x575   : > { %5075 = vmatprep.subr.bf16.mxu0 %v7648_v49 }
 0x576   : > { %5066 = vmatmul.mubr.bf16.vlgmr.msra.gmra.mxu1 %v4137_v12  ;;  %v4739_v12 = vld [vmem:[%s7607_s15] ss:$0 sm:$0xff] }
 0x577   : > { %5105 = vmatprep.mubr.msk.bf16.mxu1 %vm5647_vm6, %v7648_v49  ;;  %5090 = vmatpush3.bf16.msra.mxu1 %v5479_v43 }
 0x578   : > { %5076 = vmatpush3.bf16.msra.mxu0 %v5474_v51  ;;  %5091 = vmatprep.subr.bf16.mxu1 %v7648_v49 }
 0x579   : > { %v3596_v53 = vpop.f32.mrf.mxu1  ;;  %5077 = vmatprep.subr.bf16.mxu0 %v7648_v49 }
 0x57b   : > { %v4947_v47 = vpop.f32.mrf.mxu1  ;;  %5092 = vmatpush3.bf16.msra.mxu1 %v5480_v1 }
 0x57c   : > { %5078 = vmatpush3.bf16.msra.mxu0 %v5475_v32  ;;  %5093 = vmatprep.subr.bf16.mxu1 %v7648_v49 }
 0x57d   : > { %v3599_v38 = vpop.f32.mrf.mxu1  ;;  %5079 = vmatprep.subr.bf16.mxu0 %v7648_v49 }
 0x57f   : > { %v4948_v60 = vpop.f32.mrf.mxu1  ;;  %5094 = vmatpush3.bf16.msra.mxu1 %v5481_v36 }
 0x580   : > { %5080 = vmatpush3.bf16.msra.mxu0 %v5476_v21  ;;  %5095 = vmatprep.subr.bf16.mxu1 %v7648_v49 }
 0x581   : > { %5081 = vmatprep.subr.bf16.mxu0 %v7648_v49 }
 0x583   : > { %5096 = vmatpush3.bf16.msra.mxu1 %v5482_v20 }
 0x584   : > { %5082 = vmatpush3.bf16.msra.mxu0 %v5477_v24  ;;  %5097 = vmatprep.subr.bf16.mxu1 %v7648_v49 }
 0x585   : > { %5083 = vmatprep.subr.bf16.mxu0 %v7648_v49 }
 0x587   : > { %5098 = vmatpush3.bf16.msra.mxu1 %v5483_v61 }
 0x588   : > { %5084 = vmatpush3.bf16.msra.mxu0 %v5478_v19  ;;  %5099 = vmatprep.subr.bf16.mxu1 %v7648_v49 }
 0x58b   : > { %5100 = vmatpush3.bf16.msra.mxu1 %v5484_v5 }
 0x58c   : > { %5101 = vmatprep.subr.bf16.mxu1 %v7648_v49 }
 0x58e   : > { %v3508_v35 = vpop.f32.mrf.mxu0 }
 0x58f   : > { %v3597_v15 = vadd.f32 %v3596_v53, %v3508_v35  ;;  %5102 = vmatpush3.bf16.msra.mxu1 %v5485_v29 }
 0x590   : > { %v4927_v27 = vpop.f32.mrf.mxu0  ;;  %5103 = vmatprep.subr.bf16.mxu1 %v7648_v49  ;;  %v4740_v49 = vld [vmem:[%s7609_s17] ss:$0 sm:$0xff] }
 0x592   : > { %v3511_v30 = vpop.f32.mrf.mxu0 }
 0x593   : > { %5104 = vmatpush3.bf16.msra.mxu1 %v5486_v34 }
 0x594   : > { %v4928_v6 = vpop.f32.mrf.mxu0 }
 0x5b3   : > { %v3702_v56 = vpop.f32.mrf.mxu0 }
 0x5b4   : > { %v3708_v4 = vadd.f32 %v3702_v56, %v3597_v15 }
 0x5b5   : > { %v4967_v63 = vpop.f32.mrf.mxu0 }
 0x5b7   : > { %v3705_v22 = vpop.f32.mrf.mxu0 }
 0x5b9   : > { %v4968_v26 = vpop.f32.mrf.mxu0 }
 0x5bc   : > { %v3809_v31 = vpop.f32.mrf.mxu1 }
 0x5bd   : > { %v3815_v42 = vadd.f32 %v3809_v31, %v3708_v4 }
 0x5be   : > { %v4987_v57 = vpop.f32.mrf.mxu1 }
 0x5c0   : > { %v3812_v28 = vpop.f32.mrf.mxu1 }
 0x5c2   : > { %v4988_v3 = vpop.f32.mrf.mxu1 }
 0x5d6   : > { %v3916_v18 = vpop.f32.mrf.mxu0 }
 0x5d7   : > { %v3922_v11 = vadd.f32 %v3916_v18, %v3815_v42 }
 0x5d8   : > { %v5007_v39 = vpop.f32.mrf.mxu0 }
 0x5da   : > { %v3919_v55 = vpop.f32.mrf.mxu0 }
 0x5dc   : > { %v5008_v25 = vpop.f32.mrf.mxu0 }
 0x5ea   : > { %v4023_v52 = vpop.f32.mrf.mxu1 }
 0x5eb   : > { %v4029_v2 = vadd.f32 %v4023_v52, %v3922_v11 }
 0x5ec   : > { %v5027_v46 = vpop.f32.mrf.mxu1 }
 0x5ee   : > { %v4026_v37 = vpop.f32.mrf.mxu1 }
 0x5f0   : > { %v5028_v9 = vpop.f32.mrf.mxu1 }
 0x62b   : > { %v4130_v41 = vpop.f32.mrf.mxu0 }
 0x62c   : > { %v4136_v40 = vadd.f32 %v4130_v41, %v4029_v2 }
 0x62d   : > { %v5047_v62 = vpop.f32.mrf.mxu0 }
 0x62f   : > { %v4133_v16 = vpop.f32.mrf.mxu0 }
 0x631   : > { %v5048_v10 = vpop.f32.mrf.mxu0 }
 0x636   : > { %v4237_v0 = vpop.f32.mrf.mxu1 }
 0x637   : > { %v4243_v50 = vadd.f32 %v4237_v0, %v4136_v40 }
 0x638   : > { %v5067_v48 = vpop.f32.mrf.mxu1 }
 0x639   : > { %v4251_v13 = vmul.f32 %v4728_v8, %v4243_v50 }
 0x63a   : > { %v4240_v23 = vpop.f32.mrf.mxu1 }
 0x63b   : > { %v4259_v45 = vadd.f32 %v4729_v59, %v4251_v13 }
 0x63c   : > { %v5068_v54 = vpop.f32.mrf.mxu1 }
 0x63d   : > { %v4260_v14 = vmax.f32 %v4259_v45, 0.0 }
 0x63f   : > { %v4261_v33 = vpack.c.bf16 %v4260_v14, %v4260_v14 }
 0x641   : > { %5086 = vmatmul.mubr.bf16.vlgmr.msra.gmra.mxu0 %v4261_v33 }
 0x701   : > { %v4360_v44 = vpop.f32.mrf.mxu0 }
 0x702   : > { %v4373_v53 = vmul.f32 %v4738_v7, %v4360_v44 }
 0x703   : > { %v5087_v47 = vpop.f32.mrf.mxu0 }
 0x704   : > { %v4381_v38 = vadd.f32 %v4739_v12, %v4373_v53 }
 0x705   : > { %v4363_v60 = vpop.f32.mrf.mxu0 }
 0x706   : > { %v4382_v35 = vmax.f32 %v4381_v38, 0.0 }
 0x707   : > { %v5088_v15 = vpop.f32.mrf.mxu0 }
 0x708   : > { %v4383_v27 = vpack.c.bf16 %v4382_v35, %v4382_v35 }
 0x70a   : > { %5106 = vmatmul.mubr.bf16.vlgmr.msra.gmra.mxu1 %v4383_v27 }
 0x7ca   : > { %v4489_v30 = vpop.f32.mrf.mxu1 }
 0x7cb   : > { %v4490_v6 = vadd.f32 %v4740_v49, %v4489_v30 }
 0x7cc   : > { %v5107_v58 = vpop.f32.mrf.mxu1 }
 0x7cd   : > { %4495 = vst [vmem:[%s610_s25] sm:$0xff] %v4490_v6 }
 0x7ce   : > { %v4492_v17 = vpop.f32.mrf.mxu1 }
 0x7cf   : > { %5580 = shalt.err (!%p5577_p0)
}
 0x7d0   : > { %s5581_s24 = scalar_lea.hbm %s7551_s1, 128  ;;  %s5585_s20 = scalar_lea.hbm %s7610_s18, 256 }
 0x7d1   : > { %p5582_p6 = scmp.ne.s32.totalorder %s7551_s1, %s5581_s24  ;;  %p5586_p1 = scmp.lt.s32.totalorder %s7551_s1, %s7610_s18 }
 0x7d2   : > { %p5587_p5 = scmp.lt.s32.totalorder %s5585_s20, %s5581_s24 }
 0x7d3   : > { %p5583_p9 = pnand %p5582_p6, %p7651_p12 }
 0x7d4   : > { %p5588_p3 = por %p5587_p5, %p5586_p1 }
 0x7d5   : > { %p5584_p13 = pneg %p5583_p9 }
 0x7d7   : > { %p5589_p10 = pnand %p5588_p3, %p5584_p13 }
 0x7d9   : > { %5592 = shalt.err (!%p5589_p10)
}
 0x7da   : > { %5121 = dma.vmem_to_hbm [thread:$0]  (%p7651_p12), %s7553_s21, 128, %s7551_s1, %s4497_s23   ;;  %v5108_v51 = vpop.f32.mrf.mxu1 }
 0x7db PF: > { %s7652_s30 = sld [smem:[#allocation14_spill]] }
 0x7dc   : > { %s7653_s19 = sld [smem:[#allocation12_spill]] }
 0x7dd   : > { %s7654_s29 = sld [smem:[#allocation17_spill]] }
 0x7e1   : > { %p5143_p2 = scmp.ge.s32.totalorder %s7652_s30, 2 }
 0x7e2   : > { %s4522_s27 = sand.u32 1, %s7653_s19  }
 0x7e3   : > { %p7655_p4 = scmp.ne.s32.totalorder %s7654_s29, 0  ;;  %s4523_s25 = scalar_lea.sflag [#allocation4], %s4522_s27 }
 0x7e5   : > { %p5134_p7 = pnand %p5143_p2, %p7655_p4 }
 0x7e7   : > { %p5135_p8 = pneg %p5134_p7 }
 0x7e9   : > { %5618 = dma.done.wait (%p5135_p8), %s4523_s25, 128  }
 0x7ea   : > { %5620 = vsyncadd (%p5135_p8), %s4523_s25, 4294967168  ;;  %s7656_s30 = sld [smem:[#allocation15_spill]]  ;;  %s7659_s27 = smov %s5627_s28 }
 0x7eb   : > { %s7657_s24 = sld [smem:[#allocation13_spill]] }
 0x7ec   : > { %s7658_s29 = sld [smem:[#allocation16_spill]] }
 0x7f0   : > { %p30_p11 = scmp.ge.s32.totalorder %s7656_s30, 4  }
 0x7f1   : > { %s7660_s28 = smov %s7657_s24 }
 0x7f2   :  { %32 = sbr.rel (!%p30_p11) target bundleno = 9 (0x9), region = 147 }
 0x7f7   :  { %4528 = vsyncpa [#allocation3], 1 }
 0x7f8   :  { %4530 = vsyncpa [#allocation3 + $0x1], 1 }
 0x7f9   :  { %4531 = vsyncpa [#allocation6], 1 }
 0x7fa   :  { %4532 = vsyncpa [#allocation4], 1 }
 0x7fb   :  { %4534 = vsyncpa [#allocation4 + $0x1], 1 }

</bundles_post_ra>
